<compile_context>
chip_gen: v7x
topology: tpu7x:2x2x1
jax: 0.10.0
libtpu: 0.0.40
codegen_flags: <defaults>
</compile_context>

<pallas_src>
import functools

import jax
import jax.numpy as jnp
import numpy as np
from jax.experimental import pallas as pl
from jax.experimental.pallas import tpu as pltpu


# ----------------------------------------------------------------------------------
# In-kernel building blocks
# ----------------------------------------------------------------------------------
def _conv3x3_bn_relu(read_slab, w9, scale, shift, h, w):
    """3x3 'same' conv as 9 tap-accumulated matmuls + folded BN affine + ReLU.

    read_slab(start) -> (h*w, Cin) contiguous row-slab of the H-halo-padded, row-major
    activation buffer; tap (dy, dx) uses start = dy*w + dx.  The buffer carries only an
    H halo, so W-direction out-of-range taps (which would wrap to the neighbouring row)
    are removed by masking the per-dx partial sums on the output rows.
    """
    hw = h * w
    xpos = jax.lax.broadcasted_iota(jnp.int32, (hw, 1), 0) % w

    def dx_partial(dx):
        acc = jnp.dot(read_slab(dx), w9[dx], preferred_element_type=jnp.float32)
        acc += jnp.dot(read_slab(w + dx), w9[3 + dx], preferred_element_type=jnp.float32)
        acc += jnp.dot(read_slab(2 * w + dx), w9[6 + dx], preferred_element_type=jnp.float32)
        return acc

    y = dx_partial(1)                                              # dx = 1: always valid
    y += (xpos > 0).astype(jnp.float32) * dx_partial(0)            # dx = 0: invalid at x == 0
    y += (xpos < w - 1).astype(jnp.float32) * dx_partial(2)        # dx = 2: invalid at x == w-1
    return jnp.maximum(y * scale + shift, 0.0)


def _maxpool2(y, h, w):
    """MaxPool2d(2) on one image's (h*w, C) row-major activation -> (h/2*w/2, C)."""
    c = y.shape[-1]
    # Pool along W: adjacent flat rows are x-pairs (w is even, pairs never straddle y).
    t = jnp.max(y.reshape(h * (w // 2), 2, c), axis=1)             # (h*w/2, C), rows (y, X)
    # Pool along H: contiguous half-block max (no strided access, no middle-2 reshape).
    t = t.reshape(h // 2, w, c)                                    # middle = (y parity, X)
    t = jnp.maximum(t[:, : w // 2, :], t[:, w // 2:, :])           # (h/2, w/2, C)
    return t.reshape((h // 2) * (w // 2), c)


# ----------------------------------------------------------------------------------
# Fused expert kernel: one grid step == one expert x one image
# ----------------------------------------------------------------------------------
def _expert_kernel(x_ref, w1_ref, s1_ref, b1_ref,
                   w2_ref, s2_ref, b2_ref,
                   w3_ref, s3_ref, b3_ref,
                   wh_ref, bh_ref,
                   out_ref,
                   pb2_ref, pb3_ref,
                   *, H, W):
    H2, W2 = H // 2, W // 2
    H4, W4 = H // 4, W // 4
    C1 = w1_ref.shape[-1]
    C2 = w2_ref.shape[-1]

    # ---- conv1: taps read straight from the pre-padded input block (no im2col) ----
    w1 = w1_ref[0].astype(jnp.float32)
    y1 = _conv3x3_bn_relu(lambda s: x_ref[0, s:s + H * W, :],
                          w1, s1_ref[0], b1_ref[0], H, W)          # (H*W, C1)
    p1 = _maxpool2(y1, H, W)                                       # (H2*W2, C1)

    # Stage into the H-halo padded scratch; zero only the halo strips (interior is
    # fully overwritten, and this stays correct under v7x per-core scratch).
    halo1 = jnp.zeros((W2 + 1, C1), jnp.float32)
    pb2_ref[0:W2 + 1, :] = halo1
    pb2_ref[W2 + 1:W2 + 1 + H2 * W2, :] = p1
    pb2_ref[W2 + 1 + H2 * W2:, :] = halo1

    # ---- conv2 ----
    w2 = w2_ref[0].astype(jnp.float32)
    y2 = _conv3x3_bn_relu(lambda s: pb2_ref[s:s + H2 * W2, :],
                          w2, s2_ref[0], b2_ref[0], H2, W2)        # (H2*W2, C2)
    p2 = _maxpool2(y2, H2, W2)                                     # (H4*W4, C2)

    halo2 = jnp.zeros((W4 + 1, C2), jnp.float32)
    pb3_ref[0:W4 + 1, :] = halo2
    pb3_ref[W4 + 1:W4 + 1 + H4 * W4, :] = p2
    pb3_ref[W4 + 1 + H4 * W4:, :] = halo2

    # ---- conv3 ----
    w3 = w3_ref[0].astype(jnp.float32)
    y3 = _conv3x3_bn_relu(lambda s: pb3_ref[s:s + H4 * W4, :],
                          w3, s3_ref[0], b3_ref[0], H4, W4)        # (H4*W4, 128)

    # ---- AdaptiveAvgPool2d((1,1)) fused into the content|style head matmul ----
    z = jnp.dot(y3, wh_ref[0].astype(jnp.float32),
                preferred_element_type=jnp.float32)                # (H4*W4, F2p)
    res = jnp.sum(z, axis=0, keepdims=True) * (1.0 / (H4 * W4)) + bh_ref[0]   # (1, F2p)
    out_ref[0, 0] = jnp.broadcast_to(res, (8, res.shape[-1]))      # lane-dense (8,128) tile


# ----------------------------------------------------------------------------------
# Wrapper
# ----------------------------------------------------------------------------------
def experts_forward(x_nhwc, sp, *, feature_dim):
    """x_nhwc: (N, H, W, Cin); sp: stacked expert params (leading dim = num_experts).

    Returns (fc_list, fs_list), each a list of (N, feature_dim) arrays (one per expert).
    """
    N, H, W, Cin = x_nhwc.shape
    assert H % 4 == 0 and W % 4 == 0, "two MaxPool2d(2) stages require H, W divisible by 4"
    E = sp["w1"].shape[0]
    C1, C2, C3 = sp["w1"].shape[-1], sp["w2"].shape[-1], sp["w3"].shape[-1]
    F2p = sp["wh"].shape[-1]
    F = feature_dim

    H2, W2, H4, W4 = H // 2, W // 2, H // 4, W // 4
    R1 = H * W + 2 * W + 2
    R2 = H2 * W2 + 2 * W2 + 2
    R3 = H4 * W4 + 2 * W4 + 2

    # H-halo padded, row-major (pixel-row, channel) input — replaces the old 9x im2col
    # expansion in HBM with a tiny 2*(W+1)-row halo.
    x_rows = x_nhwc.reshape(N, H * W, Cin)
    zpad = jnp.zeros((N, W + 1, Cin), x_nhwc.dtype)
    x_padded = jnp.concatenate([zpad, x_rows, zpad], axis=1)       # (N, R1, Cin)

    kernel = functools.partial(_expert_kernel, H=H, W=W)

    def expert_spec(*block):
        return pl.BlockSpec(block, lambda e, n: (e,) + (0,) * (len(block) - 1))

    out = pl.pallas_call(
        kernel,
        out_shape=jax.ShapeDtypeStruct((E, N, 8, F2p), jnp.float32),
        grid=(E, N),
        in_specs=[
            pl.BlockSpec((1, R1, Cin), lambda e, n: (n, 0, 0)),     # one padded image
            expert_spec(1, 9, Cin, C1), expert_spec(1, 1, C1), expert_spec(1, 1, C1),
            expert_spec(1, 9, C1, C2), expert_spec(1, 1, C2), expert_spec(1, 1, C2),
            expert_spec(1, 9, C2, C3), expert_spec(1, 1, C3), expert_spec(1, 1, C3),
            expert_spec(1, C3, F2p), expert_spec(1, 1, F2p),
        ],
        out_specs=pl.BlockSpec((1, 1, 8, F2p), lambda e, n: (e, n, 0, 0)),
        scratch_shapes=[
            pltpu.VMEM((R2, C1), jnp.float32),                      # padded conv2 input
            pltpu.VMEM((R3, C2), jnp.float32),                      # padded conv3 input
        ],
        compiler_params=pltpu.CompilerParams(
            dimension_semantics=("parallel", "parallel"),
            vmem_limit_bytes=32 * 1024 * 1024),
    )(x_padded, sp["w1"], sp["s1"], sp["b1"],
      sp["w2"], sp["s2"], sp["b2"],
      sp["w3"], sp["s3"], sp["b3"],
      sp["wh"], sp["bh"])

    head = out[:, :, 0, :]                                          # (E, N, F2p)
    fc_list = [head[e, :, :F] for e in range(E)]
    fs_list = [head[e, :, F:2 * F] for e in range(E)]
    return fc_list, fs_list


def stack_expert_params(expert_params, feature_dim):
    """Stack per-expert params into the fused-kernel layout (leading dim = num experts).

    Conv/head weights are stored in bfloat16 (MXU default precision truncates to bf16
    anyway); BN scale/shift and biases stay f32.
    """
    F2 = 2 * feature_dim
    F2p = ((F2 + 127) // 128) * 128

    def stack(fn, dtype=jnp.float32):
        return jnp.stack([fn(p).astype(dtype) for p in expert_params], axis=0)

    def conv(name):
        cout = expert_params[0][name]["w"].shape[-1]
        return (
            stack(lambda p: p[name]["w"].reshape((9,) + p[name]["w"].shape[2:]),
                  jnp.bfloat16),                                    # (E, 9, Cin, Cout)
            stack(lambda p: p[name]["scale"].reshape(1, cout)),     # (E, 1, Cout)
            stack(lambda p: p[name]["shift"].reshape(1, cout)),     # (E, 1, Cout)
        )

    def head_w(p):
        wh = jnp.concatenate([p["wc"], p["ws"]], axis=-1)           # (128, F2)
        return jnp.pad(wh, ((0, 0), (0, F2p - F2)))

    def head_b(p):
        bh = jnp.concatenate([p["bc"], p["bs"]])                    # (F2,)
        return jnp.pad(bh, (0, F2p - F2)).reshape(1, F2p)

    w1, s1, b1 = conv("conv1")
    w2, s2, b2 = conv("conv2")
    w3, s3, b3 = conv("conv3")
    return dict(
        w1=w1, s1=s1, b1=b1, w2=w2, s2=s2, b2=b2, w3=w3, s3=s3, b3=b3,
        wh=stack(head_w, jnp.bfloat16),                             # (E, 128, F2p)
        bh=stack(head_b),                                           # (E, 1, F2p)
    )


# ----------------------------------------------------------------------------------
# Pure-JAX reference (for correctness check)
# ----------------------------------------------------------------------------------
def _conv_ref(h, w, scale, shift):
    y = jax.lax.conv_general_dilated(
        h, w, window_strides=(1, 1), padding="SAME",
        dimension_numbers=("NHWC", "HWIO", "NHWC"),
        precision=jax.lax.Precision.HIGHEST)
    return jnp.maximum(y * scale + shift, 0.0)


def _maxpool2_ref(x):
    N, H, W, C = x.shape
    return x.reshape(N, H // 2, 2, W // 2, 2, C).max(axis=(2, 4))


def expert_reference(x_nhwc, p):
    h = _conv_ref(x_nhwc, p["conv1"]["w"], p["conv1"]["scale"], p["conv1"]["shift"])
    h = _maxpool2_ref(h)
    h = _conv_ref(h, p["conv2"]["w"], p["conv2"]["scale"], p["conv2"]["shift"])
    h = _maxpool2_ref(h)
    h = _conv_ref(h, p["conv3"]["w"], p["conv3"]["scale"], p["conv3"]["shift"])
    feat = jnp.mean(h, axis=(1, 2))
    fc = feat @ p["wc"] + p["bc"]
    fs = feat @ p["ws"] + p["bs"]
    return fc, fs


# ----------------------------------------------------------------------------------
# Deterministic parameter init (matches shapes of Expert.__init__)
# ----------------------------------------------------------------------------------
def init_expert_params(key, c, feature_dim):
    ks = jax.random.split(key, 7)
    eps = 1e-5

    def conv_block(k, cin, cout):
        k1, k2, k3, k4, k5, k6 = jax.random.split(k, 6)
        w = 0.1 * jax.random.normal(k1, (3, 3, cin, cout), jnp.float32)   # HWIO
        b = 0.1 * jax.random.normal(k2, (cout,), jnp.float32)
        gamma = 1.0 + 0.1 * jax.random.normal(k3, (cout,), jnp.float32)
        beta = 0.1 * jax.random.normal(k4, (cout,), jnp.float32)
        mean = 0.1 * jax.random.normal(k5, (cout,), jnp.float32)
        var = 0.5 + jax.random.uniform(k6, (cout,), jnp.float32)
        scale = gamma / jnp.sqrt(var + eps)
        shift = beta + scale * (b - mean)
        return dict(w=w, scale=scale, shift=shift)

    return dict(
        conv1=conv_block(ks[0], c, 32),
        conv2=conv_block(ks[1], 32, 64),
        conv3=conv_block(ks[2], 64, 128),
        wc=0.1 * jax.random.normal(ks[3], (128, feature_dim), jnp.float32),
        bc=0.1 * jax.random.normal(ks[4], (feature_dim,), jnp.float32),
        ws=0.1 * jax.random.normal(ks[5], (128, feature_dim), jnp.float32),
        bs=0.1 * jax.random.normal(ks[6], (feature_dim,), jnp.float32),
    )


# ----------------------------------------------------------------------------------
if __name__ == "__main__":
    num_experts = 2
    feature_dim = 32
    N, C, H, W = 2, 4, 16, 16            # input_shape = (C, H, W), batch = 2

    root = jax.random.PRNGKey(0)
    kx, kp = jax.random.split(root)
    x_nchw = jax.random.normal(kx, (N, C, H, W), jnp.float32)   # PyTorch NCHW input
    x_nhwc = jnp.transpose(x_nchw, (0, 2, 3, 1))                # kernel layout

    expert_keys = jax.random.split(kp, num_experts)
    expert_params = [init_expert_params(k, C, feature_dim) for k in expert_keys]
    stacked = stack_expert_params(expert_params, feature_dim)

    fwd = jax.jit(functools.partial(experts_forward, feature_dim=feature_dim))
    fc_list, fs_list = jax.block_until_ready(fwd(x_nhwc, stacked))

    # Correctness check against a pure-JAX (Precision.HIGHEST) reference.
    for p, fc, fs in zip(expert_params, fc_list, fs_list):
        fc_ref, fs_ref = expert_reference(x_nhwc, p)
        np.testing.assert_allclose(np.asarray(fc), np.asarray(fc_ref), rtol=2e-2, atol=2e-2)
        np.testing.assert_allclose(np.asarray(fs), np.asarray(fs_ref), rtol=2e-2, atol=2e-2)

    print("KERNEL_OK")
</pallas_src>

<mosaic_0001>
module attributes {stable_mosaic.version = 11 : i64} {
  func.func @_expert_kernel(%arg0: i32, %arg1: i32, %arg2: memref<1x290x4xf32, #tpu.memory_space<vmem>>, %arg3: memref<1x9x4x32xbf16, #tpu.memory_space<vmem>>, %arg4: memref<1x1x32xf32, #tpu.memory_space<vmem>>, %arg5: memref<1x1x32xf32, #tpu.memory_space<vmem>>, %arg6: memref<1x9x32x64xbf16, #tpu.memory_space<vmem>>, %arg7: memref<1x1x64xf32, #tpu.memory_space<vmem>>, %arg8: memref<1x1x64xf32, #tpu.memory_space<vmem>>, %arg9: memref<1x9x64x128xbf16, #tpu.memory_space<vmem>>, %arg10: memref<1x1x128xf32, #tpu.memory_space<vmem>>, %arg11: memref<1x1x128xf32, #tpu.memory_space<vmem>>, %arg12: memref<1x128x128xbf16, #tpu.memory_space<vmem>>, %arg13: memref<1x1x128xf32, #tpu.memory_space<vmem>>, %arg14: memref<1x1x8x128xf32, #tpu.memory_space<vmem>>, %arg15: memref<82x32xf32, #tpu.memory_space<vmem>>, %arg16: memref<26x64xf32, #tpu.memory_space<vmem>>) attributes {dimension_semantics = [#tpu.dimension_semantics<parallel>, #tpu.dimension_semantics<parallel>], iteration_bounds = array<i64: 2, 2>, scalar_prefetch = 0 : i64, scratch_operands = 2 : i64, tpu.core_type = #tpu.core_type<tc>, window_params = [{transform_indices = @transform_0, window_bounds = array<i64: 1, 290, 4>}, {transform_indices = @transform_1, window_bounds = array<i64: 1, 9, 4, 32>}, {transform_indices = @transform_2, window_bounds = array<i64: 1, 1, 32>}, {transform_indices = @transform_3, window_bounds = array<i64: 1, 1, 32>}, {transform_indices = @transform_4, window_bounds = array<i64: 1, 9, 32, 64>}, {transform_indices = @transform_5, window_bounds = array<i64: 1, 1, 64>}, {transform_indices = @transform_6, window_bounds = array<i64: 1, 1, 64>}, {transform_indices = @transform_7, window_bounds = array<i64: 1, 9, 64, 128>}, {transform_indices = @transform_8, window_bounds = array<i64: 1, 1, 128>}, {transform_indices = @transform_9, window_bounds = array<i64: 1, 1, 128>}, {transform_indices = @transform_10, window_bounds = array<i64: 1, 128, 128>}, {transform_indices = @transform_11, window_bounds = array<i64: 1, 1, 128>}, {transform_indices = @transform_12, window_bounds = array<i64: 1, 1, 8, 128>}]} {
    %c0 = arith.constant 0 : index
    %c0_0 = arith.constant 0 : index
    %c0_1 = arith.constant 0 : index
    %c0_2 = arith.constant 0 : index
    %0 = vector.load %arg3[%c0, %c0_0, %c0_1, %c0_2] : memref<1x9x4x32xbf16, #tpu.memory_space<vmem>>, vector<1x9x4x32xbf16>
    %1 = vector.shape_cast %0 : vector<1x9x4x32xbf16> to vector<9x4x32xbf16>
    %2 = arith.extf %1 : vector<9x4x32xbf16> to vector<9x4x32xf32>
    %c0_3 = arith.constant 0 : index
    %c0_4 = arith.constant 0 : index
    %c0_5 = arith.constant 0 : index
    %3 = vector.load %arg4[%c0_3, %c0_4, %c0_5] : memref<1x1x32xf32, #tpu.memory_space<vmem>>, vector<1x1x32xf32>
    %4 = vector.shape_cast %3 : vector<1x1x32xf32> to vector<1x32xf32>
    %c0_6 = arith.constant 0 : index
    %c0_7 = arith.constant 0 : index
    %c0_8 = arith.constant 0 : index
    %5 = vector.load %arg5[%c0_6, %c0_7, %c0_8] : memref<1x1x32xf32, #tpu.memory_space<vmem>>, vector<1x1x32xf32>
    %6 = vector.shape_cast %5 : vector<1x1x32xf32> to vector<1x32xf32>
    %7 = tpu.iota {dimensions = array<i32: 0>} : vector<256x1xi32>
    %c16_i32 = arith.constant 16 : i32
    %c0_i32 = arith.constant 0 : i32
    %8 = arith.cmpi eq, %c16_i32, %c0_i32 : i32
    %c1_i32 = arith.constant 1 : i32
    %9 = arith.select %8, %c1_i32, %c16_i32 : i32
    %10 = vector.broadcast %9 : i32 to vector<256x1xi32>
    %11 = arith.remsi %7, %10 : vector<256x1xi32>
    %c0_i32_9 = arith.constant 0 : i32
    %12 = vector.broadcast %c0_i32_9 : i32 to vector<256x1xi32>
    %13 = arith.cmpi ne, %11, %12 : vector<256x1xi32>
    %c0_i32_10 = arith.constant 0 : i32
    %14 = vector.broadcast %c0_i32_10 : i32 to vector<256x1xi32>
    %15 = arith.cmpi slt, %11, %14 : vector<256x1xi32>
    %c0_i32_11 = arith.constant 0 : i32
    %16 = arith.cmpi slt, %9, %c0_i32_11 : i32
    %17 = vector.broadcast %16 : i1 to vector<256x1xi1>
    %18 = vector.broadcast %17 : vector<256x1xi1> to vector<256x1xi1>
    %19 = arith.xori %15, %18 : vector<256x1xi1>
    %20 = arith.andi %19, %13 : vector<256x1xi1>
    %21 = vector.broadcast %9 : i32 to vector<256x1xi32>
    %22 = arith.addi %11, %21 : vector<256x1xi32>
    %23 = arith.select %20, %22, %11 : vector<256x1xi1>, vector<256x1xi32>
    %c0_12 = arith.constant 0 : index
    %c1 = arith.constant 1 : index
    %c0_13 = arith.constant 0 : index
    %24 = vector.load %arg2[%c0_12, %c1, %c0_13] : memref<1x290x4xf32, #tpu.memory_space<vmem>>, vector<1x256x4xf32>
    %25 = vector.shape_cast %24 : vector<1x256x4xf32> to vector<256x4xf32>
    %26 = vector.extract_strided_slice %2 {offsets = [1, 0, 0], sizes = [1, 4, 32], strides = [1, 1, 1]} : vector<9x4x32xf32> to vector<1x4x32xf32>
    %27 = vector.shape_cast %26 : vector<1x4x32xf32> to vector<4x32xf32>
    %cst = arith.constant dense<0.000000e+00> : vector<256x32xf32>
    %28 = tpu.matmul %25, %27, %cst {dimension_numbers = #tpu.dot_dimension_numbers<[1], [0], [0], [1], [0, 0, 1, 1], [], []>} : vector<256x4xf32>, vector<4x32xf32>, vector<256x32xf32> -> vector<256x32xf32>
    %c0_14 = arith.constant 0 : index
    %c17 = arith.constant 17 : index
    %c0_15 = arith.constant 0 : index
    %29 = vector.load %arg2[%c0_14, %c17, %c0_15] : memref<1x290x4xf32, #tpu.memory_space<vmem>>, vector<1x256x4xf32>
    %30 = vector.shape_cast %29 : vector<1x256x4xf32> to vector<256x4xf32>
    %31 = vector.extract_strided_slice %2 {offsets = [4, 0, 0], sizes = [1, 4, 32], strides = [1, 1, 1]} : vector<9x4x32xf32> to vector<1x4x32xf32>
    %32 = vector.shape_cast %31 : vector<1x4x32xf32> to vector<4x32xf32>
    %cst_16 = arith.constant dense<0.000000e+00> : vector<256x32xf32>
    %33 = tpu.matmul %30, %32, %cst_16 {dimension_numbers = #tpu.dot_dimension_numbers<[1], [0], [0], [1], [0, 0, 1, 1], [], []>} : vector<256x4xf32>, vector<4x32xf32>, vector<256x32xf32> -> vector<256x32xf32>
    %34 = arith.addf %28, %33 : vector<256x32xf32>
    %c0_17 = arith.constant 0 : index
    %c33 = arith.constant 33 : index
    %c0_18 = arith.constant 0 : index
    %35 = vector.load %arg2[%c0_17, %c33, %c0_18] : memref<1x290x4xf32, #tpu.memory_space<vmem>>, vector<1x256x4xf32>
    %36 = vector.shape_cast %35 : vector<1x256x4xf32> to vector<256x4xf32>
    %37 = vector.extract_strided_slice %2 {offsets = [7, 0, 0], sizes = [1, 4, 32], strides = [1, 1, 1]} : vector<9x4x32xf32> to vector<1x4x32xf32>
    %38 = vector.shape_cast %37 : vector<1x4x32xf32> to vector<4x32xf32>
    %cst_19 = arith.constant dense<0.000000e+00> : vector<256x32xf32>
    %39 = tpu.matmul %36, %38, %cst_19 {dimension_numbers = #tpu.dot_dimension_numbers<[1], [0], [0], [1], [0, 0, 1, 1], [], []>} : vector<256x4xf32>, vector<4x32xf32>, vector<256x32xf32> -> vector<256x32xf32>
    %40 = arith.addf %34, %39 : vector<256x32xf32>
    %c0_i32_20 = arith.constant 0 : i32
    %41 = vector.broadcast %c0_i32_20 : i32 to vector<256x1xi32>
    %42 = arith.cmpi sgt, %23, %41 : vector<256x1xi32>
    %43 = arith.extui %42 : vector<256x1xi1> to vector<256x1xi32>
    %44 = arith.sitofp %43 : vector<256x1xi32> to vector<256x1xf32>
    %c0_21 = arith.constant 0 : index
    %c0_22 = arith.constant 0 : index
    %c0_23 = arith.constant 0 : index
    %45 = vector.load %arg2[%c0_21, %c0_22, %c0_23] : memref<1x290x4xf32, #tpu.memory_space<vmem>>, vector<1x256x4xf32>
    %46 = vector.shape_cast %45 : vector<1x256x4xf32> to vector<256x4xf32>
    %47 = vector.extract_strided_slice %2 {offsets = [0, 0, 0], sizes = [1, 4, 32], strides = [1, 1, 1]} : vector<9x4x32xf32> to vector<1x4x32xf32>
    %48 = vector.shape_cast %47 : vector<1x4x32xf32> to vector<4x32xf32>
    %cst_24 = arith.constant dense<0.000000e+00> : vector<256x32xf32>
    %49 = tpu.matmul %46, %48, %cst_24 {dimension_numbers = #tpu.dot_dimension_numbers<[1], [0], [0], [1], [0, 0, 1, 1], [], []>} : vector<256x4xf32>, vector<4x32xf32>, vector<256x32xf32> -> vector<256x32xf32>
    %c0_25 = arith.constant 0 : index
    %c16 = arith.constant 16 : index
    %c0_26 = arith.constant 0 : index
    %50 = vector.load %arg2[%c0_25, %c16, %c0_26] : memref<1x290x4xf32, #tpu.memory_space<vmem>>, vector<1x256x4xf32>
    %51 = vector.shape_cast %50 : vector<1x256x4xf32> to vector<256x4xf32>
    %52 = vector.extract_strided_slice %2 {offsets = [3, 0, 0], sizes = [1, 4, 32], strides = [1, 1, 1]} : vector<9x4x32xf32> to vector<1x4x32xf32>
    %53 = vector.shape_cast %52 : vector<1x4x32xf32> to vector<4x32xf32>
    %cst_27 = arith.constant dense<0.000000e+00> : vector<256x32xf32>
    %54 = tpu.matmul %51, %53, %cst_27 {dimension_numbers = #tpu.dot_dimension_numbers<[1], [0], [0], [1], [0, 0, 1, 1], [], []>} : vector<256x4xf32>, vector<4x32xf32>, vector<256x32xf32> -> vector<256x32xf32>
    %55 = arith.addf %49, %54 : vector<256x32xf32>
    %c0_28 = arith.constant 0 : index
    %c32 = arith.constant 32 : index
    %c0_29 = arith.constant 0 : index
    %56 = vector.load %arg2[%c0_28, %c32, %c0_29] : memref<1x290x4xf32, #tpu.memory_space<vmem>>, vector<1x256x4xf32>
    %57 = vector.shape_cast %56 : vector<1x256x4xf32> to vector<256x4xf32>
    %58 = vector.extract_strided_slice %2 {offsets = [6, 0, 0], sizes = [1, 4, 32], strides = [1, 1, 1]} : vector<9x4x32xf32> to vector<1x4x32xf32>
    %59 = vector.shape_cast %58 : vector<1x4x32xf32> to vector<4x32xf32>
    %cst_30 = arith.constant dense<0.000000e+00> : vector<256x32xf32>
    %60 = tpu.matmul %57, %59, %cst_30 {dimension_numbers = #tpu.dot_dimension_numbers<[1], [0], [0], [1], [0, 0, 1, 1], [], []>} : vector<256x4xf32>, vector<4x32xf32>, vector<256x32xf32> -> vector<256x32xf32>
    %61 = arith.addf %55, %60 : vector<256x32xf32>
    %62 = vector.broadcast %44 : vector<256x1xf32> to vector<256x32xf32>
    %63 = arith.mulf %62, %61 : vector<256x32xf32>
    %64 = arith.addf %40, %63 : vector<256x32xf32>
    %c15_i32 = arith.constant 15 : i32
    %65 = vector.broadcast %c15_i32 : i32 to vector<256x1xi32>
    %66 = arith.cmpi slt, %23, %65 : vector<256x1xi32>
    %67 = arith.extui %66 : vector<256x1xi1> to vector<256x1xi32>
    %68 = arith.sitofp %67 : vector<256x1xi32> to vector<256x1xf32>
    %c0_31 = arith.constant 0 : index
    %c2 = arith.constant 2 : index
    %c0_32 = arith.constant 0 : index
    %69 = vector.load %arg2[%c0_31, %c2, %c0_32] : memref<1x290x4xf32, #tpu.memory_space<vmem>>, vector<1x256x4xf32>
    %70 = vector.shape_cast %69 : vector<1x256x4xf32> to vector<256x4xf32>
    %71 = vector.extract_strided_slice %2 {offsets = [2, 0, 0], sizes = [1, 4, 32], strides = [1, 1, 1]} : vector<9x4x32xf32> to vector<1x4x32xf32>
    %72 = vector.shape_cast %71 : vector<1x4x32xf32> to vector<4x32xf32>
    %cst_33 = arith.constant dense<0.000000e+00> : vector<256x32xf32>
    %73 = tpu.matmul %70, %72, %cst_33 {dimension_numbers = #tpu.dot_dimension_numbers<[1], [0], [0], [1], [0, 0, 1, 1], [], []>} : vector<256x4xf32>, vector<4x32xf32>, vector<256x32xf32> -> vector<256x32xf32>
    %c0_34 = arith.constant 0 : index
    %c18 = arith.constant 18 : index
    %c0_35 = arith.constant 0 : index
    %74 = vector.load %arg2[%c0_34, %c18, %c0_35] : memref<1x290x4xf32, #tpu.memory_space<vmem>>, vector<1x256x4xf32>
    %75 = vector.shape_cast %74 : vector<1x256x4xf32> to vector<256x4xf32>
    %76 = vector.extract_strided_slice %2 {offsets = [5, 0, 0], sizes = [1, 4, 32], strides = [1, 1, 1]} : vector<9x4x32xf32> to vector<1x4x32xf32>
    %77 = vector.shape_cast %76 : vector<1x4x32xf32> to vector<4x32xf32>
    %cst_36 = arith.constant dense<0.000000e+00> : vector<256x32xf32>
    %78 = tpu.matmul %75, %77, %cst_36 {dimension_numbers = #tpu.dot_dimension_numbers<[1], [0], [0], [1], [0, 0, 1, 1], [], []>} : vector<256x4xf32>, vector<4x32xf32>, vector<256x32xf32> -> vector<256x32xf32>
    %79 = arith.addf %73, %78 : vector<256x32xf32>
    %c0_37 = arith.constant 0 : index
    %c34 = arith.constant 34 : index
    %c0_38 = arith.constant 0 : index
    %80 = vector.load %arg2[%c0_37, %c34, %c0_38] : memref<1x290x4xf32, #tpu.memory_space<vmem>>, vector<1x256x4xf32>
    %81 = vector.shape_cast %80 : vector<1x256x4xf32> to vector<256x4xf32>
    %82 = vector.extract_strided_slice %2 {offsets = [8, 0, 0], sizes = [1, 4, 32], strides = [1, 1, 1]} : vector<9x4x32xf32> to vector<1x4x32xf32>
    %83 = vector.shape_cast %82 : vector<1x4x32xf32> to vector<4x32xf32>
    %cst_39 = arith.constant dense<0.000000e+00> : vector<256x32xf32>
    %84 = tpu.matmul %81, %83, %cst_39 {dimension_numbers = #tpu.dot_dimension_numbers<[1], [0], [0], [1], [0, 0, 1, 1], [], []>} : vector<256x4xf32>, vector<4x32xf32>, vector<256x32xf32> -> vector<256x32xf32>
    %85 = arith.addf %79, %84 : vector<256x32xf32>
    %86 = vector.broadcast %68 : vector<256x1xf32> to vector<256x32xf32>
    %87 = arith.mulf %86, %85 : vector<256x32xf32>
    %88 = arith.addf %64, %87 : vector<256x32xf32>
    %89 = vector.broadcast %4 : vector<1x32xf32> to vector<256x32xf32>
    %90 = arith.mulf %88, %89 : vector<256x32xf32>
    %91 = vector.broadcast %6 : vector<1x32xf32> to vector<256x32xf32>
    %92 = arith.addf %90, %91 : vector<256x32xf32>
    %cst_40 = arith.constant 0.000000e+00 : f32
    %93 = vector.broadcast %cst_40 : f32 to vector<256x32xf32>
    %94 = arith.maximumf %92, %93 : vector<256x32xf32>
    %95 = vector.shape_cast %94 : vector<256x32xf32> to vector<128x2x32xf32>
    %cst_41 = arith.constant dense<0xFF800000> : vector<128x32xf32>
    %96 = vector.multi_reduction <maximumf>, %95, %cst_41 [1] : vector<128x2x32xf32> to vector<128x32xf32>
    %97 = vector.shape_cast %96 : vector<128x32xf32> to vector<8x16x32xf32>
    %98 = vector.extract_strided_slice %97 {offsets = [0, 0, 0], sizes = [8, 8, 32], strides = [1, 1, 1]} : vector<8x16x32xf32> to vector<8x8x32xf32>
    %99 = vector.extract_strided_slice %97 {offsets = [0, 8, 0], sizes = [8, 8, 32], strides = [1, 1, 1]} : vector<8x16x32xf32> to vector<8x8x32xf32>
    %100 = arith.maximumf %98, %99 : vector<8x8x32xf32>
    %101 = vector.shape_cast %100 : vector<8x8x32xf32> to vector<64x32xf32>
    %cst_42 = arith.constant 0.000000e+00 : f32
    %102 = vector.broadcast %cst_42 : f32 to vector<9x32xf32>
    %c0_43 = arith.constant 0 : index
    %c0_44 = arith.constant 0 : index
    %103 = vector.load %arg15[%c0_43, %c0_44] : memref<82x32xf32, #tpu.memory_space<vmem>>, vector<9x32xf32>
    tpu.vector_store %arg15[%c0_43, %c0_44], %102 {strides = array<i32>} : memref<82x32xf32, #tpu.memory_space<vmem>>, vector<9x32xf32>,
    %c9 = arith.constant 9 : index
    %c0_45 = arith.constant 0 : index
    %104 = vector.load %arg15[%c9, %c0_45] : memref<82x32xf32, #tpu.memory_space<vmem>>, vector<64x32xf32>
    tpu.vector_store %arg15[%c9, %c0_45], %101 {strides = array<i32>} : memref<82x32xf32, #tpu.memory_space<vmem>>, vector<64x32xf32>,
    %c73 = arith.constant 73 : index
    %c0_46 = arith.constant 0 : index
    %105 = vector.load %arg15[%c73, %c0_46] : memref<82x32xf32, #tpu.memory_space<vmem>>, vector<9x32xf32>
    tpu.vector_store %arg15[%c73, %c0_46], %102 {strides = array<i32>} : memref<82x32xf32, #tpu.memory_space<vmem>>, vector<9x32xf32>,
    %c0_47 = arith.constant 0 : index
    %c0_48 = arith.constant 0 : index
    %c0_49 = arith.constant 0 : index
    %c0_50 = arith.constant 0 : index
    %106 = vector.load %arg6[%c0_47, %c0_48, %c0_49, %c0_50] : memref<1x9x32x64xbf16, #tpu.memory_space<vmem>>, vector<1x9x32x64xbf16>
    %107 = vector.shape_cast %106 : vector<1x9x32x64xbf16> to vector<9x32x64xbf16>
    %108 = arith.extf %107 : vector<9x32x64xbf16> to vector<9x32x64xf32>
    %c0_51 = arith.constant 0 : index
    %c0_52 = arith.constant 0 : index
    %c0_53 = arith.constant 0 : index
    %109 = vector.load %arg7[%c0_51, %c0_52, %c0_53] : memref<1x1x64xf32, #tpu.memory_space<vmem>>, vector<1x1x64xf32>
    %110 = vector.shape_cast %109 : vector<1x1x64xf32> to vector<1x64xf32>
    %c0_54 = arith.constant 0 : index
    %c0_55 = arith.constant 0 : index
    %c0_56 = arith.constant 0 : index
    %111 = vector.load %arg8[%c0_54, %c0_55, %c0_56] : memref<1x1x64xf32, #tpu.memory_space<vmem>>, vector<1x1x64xf32>
    %112 = vector.shape_cast %111 : vector<1x1x64xf32> to vector<1x64xf32>
    %113 = tpu.iota {dimensions = array<i32: 0>} : vector<64x1xi32>
    %c8_i32 = arith.constant 8 : i32
    %c0_i32_57 = arith.constant 0 : i32
    %114 = arith.cmpi eq, %c8_i32, %c0_i32_57 : i32
    %c1_i32_58 = arith.constant 1 : i32
    %115 = arith.select %114, %c1_i32_58, %c8_i32 : i32
    %116 = vector.broadcast %115 : i32 to vector<64x1xi32>
    %117 = arith.remsi %113, %116 : vector<64x1xi32>
    %c0_i32_59 = arith.constant 0 : i32
    %118 = vector.broadcast %c0_i32_59 : i32 to vector<64x1xi32>
    %119 = arith.cmpi ne, %117, %118 : vector<64x1xi32>
    %c0_i32_60 = arith.constant 0 : i32
    %120 = vector.broadcast %c0_i32_60 : i32 to vector<64x1xi32>
    %121 = arith.cmpi slt, %117, %120 : vector<64x1xi32>
    %c0_i32_61 = arith.constant 0 : i32
    %122 = arith.cmpi slt, %115, %c0_i32_61 : i32
    %123 = vector.broadcast %122 : i1 to vector<64x1xi1>
    %124 = vector.broadcast %123 : vector<64x1xi1> to vector<64x1xi1>
    %125 = arith.xori %121, %124 : vector<64x1xi1>
    %126 = arith.andi %125, %119 : vector<64x1xi1>
    %127 = vector.broadcast %115 : i32 to vector<64x1xi32>
    %128 = arith.addi %117, %127 : vector<64x1xi32>
    %129 = arith.select %126, %128, %117 : vector<64x1xi1>, vector<64x1xi32>
    %c1_62 = arith.constant 1 : index
    %c0_63 = arith.constant 0 : index
    %130 = vector.load %arg15[%c1_62, %c0_63] : memref<82x32xf32, #tpu.memory_space<vmem>>, vector<64x32xf32>
    %131 = vector.extract_strided_slice %108 {offsets = [1, 0, 0], sizes = [1, 32, 64], strides = [1, 1, 1]} : vector<9x32x64xf32> to vector<1x32x64xf32>
    %132 = vector.shape_cast %131 : vector<1x32x64xf32> to vector<32x64xf32>
    %cst_64 = arith.constant dense<0.000000e+00> : vector<64x64xf32>
    %133 = tpu.matmul %130, %132, %cst_64 {dimension_numbers = #tpu.dot_dimension_numbers<[1], [0], [0], [1], [0, 0, 1, 1], [], []>} : vector<64x32xf32>, vector<32x64xf32>, vector<64x64xf32> -> vector<64x64xf32>
    %c9_65 = arith.constant 9 : index
    %c0_66 = arith.constant 0 : index
    %134 = vector.load %arg15[%c9_65, %c0_66] : memref<82x32xf32, #tpu.memory_space<vmem>>, vector<64x32xf32>
    %135 = vector.extract_strided_slice %108 {offsets = [4, 0, 0], sizes = [1, 32, 64], strides = [1, 1, 1]} : vector<9x32x64xf32> to vector<1x32x64xf32>
    %136 = vector.shape_cast %135 : vector<1x32x64xf32> to vector<32x64xf32>
    %cst_67 = arith.constant dense<0.000000e+00> : vector<64x64xf32>
    %137 = tpu.matmul %134, %136, %cst_67 {dimension_numbers = #tpu.dot_dimension_numbers<[1], [0], [0], [1], [0, 0, 1, 1], [], []>} : vector<64x32xf32>, vector<32x64xf32>, vector<64x64xf32> -> vector<64x64xf32>
    %138 = arith.addf %133, %137 : vector<64x64xf32>
    %c17_68 = arith.constant 17 : index
    %c0_69 = arith.constant 0 : index
    %139 = vector.load %arg15[%c17_68, %c0_69] : memref<82x32xf32, #tpu.memory_space<vmem>>, vector<64x32xf32>
    %140 = vector.extract_strided_slice %108 {offsets = [7, 0, 0], sizes = [1, 32, 64], strides = [1, 1, 1]} : vector<9x32x64xf32> to vector<1x32x64xf32>
    %141 = vector.shape_cast %140 : vector<1x32x64xf32> to vector<32x64xf32>
    %cst_70 = arith.constant dense<0.000000e+00> : vector<64x64xf32>
    %142 = tpu.matmul %139, %141, %cst_70 {dimension_numbers = #tpu.dot_dimension_numbers<[1], [0], [0], [1], [0, 0, 1, 1], [], []>} : vector<64x32xf32>, vector<32x64xf32>, vector<64x64xf32> -> vector<64x64xf32>
    %143 = arith.addf %138, %142 : vector<64x64xf32>
    %c0_i32_71 = arith.constant 0 : i32
    %144 = vector.broadcast %c0_i32_71 : i32 to vector<64x1xi32>
    %145 = arith.cmpi sgt, %129, %144 : vector<64x1xi32>
    %146 = arith.extui %145 : vector<64x1xi1> to vector<64x1xi32>
    %147 = arith.sitofp %146 : vector<64x1xi32> to vector<64x1xf32>
    %c0_72 = arith.constant 0 : index
    %c0_73 = arith.constant 0 : index
    %148 = vector.load %arg15[%c0_72, %c0_73] : memref<82x32xf32, #tpu.memory_space<vmem>>, vector<64x32xf32>
    %149 = vector.extract_strided_slice %108 {offsets = [0, 0, 0], sizes = [1, 32, 64], strides = [1, 1, 1]} : vector<9x32x64xf32> to vector<1x32x64xf32>
    %150 = vector.shape_cast %149 : vector<1x32x64xf32> to vector<32x64xf32>
    %cst_74 = arith.constant dense<0.000000e+00> : vector<64x64xf32>
    %151 = tpu.matmul %148, %150, %cst_74 {dimension_numbers = #tpu.dot_dimension_numbers<[1], [0], [0], [1], [0, 0, 1, 1], [], []>} : vector<64x32xf32>, vector<32x64xf32>, vector<64x64xf32> -> vector<64x64xf32>
    %c8 = arith.constant 8 : index
    %c0_75 = arith.constant 0 : index
    %152 = vector.load %arg15[%c8, %c0_75] : memref<82x32xf32, #tpu.memory_space<vmem>>, vector<64x32xf32>
    %153 = vector.extract_strided_slice %108 {offsets = [3, 0, 0], sizes = [1, 32, 64], strides = [1, 1, 1]} : vector<9x32x64xf32> to vector<1x32x64xf32>
    %154 = vector.shape_cast %153 : vector<1x32x64xf32> to vector<32x64xf32>
    %cst_76 = arith.constant dense<0.000000e+00> : vector<64x64xf32>
    %155 = tpu.matmul %152, %154, %cst_76 {dimension_numbers = #tpu.dot_dimension_numbers<[1], [0], [0], [1], [0, 0, 1, 1], [], []>} : vector<64x32xf32>, vector<32x64xf32>, vector<64x64xf32> -> vector<64x64xf32>
    %156 = arith.addf %151, %155 : vector<64x64xf32>
    %c16_77 = arith.constant 16 : index
    %c0_78 = arith.constant 0 : index
    %157 = vector.load %arg15[%c16_77, %c0_78] : memref<82x32xf32, #tpu.memory_space<vmem>>, vector<64x32xf32>
    %158 = vector.extract_strided_slice %108 {offsets = [6, 0, 0], sizes = [1, 32, 64], strides = [1, 1, 1]} : vector<9x32x64xf32> to vector<1x32x64xf32>
    %159 = vector.shape_cast %158 : vector<1x32x64xf32> to vector<32x64xf32>
    %cst_79 = arith.constant dense<0.000000e+00> : vector<64x64xf32>
    %160 = tpu.matmul %157, %159, %cst_79 {dimension_numbers = #tpu.dot_dimension_numbers<[1], [0], [0], [1], [0, 0, 1, 1], [], []>} : vector<64x32xf32>, vector<32x64xf32>, vector<64x64xf32> -> vector<64x64xf32>
    %161 = arith.addf %156, %160 : vector<64x64xf32>
    %162 = vector.broadcast %147 : vector<64x1xf32> to vector<64x64xf32>
    %163 = arith.mulf %162, %161 : vector<64x64xf32>
    %164 = arith.addf %143, %163 : vector<64x64xf32>
    %c7_i32 = arith.constant 7 : i32
    %165 = vector.broadcast %c7_i32 : i32 to vector<64x1xi32>
    %166 = arith.cmpi slt, %129, %165 : vector<64x1xi32>
    %167 = arith.extui %166 : vector<64x1xi1> to vector<64x1xi32>
    %168 = arith.sitofp %167 : vector<64x1xi32> to vector<64x1xf32>
    %c2_80 = arith.constant 2 : index
    %c0_81 = arith.constant 0 : index
    %169 = vector.load %arg15[%c2_80, %c0_81] : memref<82x32xf32, #tpu.memory_space<vmem>>, vector<64x32xf32>
    %170 = vector.extract_strided_slice %108 {offsets = [2, 0, 0], sizes = [1, 32, 64], strides = [1, 1, 1]} : vector<9x32x64xf32> to vector<1x32x64xf32>
    %171 = vector.shape_cast %170 : vector<1x32x64xf32> to vector<32x64xf32>
    %cst_82 = arith.constant dense<0.000000e+00> : vector<64x64xf32>
    %172 = tpu.matmul %169, %171, %cst_82 {dimension_numbers = #tpu.dot_dimension_numbers<[1], [0], [0], [1], [0, 0, 1, 1], [], []>} : vector<64x32xf32>, vector<32x64xf32>, vector<64x64xf32> -> vector<64x64xf32>
    %c10 = arith.constant 10 : index
    %c0_83 = arith.constant 0 : index
    %173 = vector.load %arg15[%c10, %c0_83] : memref<82x32xf32, #tpu.memory_space<vmem>>, vector<64x32xf32>
    %174 = vector.extract_strided_slice %108 {offsets = [5, 0, 0], sizes = [1, 32, 64], strides = [1, 1, 1]} : vector<9x32x64xf32> to vector<1x32x64xf32>
    %175 = vector.shape_cast %174 : vector<1x32x64xf32> to vector<32x64xf32>
    %cst_84 = arith.constant dense<0.000000e+00> : vector<64x64xf32>
    %176 = tpu.matmul %173, %175, %cst_84 {dimension_numbers = #tpu.dot_dimension_numbers<[1], [0], [0], [1], [0, 0, 1, 1], [], []>} : vector<64x32xf32>, vector<32x64xf32>, vector<64x64xf32> -> vector<64x64xf32>
    %177 = arith.addf %172, %176 : vector<64x64xf32>
    %c18_85 = arith.constant 18 : index
    %c0_86 = arith.constant 0 : index
    %178 = vector.load %arg15[%c18_85, %c0_86] : memref<82x32xf32, #tpu.memory_space<vmem>>, vector<64x32xf32>
    %179 = vector.extract_strided_slice %108 {offsets = [8, 0, 0], sizes = [1, 32, 64], strides = [1, 1, 1]} : vector<9x32x64xf32> to vector<1x32x64xf32>
    %180 = vector.shape_cast %179 : vector<1x32x64xf32> to vector<32x64xf32>
    %cst_87 = arith.constant dense<0.000000e+00> : vector<64x64xf32>
    %181 = tpu.matmul %178, %180, %cst_87 {dimension_numbers = #tpu.dot_dimension_numbers<[1], [0], [0], [1], [0, 0, 1, 1], [], []>} : vector<64x32xf32>, vector<32x64xf32>, vector<64x64xf32> -> vector<64x64xf32>
    %182 = arith.addf %177, %181 : vector<64x64xf32>
    %183 = vector.broadcast %168 : vector<64x1xf32> to vector<64x64xf32>
    %184 = arith.mulf %183, %182 : vector<64x64xf32>
    %185 = arith.addf %164, %184 : vector<64x64xf32>
    %186 = vector.broadcast %110 : vector<1x64xf32> to vector<64x64xf32>
    %187 = arith.mulf %185, %186 : vector<64x64xf32>
    %188 = vector.broadcast %112 : vector<1x64xf32> to vector<64x64xf32>
    %189 = arith.addf %187, %188 : vector<64x64xf32>
    %cst_88 = arith.constant 0.000000e+00 : f32
    %190 = vector.broadcast %cst_88 : f32 to vector<64x64xf32>
    %191 = arith.maximumf %189, %190 : vector<64x64xf32>
    %192 = vector.shape_cast %191 : vector<64x64xf32> to vector<32x2x64xf32>
    %cst_89 = arith.constant dense<0xFF800000> : vector<32x64xf32>
    %193 = vector.multi_reduction <maximumf>, %192, %cst_89 [1] : vector<32x2x64xf32> to vector<32x64xf32>
    %194 = vector.shape_cast %193 : vector<32x64xf32> to vector<4x8x64xf32>
    %195 = vector.extract_strided_slice %194 {offsets = [0, 0, 0], sizes = [4, 4, 64], strides = [1, 1, 1]} : vector<4x8x64xf32> to vector<4x4x64xf32>
    %196 = vector.extract_strided_slice %194 {offsets = [0, 4, 0], sizes = [4, 4, 64], strides = [1, 1, 1]} : vector<4x8x64xf32> to vector<4x4x64xf32>
    %197 = arith.maximumf %195, %196 : vector<4x4x64xf32>
    %198 = vector.shape_cast %197 : vector<4x4x64xf32> to vector<16x64xf32>
    %cst_90 = arith.constant 0.000000e+00 : f32
    %199 = vector.broadcast %cst_90 : f32 to vector<5x64xf32>
    %c0_91 = arith.constant 0 : index
    %c0_92 = arith.constant 0 : index
    %200 = vector.load %arg16[%c0_91, %c0_92] : memref<26x64xf32, #tpu.memory_space<vmem>>, vector<5x64xf32>
    tpu.vector_store %arg16[%c0_91, %c0_92], %199 {strides = array<i32>} : memref<26x64xf32, #tpu.memory_space<vmem>>, vector<5x64xf32>,
    %c5 = arith.constant 5 : index
    %c0_93 = arith.constant 0 : index
    %201 = vector.load %arg16[%c5, %c0_93] : memref<26x64xf32, #tpu.memory_space<vmem>>, vector<16x64xf32>
    tpu.vector_store %arg16[%c5, %c0_93], %198 {strides = array<i32>} : memref<26x64xf32, #tpu.memory_space<vmem>>, vector<16x64xf32>,
    %c21 = arith.constant 21 : index
    %c0_94 = arith.constant 0 : index
    %202 = vector.load %arg16[%c21, %c0_94] : memref<26x64xf32, #tpu.memory_space<vmem>>, vector<5x64xf32>
    tpu.vector_store %arg16[%c21, %c0_94], %199 {strides = array<i32>} : memref<26x64xf32, #tpu.memory_space<vmem>>, vector<5x64xf32>,
    %c0_95 = arith.constant 0 : index
    %c0_96 = arith.constant 0 : index
    %c0_97 = arith.constant 0 : index
    %c0_98 = arith.constant 0 : index
    %203 = vector.load %arg9[%c0_95, %c0_96, %c0_97, %c0_98] : memref<1x9x64x128xbf16, #tpu.memory_space<vmem>>, vector<1x9x64x128xbf16>
    %204 = vector.shape_cast %203 : vector<1x9x64x128xbf16> to vector<9x64x128xbf16>
    %205 = arith.extf %204 : vector<9x64x128xbf16> to vector<9x64x128xf32>
    %c0_99 = arith.constant 0 : index
    %c0_100 = arith.constant 0 : index
    %c0_101 = arith.constant 0 : index
    %206 = vector.load %arg10[%c0_99, %c0_100, %c0_101] : memref<1x1x128xf32, #tpu.memory_space<vmem>>, vector<1x1x128xf32>
    %207 = vector.shape_cast %206 : vector<1x1x128xf32> to vector<1x128xf32>
    %c0_102 = arith.constant 0 : index
    %c0_103 = arith.constant 0 : index
    %c0_104 = arith.constant 0 : index
    %208 = vector.load %arg11[%c0_102, %c0_103, %c0_104] : memref<1x1x128xf32, #tpu.memory_space<vmem>>, vector<1x1x128xf32>
    %209 = vector.shape_cast %208 : vector<1x1x128xf32> to vector<1x128xf32>
    %210 = tpu.iota {dimensions = array<i32: 0>} : vector<16x1xi32>
    %c4_i32 = arith.constant 4 : i32
    %c0_i32_105 = arith.constant 0 : i32
    %211 = arith.cmpi eq, %c4_i32, %c0_i32_105 : i32
    %c1_i32_106 = arith.constant 1 : i32
    %212 = arith.select %211, %c1_i32_106, %c4_i32 : i32
    %213 = vector.broadcast %212 : i32 to vector<16x1xi32>
    %214 = arith.remsi %210, %213 : vector<16x1xi32>
    %c0_i32_107 = arith.constant 0 : i32
    %215 = vector.broadcast %c0_i32_107 : i32 to vector<16x1xi32>
    %216 = arith.cmpi ne, %214, %215 : vector<16x1xi32>
    %c0_i32_108 = arith.constant 0 : i32
    %217 = vector.broadcast %c0_i32_108 : i32 to vector<16x1xi32>
    %218 = arith.cmpi slt, %214, %217 : vector<16x1xi32>
    %c0_i32_109 = arith.constant 0 : i32
    %219 = arith.cmpi slt, %212, %c0_i32_109 : i32
    %220 = vector.broadcast %219 : i1 to vector<16x1xi1>
    %221 = vector.broadcast %220 : vector<16x1xi1> to vector<16x1xi1>
    %222 = arith.xori %218, %221 : vector<16x1xi1>
    %223 = arith.andi %222, %216 : vector<16x1xi1>
    %224 = vector.broadcast %212 : i32 to vector<16x1xi32>
    %225 = arith.addi %214, %224 : vector<16x1xi32>
    %226 = arith.select %223, %225, %214 : vector<16x1xi1>, vector<16x1xi32>
    %c1_110 = arith.constant 1 : index
    %c0_111 = arith.constant 0 : index
    %227 = vector.load %arg16[%c1_110, %c0_111] : memref<26x64xf32, #tpu.memory_space<vmem>>, vector<16x64xf32>
    %228 = vector.extract_strided_slice %205 {offsets = [1, 0, 0], sizes = [1, 64, 128], strides = [1, 1, 1]} : vector<9x64x128xf32> to vector<1x64x128xf32>
    %229 = vector.shape_cast %228 : vector<1x64x128xf32> to vector<64x128xf32>
    %cst_112 = arith.constant dense<0.000000e+00> : vector<16x128xf32>
    %230 = tpu.matmul %227, %229, %cst_112 {dimension_numbers = #tpu.dot_dimension_numbers<[1], [0], [0], [1], [0, 0, 1, 1], [], []>} : vector<16x64xf32>, vector<64x128xf32>, vector<16x128xf32> -> vector<16x128xf32>
    %c5_113 = arith.constant 5 : index
    %c0_114 = arith.constant 0 : index
    %231 = vector.load %arg16[%c5_113, %c0_114] : memref<26x64xf32, #tpu.memory_space<vmem>>, vector<16x64xf32>
    %232 = vector.extract_strided_slice %205 {offsets = [4, 0, 0], sizes = [1, 64, 128], strides = [1, 1, 1]} : vector<9x64x128xf32> to vector<1x64x128xf32>
    %233 = vector.shape_cast %232 : vector<1x64x128xf32> to vector<64x128xf32>
    %cst_115 = arith.constant dense<0.000000e+00> : vector<16x128xf32>
    %234 = tpu.matmul %231, %233, %cst_115 {dimension_numbers = #tpu.dot_dimension_numbers<[1], [0], [0], [1], [0, 0, 1, 1], [], []>} : vector<16x64xf32>, vector<64x128xf32>, vector<16x128xf32> -> vector<16x128xf32>
    %235 = arith.addf %230, %234 : vector<16x128xf32>
    %c9_116 = arith.constant 9 : index
    %c0_117 = arith.constant 0 : index
    %236 = vector.load %arg16[%c9_116, %c0_117] : memref<26x64xf32, #tpu.memory_space<vmem>>, vector<16x64xf32>
    %237 = vector.extract_strided_slice %205 {offsets = [7, 0, 0], sizes = [1, 64, 128], strides = [1, 1, 1]} : vector<9x64x128xf32> to vector<1x64x128xf32>
    %238 = vector.shape_cast %237 : vector<1x64x128xf32> to vector<64x128xf32>
    %cst_118 = arith.constant dense<0.000000e+00> : vector<16x128xf32>
    %239 = tpu.matmul %236, %238, %cst_118 {dimension_numbers = #tpu.dot_dimension_numbers<[1], [0], [0], [1], [0, 0, 1, 1], [], []>} : vector<16x64xf32>, vector<64x128xf32>, vector<16x128xf32> -> vector<16x128xf32>
    %240 = arith.addf %235, %239 : vector<16x128xf32>
    %c0_i32_119 = arith.constant 0 : i32
    %241 = vector.broadcast %c0_i32_119 : i32 to vector<16x1xi32>
    %242 = arith.cmpi sgt, %226, %241 : vector<16x1xi32>
    %243 = arith.extui %242 : vector<16x1xi1> to vector<16x1xi32>
    %244 = arith.sitofp %243 : vector<16x1xi32> to vector<16x1xf32>
    %c0_120 = arith.constant 0 : index
    %c0_121 = arith.constant 0 : index
    %245 = vector.load %arg16[%c0_120, %c0_121] : memref<26x64xf32, #tpu.memory_space<vmem>>, vector<16x64xf32>
    %246 = vector.extract_strided_slice %205 {offsets = [0, 0, 0], sizes = [1, 64, 128], strides = [1, 1, 1]} : vector<9x64x128xf32> to vector<1x64x128xf32>
    %247 = vector.shape_cast %246 : vector<1x64x128xf32> to vector<64x128xf32>
    %cst_122 = arith.constant dense<0.000000e+00> : vector<16x128xf32>
    %248 = tpu.matmul %245, %247, %cst_122 {dimension_numbers = #tpu.dot_dimension_numbers<[1], [0], [0], [1], [0, 0, 1, 1], [], []>} : vector<16x64xf32>, vector<64x128xf32>, vector<16x128xf32> -> vector<16x128xf32>
    %c4 = arith.constant 4 : index
    %c0_123 = arith.constant 0 : index
    %249 = vector.load %arg16[%c4, %c0_123] : memref<26x64xf32, #tpu.memory_space<vmem>>, vector<16x64xf32>
    %250 = vector.extract_strided_slice %205 {offsets = [3, 0, 0], sizes = [1, 64, 128], strides = [1, 1, 1]} : vector<9x64x128xf32> to vector<1x64x128xf32>
    %251 = vector.shape_cast %250 : vector<1x64x128xf32> to vector<64x128xf32>
    %cst_124 = arith.constant dense<0.000000e+00> : vector<16x128xf32>
    %252 = tpu.matmul %249, %251, %cst_124 {dimension_numbers = #tpu.dot_dimension_numbers<[1], [0], [0], [1], [0, 0, 1, 1], [], []>} : vector<16x64xf32>, vector<64x128xf32>, vector<16x128xf32> -> vector<16x128xf32>
    %253 = arith.addf %248, %252 : vector<16x128xf32>
    %c8_125 = arith.constant 8 : index
    %c0_126 = arith.constant 0 : index
    %254 = vector.load %arg16[%c8_125, %c0_126] : memref<26x64xf32, #tpu.memory_space<vmem>>, vector<16x64xf32>
    %255 = vector.extract_strided_slice %205 {offsets = [6, 0, 0], sizes = [1, 64, 128], strides = [1, 1, 1]} : vector<9x64x128xf32> to vector<1x64x128xf32>
    %256 = vector.shape_cast %255 : vector<1x64x128xf32> to vector<64x128xf32>
    %cst_127 = arith.constant dense<0.000000e+00> : vector<16x128xf32>
    %257 = tpu.matmul %254, %256, %cst_127 {dimension_numbers = #tpu.dot_dimension_numbers<[1], [0], [0], [1], [0, 0, 1, 1], [], []>} : vector<16x64xf32>, vector<64x128xf32>, vector<16x128xf32> -> vector<16x128xf32>
    %258 = arith.addf %253, %257 : vector<16x128xf32>
    %259 = vector.broadcast %244 : vector<16x1xf32> to vector<16x128xf32>
    %260 = arith.mulf %259, %258 : vector<16x128xf32>
    %261 = arith.addf %240, %260 : vector<16x128xf32>
    %c3_i32 = arith.constant 3 : i32
    %262 = vector.broadcast %c3_i32 : i32 to vector<16x1xi32>
    %263 = arith.cmpi slt, %226, %262 : vector<16x1xi32>
    %264 = arith.extui %263 : vector<16x1xi1> to vector<16x1xi32>
    %265 = arith.sitofp %264 : vector<16x1xi32> to vector<16x1xf32>
    %c2_128 = arith.constant 2 : index
    %c0_129 = arith.constant 0 : index
    %266 = vector.load %arg16[%c2_128, %c0_129] : memref<26x64xf32, #tpu.memory_space<vmem>>, vector<16x64xf32>
    %267 = vector.extract_strided_slice %205 {offsets = [2, 0, 0], sizes = [1, 64, 128], strides = [1, 1, 1]} : vector<9x64x128xf32> to vector<1x64x128xf32>
    %268 = vector.shape_cast %267 : vector<1x64x128xf32> to vector<64x128xf32>
    %cst_130 = arith.constant dense<0.000000e+00> : vector<16x128xf32>
    %269 = tpu.matmul %266, %268, %cst_130 {dimension_numbers = #tpu.dot_dimension_numbers<[1], [0], [0], [1], [0, 0, 1, 1], [], []>} : vector<16x64xf32>, vector<64x128xf32>, vector<16x128xf32> -> vector<16x128xf32>
    %c6 = arith.constant 6 : index
    %c0_131 = arith.constant 0 : index
    %270 = vector.load %arg16[%c6, %c0_131] : memref<26x64xf32, #tpu.memory_space<vmem>>, vector<16x64xf32>
    %271 = vector.extract_strided_slice %205 {offsets = [5, 0, 0], sizes = [1, 64, 128], strides = [1, 1, 1]} : vector<9x64x128xf32> to vector<1x64x128xf32>
    %272 = vector.shape_cast %271 : vector<1x64x128xf32> to vector<64x128xf32>
    %cst_132 = arith.constant dense<0.000000e+00> : vector<16x128xf32>
    %273 = tpu.matmul %270, %272, %cst_132 {dimension_numbers = #tpu.dot_dimension_numbers<[1], [0], [0], [1], [0, 0, 1, 1], [], []>} : vector<16x64xf32>, vector<64x128xf32>, vector<16x128xf32> -> vector<16x128xf32>
    %274 = arith.addf %269, %273 : vector<16x128xf32>
    %c10_133 = arith.constant 10 : index
    %c0_134 = arith.constant 0 : index
    %275 = vector.load %arg16[%c10_133, %c0_134] : memref<26x64xf32, #tpu.memory_space<vmem>>, vector<16x64xf32>
    %276 = vector.extract_strided_slice %205 {offsets = [8, 0, 0], sizes = [1, 64, 128], strides = [1, 1, 1]} : vector<9x64x128xf32> to vector<1x64x128xf32>
    %277 = vector.shape_cast %276 : vector<1x64x128xf32> to vector<64x128xf32>
    %cst_135 = arith.constant dense<0.000000e+00> : vector<16x128xf32>
    %278 = tpu.matmul %275, %277, %cst_135 {dimension_numbers = #tpu.dot_dimension_numbers<[1], [0], [0], [1], [0, 0, 1, 1], [], []>} : vector<16x64xf32>, vector<64x128xf32>, vector<16x128xf32> -> vector<16x128xf32>
    %279 = arith.addf %274, %278 : vector<16x128xf32>
    %280 = vector.broadcast %265 : vector<16x1xf32> to vector<16x128xf32>
    %281 = arith.mulf %280, %279 : vector<16x128xf32>
    %282 = arith.addf %261, %281 : vector<16x128xf32>
    %283 = vector.broadcast %207 : vector<1x128xf32> to vector<16x128xf32>
    %284 = arith.mulf %282, %283 : vector<16x128xf32>
    %285 = vector.broadcast %209 : vector<1x128xf32> to vector<16x128xf32>
    %286 = arith.addf %284, %285 : vector<16x128xf32>
    %cst_136 = arith.constant 0.000000e+00 : f32
    %287 = vector.broadcast %cst_136 : f32 to vector<16x128xf32>
    %288 = arith.maximumf %286, %287 : vector<16x128xf32>
    %c0_137 = arith.constant 0 : index
    %c0_138 = arith.constant 0 : index
    %c0_139 = arith.constant 0 : index
    %289 = vector.load %arg12[%c0_137, %c0_138, %c0_139] : memref<1x128x128xbf16, #tpu.memory_space<vmem>>, vector<1x128x128xbf16>
    %290 = vector.shape_cast %289 : vector<1x128x128xbf16> to vector<128x128xbf16>
    %291 = arith.extf %290 : vector<128x128xbf16> to vector<128x128xf32>
    %cst_140 = arith.constant dense<0.000000e+00> : vector<16x128xf32>
    %292 = tpu.matmul %288, %291, %cst_140 {dimension_numbers = #tpu.dot_dimension_numbers<[1], [0], [0], [1], [0, 0, 1, 1], [], []>} : vector<16x128xf32>, vector<128x128xf32>, vector<16x128xf32> -> vector<16x128xf32>
    %cst_141 = arith.constant dense<0.000000e+00> : vector<128xf32>
    %293 = vector.multi_reduction <add>, %292, %cst_141 [0] : vector<16x128xf32> to vector<128xf32>
    %294 = vector.shape_cast %293 : vector<128xf32> to vector<1x128xf32>
    %cst_142 = arith.constant 6.250000e-02 : f32
    %295 = vector.broadcast %cst_142 : f32 to vector<1x128xf32>
    %296 = arith.mulf %294, %295 : vector<1x128xf32>
    %c0_143 = arith.constant 0 : index
    %c0_144 = arith.constant 0 : index
    %c0_145 = arith.constant 0 : index
    %297 = vector.load %arg13[%c0_143, %c0_144, %c0_145] : memref<1x1x128xf32, #tpu.memory_space<vmem>>, vector<1x1x128xf32>
    %298 = vector.shape_cast %297 : vector<1x1x128xf32> to vector<1x128xf32>
    %299 = arith.addf %296, %298 : vector<1x128xf32>
    %300 = vector.shape_cast %299 : vector<1x128xf32> to vector<1x128xf32>
    %301 = vector.broadcast %300 : vector<1x128xf32> to vector<8x128xf32>
    %c0_146 = arith.constant 0 : index
    %c0_147 = arith.constant 0 : index
    %c0_148 = arith.constant 0 : index
    %c0_149 = arith.constant 0 : index
    %302 = vector.load %arg14[%c0_146, %c0_147, %c0_148, %c0_149] : memref<1x1x8x128xf32, #tpu.memory_space<vmem>>, vector<1x1x8x128xf32>
    %303 = vector.shape_cast %302 : vector<1x1x8x128xf32> to vector<8x128xf32>
    %304 = vector.shape_cast %301 : vector<8x128xf32> to vector<1x1x8x128xf32>
    tpu.vector_store %arg14[%c0_146, %c0_147, %c0_148, %c0_149], %304 {strides = array<i32>} : memref<1x1x8x128xf32, #tpu.memory_space<vmem>>, vector<1x1x8x128xf32>,
    return
  }
  func.func @transform_0(%arg0: i32, %arg1: i32) -> (i32, i32, i32) {
    %c0_i32 = arith.constant 0 : i32
    %c0_i32_0 = arith.constant 0 : i32
    %c0_i32_1 = arith.constant 0 : i32
    return %arg1, %c0_i32, %c0_i32_0 : i32, i32, i32
  }
  func.func @transform_1(%arg0: i32, %arg1: i32) -> (i32, i32, i32, i32) {
    %c0_i32 = arith.constant 0 : i32
    %c0_i32_0 = arith.constant 0 : i32
    %c0_i32_1 = arith.constant 0 : i32
    %c0_i32_2 = arith.constant 0 : i32
    return %arg0, %c0_i32, %c0_i32_0, %c0_i32_1 : i32, i32, i32, i32
  }
  func.func @transform_2(%arg0: i32, %arg1: i32) -> (i32, i32, i32) {
    %c0_i32 = arith.constant 0 : i32
    %c0_i32_0 = arith.constant 0 : i32
    %c0_i32_1 = arith.constant 0 : i32
    return %arg0, %c0_i32, %c0_i32_0 : i32, i32, i32
  }
  func.func @transform_3(%arg0: i32, %arg1: i32) -> (i32, i32, i32) {
    %c0_i32 = arith.constant 0 : i32
    %c0_i32_0 = arith.constant 0 : i32
    %c0_i32_1 = arith.constant 0 : i32
    return %arg0, %c0_i32, %c0_i32_0 : i32, i32, i32
  }
  func.func @transform_4(%arg0: i32, %arg1: i32) -> (i32, i32, i32, i32) {
    %c0_i32 = arith.constant 0 : i32
    %c0_i32_0 = arith.constant 0 : i32
    %c0_i32_1 = arith.constant 0 : i32
    %c0_i32_2 = arith.constant 0 : i32
    return %arg0, %c0_i32, %c0_i32_0, %c0_i32_1 : i32, i32, i32, i32
  }
  func.func @transform_5(%arg0: i32, %arg1: i32) -> (i32, i32, i32) {
    %c0_i32 = arith.constant 0 : i32
    %c0_i32_0 = arith.constant 0 : i32
    %c0_i32_1 = arith.constant 0 : i32
    return %arg0, %c0_i32, %c0_i32_0 : i32, i32, i32
  }
  func.func @transform_6(%arg0: i32, %arg1: i32) -> (i32, i32, i32) {
    %c0_i32 = arith.constant 0 : i32
    %c0_i32_0 = arith.constant 0 : i32
    %c0_i32_1 = arith.constant 0 : i32
    return %arg0, %c0_i32, %c0_i32_0 : i32, i32, i32
  }
  func.func @transform_7(%arg0: i32, %arg1: i32) -> (i32, i32, i32, i32) {
    %c0_i32 = arith.constant 0 : i32
    %c0_i32_0 = arith.constant 0 : i32
    %c0_i32_1 = arith.constant 0 : i32
    %c0_i32_2 = arith.constant 0 : i32
    return %arg0, %c0_i32, %c0_i32_0, %c0_i32_1 : i32, i32, i32, i32
  }
  func.func @transform_8(%arg0: i32, %arg1: i32) -> (i32, i32, i32) {
    %c0_i32 = arith.constant 0 : i32
    %c0_i32_0 = arith.constant 0 : i32
    %c0_i32_1 = arith.constant 0 : i32
    return %arg0, %c0_i32, %c0_i32_0 : i32, i32, i32
  }
  func.func @transform_9(%arg0: i32, %arg1: i32) -> (i32, i32, i32) {
    %c0_i32 = arith.constant 0 : i32
    %c0_i32_0 = arith.constant 0 : i32
    %c0_i32_1 = arith.constant 0 : i32
    return %arg0, %c0_i32, %c0_i32_0 : i32, i32, i32
  }
  func.func @transform_10(%arg0: i32, %arg1: i32) -> (i32, i32, i32) {
    %c0_i32 = arith.constant 0 : i32
    %c0_i32_0 = arith.constant 0 : i32
    %c0_i32_1 = arith.constant 0 : i32
    return %arg0, %c0_i32, %c0_i32_0 : i32, i32, i32
  }
  func.func @transform_11(%arg0: i32, %arg1: i32) -> (i32, i32, i32) {
    %c0_i32 = arith.constant 0 : i32
    %c0_i32_0 = arith.constant 0 : i32
    %c0_i32_1 = arith.constant 0 : i32
    return %arg0, %c0_i32, %c0_i32_0 : i32, i32, i32
  }
  func.func @transform_12(%arg0: i32, %arg1: i32) -> (i32, i32, i32, i32) {
    %c0_i32 = arith.constant 0 : i32
    %c0_i32_0 = arith.constant 0 : i32
    %c0_i32_1 = arith.constant 0 : i32
    return %arg0, %arg1, %c0_i32, %c0_i32_0 : i32, i32, i32, i32
  }
}

</mosaic_0001>

<bundles_post_ra>
// kernel: experts_forward.1
= control target key start
LH: loop header
LB: loop body
LE: loop exit
PB: predicated region body
PF: predicated region fallthrough
CT: control target
= control target key end

     0   :  { %s12201_s21 = smov 0   ;;  %s12203_s22 = smov 0   ;;  %s14694_s0 = inlined_call_operand.vmem [shape: f32[2,290,4], index: 0, kind: input, shape index: {}]   ;;  %s14695_s1 = inlined_call_operand.vmem [shape: bf16[2,9,4,32], index: 1, kind: input, shape index: {}]   ;;  %s14696_s2 = inlined_call_operand.vmem [shape: f32[2,1,32], index: 2, kind: input, shape index: {}]   ;;  %s14697_s3 = inlined_call_operand.vmem [shape: f32[2,1,32], index: 3, kind: input, shape index: {}]   ;;  %s14698_s4 = inlined_call_operand.vmem [shape: bf16[2,9,32,64], index: 4, kind: input, shape index: {}]   ;;  %s14699_s5 = inlined_call_operand.vmem [shape: f32[2,1,64], index: 5, kind: input, shape index: {}]   ;;  %s14700_s6 = inlined_call_operand.vmem [shape: f32[2,1,64], index: 6, kind: input, shape index: {}]   ;;  %s14701_s7 = inlined_call_operand.vmem [shape: bf16[2,9,64,128], index: 7, kind: input, shape index: {}]   ;;  %s14702_s8 = inlined_call_operand.vmem [shape: f32[2,1,128], index: 8, kind: input, shape index: {}]   ;;  %s14703_s9 = inlined_call_operand.vmem [shape: f32[2,1,128], index: 9, kind: input, shape index: {}]   ;;  %s14704_s10 = inlined_call_operand.vmem [shape: bf16[2,128,128], index: 10, kind: input, shape index: {}]   ;;  %s14705_s11 = inlined_call_operand.vmem [shape: f32[2,1,128], index: 11, kind: input, shape index: {}]   ;;  %s14706_s12 = inlined_call_operand.vmem [shape: f32[2,2,8,128], index: 12, kind: output, shape index: {}]  }
   0x1   :  { %s12205_s23 = smov 0   ;;  %s12207_s24 = smov 0  }
   0x2   :  { %s12209_s25 = smov 0  }
   0x3 LB: > { %s31_s26 = sadd.s32 1, %s12124_s23  ;;  %s34_s27 = sadd.s32 1, %s12128_s24  ;;  %s12132_s25 = sphi %s12209_s25, %s22_s25   ;;  %s12128_s24 = sphi %s12207_s24, %s14812_s24   ;;  %s12124_s23 = sphi %s12205_s23, %s14811_s23   ;;  %s12120_s22 = sphi %s12203_s22, %s14810_s22   ;;  %s12116_s21 = sphi %s12201_s21, %s14809_s21  }
   0x4   : > { %p32_p0 = scmp.ge.s32.totalorder %s31_s26, 2  ;;  %p9425_p1 = scmp.ge.s32.totalorder %s12132_s25, 1 }
   0x5   : > { %p472_p2 = scmp.lt.s32.totalorder %s12132_s25, 5 }
   0x6   : > { %s14814_s26 = smov (%p32_p0, %s31_s26), 0  ;;  %s14816_s27 = smov (!%p32_p0, %s34_s27), %s12128_s24 }
   0x7   : > { %p473_p3 = pnand %p9425_p1, %p472_p2  ;;  %p36_p4 = scmp.ge.s32.totalorder %s14816_s27, 2 }
   0x9   : > { %s14818_s27 = smov (%p36_p4, %s14816_s27), 0  ;;  %476 = sbr.rel (%p473_p3) target bundleno = 1871 (0x74f), region = 68 }
  0x10   : > { %p563_p5 = scmp.lt.s32.totalorder %s12120_s22, 1  ;;  %p558_p6 = scmp.lt.s32.totalorder %s12116_s21, 1  ;;  %vm1180_vm0 = vcmask 1043456   ;;  %vm1083_vm1 = vcmask 31744   ;;  %vm6084_vm13 = vcmask 261120  }
  0x12   : > { %s14820_s22 = smov (!%p563_p5, %s12120_s22), 1  ;;  %s14822_s21 = smov (!%p558_p6, %s12116_s21), 1 }
  0x13   : > { %s12041_s28 = smul.u32 18, %s14820_s22  ;;  %s13402_s20 = scalar_lea.vmem %s14696_s2, %s14820_s22 }
  0x14   : > { %s12040_s14 = smul.u32 296, %s14822_s21  ;;  %s13415_s30 = scalar_lea.vmem %s14697_s3, %s14820_s22 }
  0x15   : > { %s12239_s13 = scalar_lea.vmem %s14695_s1, %s12041_s28  ;;  %s584_s15 = scalar_lea.vmem %s14700_s6, %s14820_s22 }
  0x16   : > { %v616_v0 = vld [vmem:[%s12239_s13 + $0x8] sm:$0x3]  ;;  %v613_v1 = vld [vmem:[%s12239_s13 + $0x2] sm:$0x3]  ;;  %s12247_s17 = scalar_lea.vmem %s14694_s0, %s12040_s14  ;;  %v615_v3 = vld [vmem:[%s12239_s13 + $0x6] sm:$0x3]  ;;  %s592_s29 = scalar_lea.vmem %s14702_s8, %s14820_s22 }
  0x17   : > { %v625_v2 = vunpack.c.l.bf16 %v616_v0  ;;  %v12251_v4 = vld [vmem:[%s12247_s17 + $0x11] sm:$0xff]  ;;  %v12257_v6 = vld [vmem:[%s12239_s13 + $0xe] sm:$0x3]  ;;  %v12262_v7 = vld [vmem:[%s12247_s17 + $0x19] sm:$0xff]  ;;  %v622_v9 = vunpack.c.l.bf16 %v613_v1  ;;  %v624_v12 = vunpack.c.l.bf16 %v615_v3  ;;  %s595_s14 = scalar_lea.vmem %s14703_s9, %s14820_s22  ;;  %s603_s18 = scalar_lea.vmem %s14705_s11, %s14820_s22 }
  0x18   : > { %v12254_v5 = vld [vmem:[%s12247_s17 + $0xd1] sm:$0xff]  ;;  %v12265_v8 = vld [vmem:[%s12247_s17 + $0xd9] sm:$0xff]  ;;  %v12270_v10 = vld [vmem:[%s12247_s17 + $0x21] sm:$0xff]  ;;  %10704 = vmatprep.mubr.msk.f32.mxu0 %vm1083_vm1, %v12251_v4  ;;  %v628_v13 = vunpack.c.l.bf16 %v12257_v6 }
  0x19   : > { %10702 = vmatprep.subr.msk.mxu0 %vm1180_vm0, %v625_v2  ;;  %11786 = vmatprep.subr.msk.mxu1 %vm1180_vm0, %v625_v2  ;;  %v12277_v11 = vld [vmem:[%s12247_s17 + $0xe1] sm:$0xff]  ;;  %v12289_v15 = vld [vmem:[%s12247_s17 + $0x29] sm:$0xff]  ;;  %v12298_v17 = vld [vmem:[%s12247_s17 + $0x31] sm:$0xff] }
  0x1a   : > { %10703 = vmatpush3.msk.msra.mxu0 %vm1180_vm0, %v625_v2  ;;  %11787 = vmatpush3.msk.msra.mxu1 %vm1180_vm0, %v625_v2  ;;  %v612_v14 = vld [vmem:[%s12239_s13] sm:$0x3]  ;;  %v12292_v16 = vld [vmem:[%s12247_s17 + $0xe9] sm:$0xff]  ;;  %v12301_v18 = vld [vmem:[%s12247_s17 + $0xf1] sm:$0xff] }
  0x1b   : > { %10740 = vmatprep.mubr.msk.f32.mxu1 %vm1083_vm1, %v12254_v5  ;;  %10705 = vmatmul.mubr.msk.f32.vlgmr.msra.gmra.mrb[0].mxu0 %vm1083_vm1, %v12262_v7  ;;  %v621_v19 = vunpack.c.l.bf16 %v612_v14  ;;  %v12316_v20 = vld [vmem:[%s12247_s17 + $0x39] sm:$0xff]  ;;  %v12322_v22 = vld [vmem:[%s12247_s17 + $0x41] sm:$0xff]  ;;  %v12338_v24 = vld [vmem:[%s12247_s17 + $0x49] sm:$0xff] }
  0x1c   : > { %10741 = vmatmul.mubr.msk.f32.vlgmr.msra.gmra.mrb[0].mxu1 %vm1083_vm1, %v12265_v8  ;;  %10752 = vmatprep.subr.msk.mxu0 %vm1180_vm0, %v622_v9  ;;  %v12319_v21 = vld [vmem:[%s12247_s17 + $0xf9] sm:$0xff]  ;;  %v12325_v23 = vld [vmem:[%s12247_s17 + $0x101] sm:$0xff]  ;;  %v12341_v25 = vld [vmem:[%s12247_s17 + $0x109] sm:$0xff] }
  0x1d   : > { %10707 = vmatprep.mubr.msk.f32.mxu0 %vm1083_vm1, %v12270_v10  ;;  %10753 = vmatpush3.msk.msra.mxu0 %vm1180_vm0, %v622_v9  ;;  %14730 = vst [vmem:[#allocation4_spill] sm:$0xff] %v12325_v23  ;;  %14731 = vst [vmem:[#allocation5_spill] sm:$0xff] %v12341_v25  ;;  %v12344_v26 = vld [vmem:[%s12247_s17 + $0x51] sm:$0xff]  ;;  %v12358_v28 = vld [vmem:[%s12247_s17 + $0x59] sm:$0xff] }
  0x1e   : > { %10743 = vmatprep.mubr.msk.f32.mxu1 %vm1083_vm1, %v12277_v11  ;;  %10852 = vmatprep.subr.msk.mxu1 %vm1180_vm0, %v624_v12  ;;  %v12347_v27 = vld [vmem:[%s12247_s17 + $0x10] sm:$0xff]  ;;  %v12361_v29 = vld [vmem:[%s12247_s17 + $0x18] sm:$0xff]  ;;  %v12364_v30 = vld [vmem:[%s12247_s17 + $0x61] sm:$0xff] }
  0x1f   : > { %10802 = vmatprep.subr.msk.mxu0 %vm1180_vm0, %v628_v13  ;;  %10708 = vmatmul.mubr.msk.f32.gmra.mrb[2].mxu0 %vm1083_vm1, %v12289_v15  ;;  %v12367_v31 = vld [vmem:[%s12247_s17 + $0x20] sm:$0xff]  ;;  %v12378_v32 = vld [vmem:[%s12247_s17 + $0x69] sm:$0xff]  ;;  %v12384_v34 = vld [vmem:[%s12247_s17 + $0x71] sm:$0xff] }
  0x20   : > { %10744 = vmatmul.mubr.msk.f32.gmra.mrb[2].mxu1 %vm1083_vm1, %v12292_v16  ;;  %10710 = vmatprep.mubr.msk.f32.mxu0 %vm1083_vm1, %v12298_v17  ;;  %v12381_v33 = vld [vmem:[%s12247_s17 + $0x28] sm:$0xff]  ;;  %v12387_v35 = vld [vmem:[%s12247_s17 + $0x30] sm:$0xff]  ;;  %v12403_v38 = vld [vmem:[%s12247_s17 + $0x79] sm:$0xff] }
  0x21   : > { %10746 = vmatprep.mubr.msk.f32.mxu1 %vm1083_vm1, %v12301_v18  ;;  %10853 = vmatpush3.msk.msra.mxu1 %vm1180_vm0, %v624_v12  ;;  %v12391_v36 = vld [vmem:[%s12239_s13 + $0xc] sm:$0x3]  ;;  %v12406_v39 = vld [vmem:[%s12247_s17 + $0x38] sm:$0xff]  ;;  %v12409_v40 = vld [vmem:[%s12247_s17 + $0x81] sm:$0xff] }
  0x22   : > { %10902 = vmatprep.subr.msk.mxu1 %vm1180_vm0, %v621_v19  ;;  %v14708_v37 = vunpack.c.l.bf16 %v12391_v36  ;;  %v12412_v41 = vld [vmem:[%s12247_s17 + $0x40] sm:$0xff]  ;;  %v12426_v42 = vld [vmem:[%s12247_s17 + $0x89] sm:$0xff]  ;;  %v12432_v44 = vld [vmem:[%s12247_s17 + $0x91] sm:$0xff] }
  0x23   : > { %10711 = vmatmul.mubr.msk.f32.gmra.mrb[4].mxu0 %vm1083_vm1, %v12316_v20  ;;  %v12429_v43 = vld [vmem:[%s12247_s17 + $0x48] sm:$0xff]  ;;  %v12435_v45 = vld [vmem:[%s12247_s17 + $0x50] sm:$0xff]  ;;  %v12446_v46 = vld [vmem:[%s12247_s17 + $0x99] sm:$0xff] }
  0x24   : > { %10747 = vmatmul.mubr.msk.f32.gmra.mrb[4].mxu1 %vm1083_vm1, %v12319_v21  ;;  %10713 = vmatprep.mubr.msk.f32.mxu0 %vm1083_vm1, %v12322_v22  ;;  %v12449_v47 = vld [vmem:[%s12247_s17 + $0x58] sm:$0xff]  ;;  %v12452_v48 = vld [vmem:[%s12247_s17 + $0xa1] sm:$0xff]  ;;  %v12466_v50 = vld [vmem:[%s12247_s17 + $0xa9] sm:$0xff] }
  0x25   : > { %10749 = vmatprep.mubr.msk.f32.mxu1 %vm1083_vm1, %v12325_v23  ;;  %v12455_v49 = vld [vmem:[%s12247_s17 + $0x60] sm:$0xff]  ;;  %v12469_v51 = vld [vmem:[%s12247_s17 + $0x68] sm:$0xff]  ;;  %v12472_v52 = vld [vmem:[%s12247_s17 + $0xb1] sm:$0xff] }
  0x26   : > { %v12475_v53 = vld [vmem:[%s12247_s17 + $0x70] sm:$0xff]  ;;  %v12486_v54 = vld [vmem:[%s12247_s17 + $0xb9] sm:$0xff]  ;;  %v12492_v56 = vld [vmem:[%s12247_s17 + $0xc1] sm:$0xff] }
  0x27   : > { %10714 = vmatmul.mubr.msk.f32.gmra.mrb[6].mxu0 %vm1083_vm1, %v12338_v24  ;;  %v12489_v55 = vld [vmem:[%s12247_s17 + $0x78] sm:$0xff]  ;;  %v12495_v57 = vld [vmem:[%s12247_s17 + $0x80] sm:$0xff]  ;;  %v12506_v58 = vld [vmem:[%s12247_s17 + $0xc9] sm:$0xff] }
  0x28   : > { %10750 = vmatmul.mubr.msk.f32.gmra.mrb[6].mxu1 %vm1083_vm1, %v12341_v25  ;;  %10716 = vmatprep.mubr.msk.f32.mxu0 %vm1083_vm1, %v12344_v26  ;;  %v12509_v59 = vld [vmem:[%s12247_s17 + $0x88] sm:$0xff]  ;;  %v12513_v61 = vld [vmem:[%s12247_s17 + $0x90] sm:$0xff]  ;;  %v12527_v0 = vld [vmem:[%s12247_s17 + $0x98] sm:$0xff] }
  0x29   : > { %10854 = vmatprep.mubr.msk.f32.mxu1 %vm1083_vm1, %v12347_v27  ;;  %v1049_v60 = vld [vmem:[%s12247_s17 + $0x1] sm:$0xff]  ;;  %v12516_v62 = vld [vmem:[%s12239_s13 + $0xa] sm:$0x3]  ;;  %v12547_v9 = vld [vmem:[%s12247_s17 + $0xb0] sm:$0xff] }
  0x2a   : > { %v1050_v63 = vld [vmem:[%s12247_s17 + $0x9] sm:$0xff]  ;;  %v14707_v1 = vunpack.c.l.bf16 %v12516_v62  ;;  %v12531_v2 = vld [vmem:[%s12247_s17 + $0xa0] sm:$0xff] }
  0x2b   : > { %10717 = vmatmul.mubr.msk.f32.gmra.mrb[8].mxu0 %vm1083_vm1, %v12358_v28  ;;  %v12542_v3 = vld [vmem:[%s12247_s17 + $0xa8] sm:$0xff]  ;;  %v12564_v6 = vld [vmem:[%s12247_s17 + $0xc0] sm:$0xff]  ;;  %v12578_v12 = vld [vmem:[%s12247_s17 + $0xd0] sm:$0xff] }
  0x2c   : > { %10855 = vmatmul.mubr.msk.f32.vlgmr.msra.gmra.mrb[8].mxu1 %vm1083_vm1, %v12361_v29  ;;  %10719 = vmatprep.mubr.msk.f32.mxu0 %vm1083_vm1, %v12364_v30  ;;  %v12592_v14 = vld [vmem:[%s12247_s17 + $0xe0] sm:$0xff]  ;;  %v2128_v23 = vld [vmem:[%s12247_s17 + $0x8] sm:$0xff] }
  0x2d   : > { %10857 = vmatprep.mubr.msk.f32.mxu1 %vm1083_vm1, %v12367_v31  ;;  %10903 = vmatpush3.msk.msra.mxu1 %vm1180_vm0, %v621_v19  ;;  %v12603_v19 = vld [vmem:[%s12247_s17 + $0xe8] sm:$0xff]  ;;  %v2127_v25 = vld [vmem:[%s12247_s17] sm:$0xff] }
  0x2e   : > { %10952 = vmatprep.subr.msk.mxu1 %vm1180_vm0, %v14708_v37  ;;  %v12631_v37 = vld [vmem:[%s12247_s17 + $0x108] sm:$0xff] }
  0x2f   : > { %10720 = vmatmul.mubr.msk.f32.gmra.mrb[10].mxu0 %vm1083_vm1, %v12378_v32 }
  0x30   : > { %10858 = vmatmul.mubr.msk.f32.gmra.mrb[10].mxu1 %vm1083_vm1, %v12381_v33  ;;  %10722 = vmatprep.mubr.msk.f32.mxu0 %vm1083_vm1, %v12384_v34 }
  0x31   : > { %10860 = vmatprep.mubr.msk.f32.mxu1 %vm1083_vm1, %v12387_v35 }
  0x33   : > { %10723 = vmatmul.mubr.msk.f32.gmra.mrb[12].mxu0 %vm1083_vm1, %v12403_v38 }
  0x34   : > { %10861 = vmatmul.mubr.msk.f32.gmra.mrb[12].mxu1 %vm1083_vm1, %v12406_v39  ;;  %10725 = vmatprep.mubr.msk.f32.mxu0 %vm1083_vm1, %v12409_v40 }
  0x35   : > { %10863 = vmatprep.mubr.msk.f32.mxu1 %vm1083_vm1, %v12412_v41 }
  0x37   : > { %10726 = vmatmul.mubr.msk.f32.gmra.mrb[14].mxu0 %vm1083_vm1, %v12426_v42 }
  0x38   : > { %10864 = vmatmul.mubr.msk.f32.gmra.mrb[14].mxu1 %vm1083_vm1, %v12429_v43  ;;  %10728 = vmatprep.mubr.msk.f32.mxu0 %vm1083_vm1, %v12432_v44 }
  0x39   : > { %10866 = vmatprep.mubr.msk.f32.mxu1 %vm1083_vm1, %v12435_v45 }
  0x3b   : > { %10729 = vmatmul.mubr.msk.f32.gmra.mrb[16].mxu0 %vm1083_vm1, %v12446_v46 }
  0x3c   : > { %10867 = vmatmul.mubr.msk.f32.gmra.mrb[16].mxu1 %vm1083_vm1, %v12449_v47  ;;  %10731 = vmatprep.mubr.msk.f32.mxu0 %vm1083_vm1, %v12452_v48 }
  0x3d   : > { %10869 = vmatprep.mubr.msk.f32.mxu1 %vm1083_vm1, %v12455_v49 }
  0x3f   : > { %10732 = vmatmul.mubr.msk.f32.gmra.mrb[18].mxu0 %vm1083_vm1, %v12466_v50 }
  0x40   : > { %10870 = vmatmul.mubr.msk.f32.gmra.mrb[18].mxu1 %vm1083_vm1, %v12469_v51  ;;  %10734 = vmatprep.mubr.msk.f32.mxu0 %vm1083_vm1, %v12472_v52 }
  0x41   : > { %10872 = vmatprep.mubr.msk.f32.mxu1 %vm1083_vm1, %v12475_v53 }
  0x43   : > { %10735 = vmatmul.mubr.msk.f32.gmra.mrb[20].mxu0 %vm1083_vm1, %v12486_v54 }
  0x44   : > { %10873 = vmatmul.mubr.msk.f32.gmra.mrb[20].mxu1 %vm1083_vm1, %v12489_v55  ;;  %10737 = vmatprep.mubr.msk.f32.mxu0 %vm1083_vm1, %v12492_v56 }
  0x45   : > { %10875 = vmatprep.mubr.msk.f32.mxu1 %vm1083_vm1, %v12495_v57 }
  0x47   : > { %10738 = vmatmul.mubr.msk.f32.gmra.mrb[22].mxu0 %vm1083_vm1, %v12506_v58 }
  0x48   : > { %10876 = vmatmul.mubr.msk.f32.gmra.mrb[22].mxu1 %vm1083_vm1, %v12509_v59  ;;  %10754 = vmatprep.mubr.msk.f32.mxu0 %vm1083_vm1, %v1049_v60  ;;  %v12606_v60 = vld [vmem:[%s12247_s17 + $0xf0] sm:$0xff] }
  0x49   : > { %10878 = vmatprep.mubr.msk.f32.mxu1 %vm1083_vm1, %v12513_v61 }
  0x4b   : > { %10755 = vmatmul.mubr.msk.f32.vlgmr.msra.gmra.mrb[0].mxu0 %vm1083_vm1, %v1050_v63  ;;  %v12617_v63 = vld [vmem:[%s12247_s17 + $0xf8] sm:$0xff] }
  0x4c   : > { %10879 = vmatmul.mubr.msk.f32.gmra.mrb[24].mxu1 %vm1083_vm1, %v12527_v0  ;;  %10803 = vmatpush3.msk.msra.mxu0 %vm1180_vm0, %v628_v13  ;;  %v12589_v13 = vld [vmem:[%s12247_s17 + $0xd8] sm:$0xff] }
  0x4d   : > { %10757 = vmatprep.mubr.msk.f32.mxu0 %vm1083_vm1, %v12251_v4  ;;  %10881 = vmatprep.mubr.msk.f32.mxu1 %vm1083_vm1, %v12531_v2  ;;  %v12561_v4 = vld [vmem:[%s12247_s17 + $0xb8] sm:$0xff] }
  0x4e   : > { %11002 = vmatprep.subr.msk.mxu0 %vm1180_vm0, %v14707_v1  ;;  %v12620_v1 = vld [vmem:[%s12247_s17 + $0x100] sm:$0xff] }
  0x4f   : > { %10758 = vmatmul.mubr.msk.f32.gmra.mrb[2].mxu0 %vm1083_vm1, %v12262_v7  ;;  %v12575_v7 = vld [vmem:[%s12247_s17 + $0xc8] sm:$0xff]  ;;  %14732 = vst [vmem:[#allocation6_spill] sm:$0xff] %v12620_v1 }
  0x50   : > { %10882 = vmatmul.mubr.msk.f32.gmra.mrb[26].mxu1 %vm1083_vm1, %v12542_v3  ;;  %10760 = vmatprep.mubr.msk.f32.mxu0 %vm1083_vm1, %v12270_v10 }
  0x51   : > { %10884 = vmatprep.mubr.msk.f32.mxu1 %vm1083_vm1, %v12547_v9 }
  0x53   : > { %10761 = vmatmul.mubr.msk.f32.gmra.mrb[4].mxu0 %vm1083_vm1, %v12289_v15 }
  0x54   : > { %10885 = vmatmul.mubr.msk.f32.gmra.mrb[28].mxu1 %vm1083_vm1, %v12561_v4  ;;  %10763 = vmatprep.mubr.msk.f32.mxu0 %vm1083_vm1, %v12298_v17 }
  0x55   : > { %10887 = vmatprep.mubr.msk.f32.mxu1 %vm1083_vm1, %v12564_v6 }
  0x57   : > { %10764 = vmatmul.mubr.msk.f32.gmra.mrb[6].mxu0 %vm1083_vm1, %v12316_v20 }
  0x58   : > { %10888 = vmatmul.mubr.msk.f32.gmra.mrb[30].mxu1 %vm1083_vm1, %v12575_v7  ;;  %10766 = vmatprep.mubr.msk.f32.mxu0 %vm1083_vm1, %v12322_v22 }
  0x59   : > { %10890 = vmatprep.mubr.msk.f32.mxu1 %vm1083_vm1, %v12578_v12 }
  0x5b   : > { %10767 = vmatmul.mubr.msk.f32.gmra.mrb[8].mxu0 %vm1083_vm1, %v12338_v24 }
  0x5c   : > { %10891 = vmatmul.mubr.msk.f32.gmra.mrb[32].mxu1 %vm1083_vm1, %v12589_v13  ;;  %10769 = vmatprep.mubr.msk.f32.mxu0 %vm1083_vm1, %v12344_v26 }
  0x5d   : > { %10893 = vmatprep.mubr.msk.f32.mxu1 %vm1083_vm1, %v12592_v14 }
  0x5f   : > { %10770 = vmatmul.mubr.msk.f32.gmra.mrb[10].mxu0 %vm1083_vm1, %v12358_v28 }
  0x60   : > { %10894 = vmatmul.mubr.msk.f32.gmra.mrb[34].mxu1 %vm1083_vm1, %v12603_v19  ;;  %10772 = vmatprep.mubr.msk.f32.mxu0 %vm1083_vm1, %v12364_v30 }
  0x61   : > { %10896 = vmatprep.mubr.msk.f32.mxu1 %vm1083_vm1, %v12606_v60 }
  0x63   : > { %10773 = vmatmul.mubr.msk.f32.gmra.mrb[12].mxu0 %vm1083_vm1, %v12378_v32 }
  0x64   : > { %10897 = vmatmul.mubr.msk.f32.gmra.mrb[36].mxu1 %vm1083_vm1, %v12617_v63  ;;  %10775 = vmatprep.mubr.msk.f32.mxu0 %vm1083_vm1, %v12384_v34 }
  0x65   : > { %10899 = vmatprep.mubr.msk.f32.mxu1 %vm1083_vm1, %v12620_v1  ;;  %v14733_v1 = vunpack.c.l.bf16 %v12391_v36  ;;  %v2749_v36 = vld [vmem:[%s12247_s17 + $0x110] sm:$0xff] }
  0x67   : > { %10776 = vmatmul.mubr.msk.f32.gmra.mrb[14].mxu0 %vm1083_vm1, %v12403_v38 }
  0x68   : > { %10900 = vmatmul.mubr.msk.f32.gmra.mrb[38].mxu1 %vm1083_vm1, %v12631_v37  ;;  %10778 = vmatprep.mubr.msk.f32.mxu0 %vm1083_vm1, %v12409_v40 }
  0x69   : > { %10904 = vmatprep.mubr.msk.f32.mxu1 %vm1083_vm1, %v2127_v25 }
  0x6b   : > { %10779 = vmatmul.mubr.msk.f32.gmra.mrb[16].mxu0 %vm1083_vm1, %v12426_v42 }
  0x6c   : > { %10905 = vmatmul.mubr.msk.f32.vlgmr.msra.gmra.mrb[8].mxu1 %vm1083_vm1, %v2128_v23  ;;  %10781 = vmatprep.mubr.msk.f32.mxu0 %vm1083_vm1, %v12432_v44  ;;  %v12701_v23 = vld [vmem:[%s12239_s13 + $0x4] sm:$0x3] }
  0x6d   : > { %10907 = vmatprep.mubr.msk.f32.mxu1 %vm1083_vm1, %v12347_v27  ;;  %10953 = vmatpush3.msk.msra.mxu1 %vm1180_vm0, %v14733_v1  ;;  %v623_v25 = vunpack.c.l.bf16 %v12701_v23  ;;  %v14734_v27 = vunpack.c.l.bf16 %v12516_v62  ;;  %v13046_v62 = vld [vmem:[%s12247_s17 + $0xfa] sm:$0xff]  ;;  %v13056_v1 = vld [vmem:[%s12247_s17 + $0x10a] sm:$0xff] }
  0x6f   : > { %10782 = vmatmul.mubr.msk.f32.gmra.mrb[18].mxu0 %vm1083_vm1, %v12446_v46 }
  0x70   : > { %10908 = vmatmul.mubr.msk.f32.gmra.mrb[10].mxu1 %vm1083_vm1, %v12361_v29  ;;  %10784 = vmatprep.mubr.msk.f32.mxu0 %vm1083_vm1, %v12452_v48  ;;  %v12905_v29 = vld [vmem:[%s12247_s17 + $0x52] sm:$0xff] }
  0x71   : > { %10910 = vmatprep.mubr.msk.f32.mxu1 %vm1083_vm1, %v12367_v31 }
  0x73   : > { %10785 = vmatmul.mubr.msk.f32.gmra.mrb[20].mxu0 %vm1083_vm1, %v12466_v50 }
  0x74   : > { %10911 = vmatmul.mubr.msk.f32.gmra.mrb[12].mxu1 %vm1083_vm1, %v12381_v33  ;;  %10787 = vmatprep.mubr.msk.f32.mxu0 %vm1083_vm1, %v12472_v52 }
  0x75   : > { %10913 = vmatprep.mubr.msk.f32.mxu1 %vm1083_vm1, %v12387_v35 }
  0x77   : > { %10788 = vmatmul.mubr.msk.f32.gmra.mrb[22].mxu0 %vm1083_vm1, %v12486_v54 }
  0x78   : > { %10914 = vmatmul.mubr.msk.f32.gmra.mrb[14].mxu1 %vm1083_vm1, %v12406_v39  ;;  %10790 = vmatprep.mubr.msk.f32.mxu0 %vm1083_vm1, %v12492_v56 }
  0x79   : > { %10916 = vmatprep.mubr.msk.f32.mxu1 %vm1083_vm1, %v12412_v41 }
  0x7b   : > { %10791 = vmatmul.mubr.msk.f32.gmra.mrb[24].mxu0 %vm1083_vm1, %v12506_v58 }
  0x7c   : > { %10917 = vmatmul.mubr.msk.f32.gmra.mrb[16].mxu1 %vm1083_vm1, %v12429_v43  ;;  %10793 = vmatprep.mubr.msk.f32.mxu0 %vm1083_vm1, %v12254_v5 }
  0x7d   : > { %10919 = vmatprep.mubr.msk.f32.mxu1 %vm1083_vm1, %v12435_v45 }
  0x7f   : > { %10794 = vmatmul.mubr.msk.f32.gmra.mrb[26].mxu0 %vm1083_vm1, %v12265_v8 }
  0x80   : > { %10920 = vmatmul.mubr.msk.f32.gmra.mrb[18].mxu1 %vm1083_vm1, %v12449_v47  ;;  %10796 = vmatprep.mubr.msk.f32.mxu0 %vm1083_vm1, %v12277_v11 }
  0x81   : > { %10922 = vmatprep.mubr.msk.f32.mxu1 %vm1083_vm1, %v12455_v49 }
  0x83   : > { %10797 = vmatmul.mubr.msk.f32.gmra.mrb[28].mxu0 %vm1083_vm1, %v12292_v16 }
  0x84   : > { %10923 = vmatmul.mubr.msk.f32.gmra.mrb[20].mxu1 %vm1083_vm1, %v12469_v51  ;;  %10799 = vmatprep.mubr.msk.f32.mxu0 %vm1083_vm1, %v12301_v18 }
  0x85   : > { %10925 = vmatprep.mubr.msk.f32.mxu1 %vm1083_vm1, %v12475_v53 }
  0x87   : > { %10800 = vmatmul.mubr.msk.f32.gmra.mrb[30].mxu0 %vm1083_vm1, %v12319_v21 }
  0x88   : > { %10926 = vmatmul.mubr.msk.f32.gmra.mrb[22].mxu1 %vm1083_vm1, %v12489_v55  ;;  %10804 = vmatprep.mubr.msk.f32.mxu0 %vm1083_vm1, %v12270_v10  ;;  %v14736_v10 = vld [vmem:[#allocation5_spill] sm:$0xff] }
  0x89   : > { %10928 = vmatprep.mubr.msk.f32.mxu1 %vm1083_vm1, %v12495_v57 }
  0x8b   : > { %10805 = vmatmul.mubr.msk.f32.vlgmr.msra.gmra.mrb[0].mxu0 %vm1083_vm1, %v12289_v15  ;;  %v12840_v15 = vld [vmem:[%s12247_s17 + $0x12] sm:$0xff] }
  0x8c   : > { %10929 = vmatmul.mubr.msk.f32.gmra.mrb[24].mxu1 %vm1083_vm1, %v12509_v59  ;;  %11003 = vmatpush3.msk.msra.mxu0 %vm1180_vm0, %v14734_v27 }
  0x8d   : > { %10807 = vmatprep.mubr.msk.f32.mxu0 %vm1083_vm1, %v12298_v17  ;;  %10931 = vmatprep.mubr.msk.f32.mxu1 %vm1083_vm1, %v12513_v61  ;;  %v12853_v17 = vld [vmem:[%s12247_s17 + $0x1a] sm:$0xff] }
  0x8e   : > { %11052 = vmatprep.subr.msk.mxu0 %vm1180_vm0, %v623_v25 }
  0x8f   : > { %10808 = vmatmul.mubr.msk.f32.gmra.mrb[2].mxu0 %vm1083_vm1, %v12316_v20  ;;  %v12857_v20 = vld [vmem:[%s12247_s17 + $0x22] sm:$0xff] }
  0x90   : > { %10932 = vmatmul.mubr.msk.f32.gmra.mrb[26].mxu1 %vm1083_vm1, %v12527_v0  ;;  %10810 = vmatprep.mubr.msk.f32.mxu0 %vm1083_vm1, %v12322_v22  ;;  %v12874_v22 = vld [vmem:[%s12247_s17 + $0x32] sm:$0xff] }
  0x91   : > { %10934 = vmatprep.mubr.msk.f32.mxu1 %vm1083_vm1, %v12531_v2 }
  0x93   : > { %10811 = vmatmul.mubr.msk.f32.gmra.mrb[4].mxu0 %vm1083_vm1, %v12338_v24  ;;  %v12888_v24 = vld [vmem:[%s12247_s17 + $0x3a] sm:$0xff] }
  0x94   : > { %10935 = vmatmul.mubr.msk.f32.gmra.mrb[28].mxu1 %vm1083_vm1, %v12542_v3  ;;  %10813 = vmatprep.mubr.msk.f32.mxu0 %vm1083_vm1, %v12344_v26  ;;  %v12891_v26 = vld [vmem:[%s12247_s17 + $0x42] sm:$0xff] }
  0x95   : > { %10937 = vmatprep.mubr.msk.f32.mxu1 %vm1083_vm1, %v12547_v9 }
  0x97   : > { %10814 = vmatmul.mubr.msk.f32.gmra.mrb[6].mxu0 %vm1083_vm1, %v12358_v28  ;;  %v12902_v28 = vld [vmem:[%s12247_s17 + $0x4a] sm:$0xff] }
  0x98   : > { %10938 = vmatmul.mubr.msk.f32.gmra.mrb[30].mxu1 %vm1083_vm1, %v12561_v4  ;;  %10816 = vmatprep.mubr.msk.f32.mxu0 %vm1083_vm1, %v12364_v30  ;;  %v12916_v30 = vld [vmem:[%s12247_s17 + $0x5a] sm:$0xff] }
  0x99   : > { %10940 = vmatprep.mubr.msk.f32.mxu1 %vm1083_vm1, %v12564_v6 }
  0x9b   : > { %10817 = vmatmul.mubr.msk.f32.gmra.mrb[8].mxu0 %vm1083_vm1, %v12378_v32  ;;  %v12930_v32 = vld [vmem:[%s12247_s17 + $0x6a] sm:$0xff] }
  0x9c   : > { %10941 = vmatmul.mubr.msk.f32.gmra.mrb[32].mxu1 %vm1083_vm1, %v12575_v7  ;;  %10819 = vmatprep.mubr.msk.f32.mxu0 %vm1083_vm1, %v12384_v34  ;;  %v14737_v34 = vld [vmem:[#allocation6_spill] sm:$0xff] }
  0x9d   : > { %10943 = vmatprep.mubr.msk.f32.mxu1 %vm1083_vm1, %v12578_v12 }
  0x9f   : > { %10820 = vmatmul.mubr.msk.f32.gmra.mrb[10].mxu0 %vm1083_vm1, %v12403_v38  ;;  %v12948_v38 = vld [vmem:[%s12247_s17 + $0x82] sm:$0xff] }
  0xa0   : > { %10944 = vmatmul.mubr.msk.f32.gmra.mrb[34].mxu1 %vm1083_vm1, %v12589_v13  ;;  %10822 = vmatprep.mubr.msk.f32.mxu0 %vm1083_vm1, %v12409_v40  ;;  %v12959_v40 = vld [vmem:[%s12247_s17 + $0x8a] sm:$0xff] }
  0xa1   : > { %10946 = vmatprep.mubr.msk.f32.mxu1 %vm1083_vm1, %v12592_v14 }
  0xa3   : > { %10823 = vmatmul.mubr.msk.f32.gmra.mrb[12].mxu0 %vm1083_vm1, %v12426_v42  ;;  %v12973_v42 = vld [vmem:[%s12247_s17 + $0xa2] sm:$0xff] }
  0xa4   : > { %10947 = vmatmul.mubr.msk.f32.gmra.mrb[36].mxu1 %vm1083_vm1, %v12603_v19  ;;  %10825 = vmatprep.mubr.msk.f32.mxu0 %vm1083_vm1, %v12432_v44  ;;  %v12983_v44 = vld [vmem:[%s12247_s17 + $0xb2] sm:$0xff] }
  0xa5   : > { %10949 = vmatprep.mubr.msk.f32.mxu1 %vm1083_vm1, %v12606_v60 }
  0xa7   : > { %10826 = vmatmul.mubr.msk.f32.gmra.mrb[14].mxu0 %vm1083_vm1, %v12446_v46  ;;  %v12993_v46 = vld [vmem:[%s12247_s17 + $0xc2] sm:$0xff] }
  0xa8   : > { %10950 = vmatmul.mubr.msk.f32.gmra.mrb[38].mxu1 %vm1083_vm1, %v12617_v63  ;;  %10828 = vmatprep.mubr.msk.f32.mxu0 %vm1083_vm1, %v12452_v48  ;;  %v13002_v48 = vld [vmem:[%s12247_s17 + $0xca] sm:$0xff] }
  0xa9   : > { %10954 = vmatprep.mubr.msk.f32.mxu1 %vm1083_vm1, %v12367_v31  ;;  %v12919_v31 = vld [vmem:[%s12247_s17 + $0x62] sm:$0xff] }
  0xab   : > { %10829 = vmatmul.mubr.msk.f32.gmra.mrb[16].mxu0 %vm1083_vm1, %v12466_v50 }
  0xac   : > { %10955 = vmatmul.mubr.msk.f32.vlgmr.msra.gmra.mrb[8].mxu1 %vm1083_vm1, %v12381_v33  ;;  %10831 = vmatprep.mubr.msk.f32.mxu0 %vm1083_vm1, %v12472_v52  ;;  %v12933_v33 = vld [vmem:[%s12247_s17 + $0x72] sm:$0xff]  ;;  %v13016_v52 = vld [vmem:[%s12247_s17 + $0xda] sm:$0xff] }
  0xad   : > { %10957 = vmatprep.mubr.msk.f32.mxu1 %vm1083_vm1, %v12387_v35  ;;  %v12944_v35 = vld [vmem:[%s12247_s17 + $0x7a] sm:$0xff] }
  0xaf   : > { %10832 = vmatmul.mubr.msk.f32.gmra.mrb[18].mxu0 %vm1083_vm1, %v12486_v54  ;;  %v13021_v54 = vld [vmem:[%s12247_s17 + $0xe2] sm:$0xff] }
  0xb0   : > { %10958 = vmatmul.mubr.msk.f32.gmra.mrb[10].mxu1 %vm1083_vm1, %v12406_v39  ;;  %10834 = vmatprep.mubr.msk.f32.mxu0 %vm1083_vm1, %v12492_v56  ;;  %v2750_v39 = vld [vmem:[%s12247_s17 + $0x118] sm:$0xff] }
  0xb1   : > { %10960 = vmatprep.mubr.msk.f32.mxu1 %vm1083_vm1, %v12412_v41  ;;  %v12962_v41 = vld [vmem:[%s12247_s17 + $0x92] sm:$0xff] }
  0xb3   : > { %10835 = vmatmul.mubr.msk.f32.gmra.mrb[20].mxu0 %vm1083_vm1, %v12506_v58  ;;  %v13034_v58 = vld [vmem:[%s12247_s17 + $0xea] sm:$0xff] }
  0xb4   : > { %10961 = vmatmul.mubr.msk.f32.gmra.mrb[12].mxu1 %vm1083_vm1, %v12429_v43  ;;  %10837 = vmatprep.mubr.msk.f32.mxu0 %vm1083_vm1, %v12254_v5  ;;  %v14735_v5 = vld [vmem:[#allocation4_spill] sm:$0xff]  ;;  %v12980_v43 = vld [vmem:[%s12247_s17 + $0xaa] sm:$0xff] }
  0xb5   : > { %10963 = vmatprep.mubr.msk.f32.mxu1 %vm1083_vm1, %v12435_v45  ;;  %v12990_v45 = vld [vmem:[%s12247_s17 + $0xba] sm:$0xff] }
  0xb7   : > { %10838 = vmatmul.mubr.msk.f32.gmra.mrb[22].mxu0 %vm1083_vm1, %v12265_v8  ;;  %v1673_v8 = vld [vmem:[%s12247_s17 + $0x111] sm:$0xff] }
  0xb8   : > { %10964 = vmatmul.mubr.msk.f32.gmra.mrb[14].mxu1 %vm1083_vm1, %v12449_v47  ;;  %10840 = vmatprep.mubr.msk.f32.mxu0 %vm1083_vm1, %v12277_v11  ;;  %v1674_v11 = vld [vmem:[%s12247_s17 + $0x119] sm:$0xff] }
  0xb9   : > { %10966 = vmatprep.mubr.msk.f32.mxu1 %vm1083_vm1, %v12455_v49  ;;  %v13005_v49 = vld [vmem:[%s12247_s17 + $0xd2] sm:$0xff] }
  0xbb   : > { %10841 = vmatmul.mubr.msk.f32.gmra.mrb[24].mxu0 %vm1083_vm1, %v12292_v16  ;;  %v12843_v16 = vld [vmem:[%s12239_s13 + $0x10] sm:$0x3]  ;;  %s12042_s13 = smul.u32 144, %s14820_s22 }
  0xbc   : > { %10967 = vmatmul.mubr.msk.f32.gmra.mrb[16].mxu1 %vm1083_vm1, %v12469_v51  ;;  %10843 = vmatprep.mubr.msk.f32.mxu0 %vm1083_vm1, %v12301_v18  ;;  %v629_v18 = vunpack.c.l.bf16 %v12843_v16 }
  0xbd   : > { %10969 = vmatprep.mubr.msk.f32.mxu1 %vm1083_vm1, %v12475_v53  ;;  %s13540_s16 = scalar_lea.vmem %s14698_s4, %s12042_s13 }
  0xbf   : > { %10844 = vmatmul.mubr.msk.f32.gmra.mrb[26].mxu0 %vm1083_vm1, %v12319_v21  ;;  %v12869_v21 = vld [vmem:[%s12247_s17 + $0x2a] sm:$0xff] }
  0xc0   : > { %10970 = vmatmul.mubr.msk.f32.gmra.mrb[18].mxu1 %vm1083_vm1, %v12489_v55  ;;  %10846 = vmatprep.mubr.msk.f32.mxu0 %vm1083_vm1, %v14735_v5 }
  0xc1   : > { %10972 = vmatprep.mubr.msk.f32.mxu1 %vm1083_vm1, %v12495_v57 }
  0xc3   : > { %10847 = vmatmul.mubr.msk.f32.gmra.mrb[28].mxu0 %vm1083_vm1, %v14736_v10 }
  0xc4   : > { %10973 = vmatmul.mubr.msk.f32.gmra.mrb[20].mxu1 %vm1083_vm1, %v12509_v59  ;;  %10849 = vmatprep.mubr.msk.f32.mxu0 %vm1083_vm1, %v1673_v8 }
  0xc5   : > { %10975 = vmatprep.mubr.msk.f32.mxu1 %vm1083_vm1, %v12513_v61  ;;  %v13039_v61 = vld [vmem:[%s12247_s17 + $0xf2] sm:$0xff] }
  0xc7   : > { %10850 = vmatmul.mubr.msk.f32.gmra.mrb[30].mxu0 %vm1083_vm1, %v1674_v11 }
  0xc8   : > { %10976 = vmatmul.mubr.msk.f32.gmra.mrb[22].mxu1 %vm1083_vm1, %v12527_v0  ;;  %11004 = vmatprep.mubr.msk.f32.mxu0 %vm1083_vm1, %v12840_v15  ;;  %v13049_v0 = vld [vmem:[%s12247_s17 + $0x102] sm:$0xff] }
  0xc9   : > { %10978 = vmatprep.mubr.msk.f32.mxu1 %vm1083_vm1, %v12531_v2  ;;  %v3267_v2 = vld [vmem:[%s12247_s17 + $0x2] sm:$0xff] }
  0xcb   : > { %11005 = vmatmul.mubr.msk.f32.vlgmr.msra.gmra.mrb[32].mxu0 %vm1083_vm1, %v12853_v17 }
  0xcc   : > { %10979 = vmatmul.mubr.msk.f32.gmra.mrb[24].mxu1 %vm1083_vm1, %v12542_v3  ;;  %11053 = vmatpush3.msk.msra.mxu0 %vm1180_vm0, %v623_v25  ;;  %v3268_v3 = vld [vmem:[%s12247_s17 + $0xa] sm:$0xff] }
  0xcd   : > { %10981 = vmatprep.mubr.msk.f32.mxu1 %vm1083_vm1, %v12547_v9  ;;  %11007 = vmatprep.mubr.msk.f32.mxu0 %vm1083_vm1, %v12857_v20 }
  0xce   : > { %11102 = vmatprep.subr.msk.mxu0 %vm1180_vm0, %v629_v18 }
  0xcf   : > { %11008 = vmatmul.mubr.msk.f32.gmra.mrb[34].mxu0 %vm1083_vm1, %v12869_v21 }
  0xd0   : > { %10982 = vmatmul.mubr.msk.f32.gmra.mrb[26].mxu1 %vm1083_vm1, %v12561_v4  ;;  %11010 = vmatprep.mubr.msk.f32.mxu0 %vm1083_vm1, %v12874_v22 }
  0xd1   : > { %10984 = vmatprep.mubr.msk.f32.mxu1 %vm1083_vm1, %v12564_v6 }
  0xd3   : > { %11011 = vmatmul.mubr.msk.f32.gmra.mrb[36].mxu0 %vm1083_vm1, %v12888_v24 }
  0xd4   : > { %10985 = vmatmul.mubr.msk.f32.gmra.mrb[28].mxu1 %vm1083_vm1, %v12575_v7  ;;  %11013 = vmatprep.mubr.msk.f32.mxu0 %vm1083_vm1, %v12891_v26 }
  0xd5   : > { %10987 = vmatprep.mubr.msk.f32.mxu1 %vm1083_vm1, %v12578_v12 }
  0xd7   : > { %11014 = vmatmul.mubr.msk.f32.gmra.mrb[38].mxu0 %vm1083_vm1, %v12902_v28 }
  0xd8   : > { %10988 = vmatmul.mubr.msk.f32.gmra.mrb[30].mxu1 %vm1083_vm1, %v12589_v13  ;;  %11016 = vmatprep.mubr.msk.f32.mxu0 %vm1083_vm1, %v12905_v29 }
  0xd9   : > { %10990 = vmatprep.mubr.msk.f32.mxu1 %vm1083_vm1, %v12592_v14 }
  0xdb   : > { %11017 = vmatmul.mubr.msk.f32.gmra.mrb[40].mxu0 %vm1083_vm1, %v12916_v30 }
  0xdc   : > { %10991 = vmatmul.mubr.msk.f32.gmra.mrb[32].mxu1 %vm1083_vm1, %v12603_v19  ;;  %11019 = vmatprep.mubr.msk.f32.mxu0 %vm1083_vm1, %v12919_v31 }
  0xdd   : > { %10993 = vmatprep.mubr.msk.f32.mxu1 %vm1083_vm1, %v12606_v60 }
  0xdf   : > { %11020 = vmatmul.mubr.msk.f32.gmra.mrb[42].mxu0 %vm1083_vm1, %v12930_v32 }
  0xe0   : > { %10994 = vmatmul.mubr.msk.f32.gmra.mrb[34].mxu1 %vm1083_vm1, %v12617_v63  ;;  %11022 = vmatprep.mubr.msk.f32.mxu0 %vm1083_vm1, %v12933_v33  ;;  %v632_v63 = vlaneseq }
  0xe1   : > { %10996 = vmatprep.mubr.msk.f32.mxu1 %vm1083_vm1, %v14737_v34 }
  0xe2   : > { %v13185_v27 = vshrl.u32 %v632_v63, 7 }
  0xe3   : > { %11023 = vmatmul.mubr.msk.f32.gmra.mrb[44].mxu0 %vm1083_vm1, %v12944_v35 }
  0xe4   : > { %10997 = vmatmul.mubr.msk.f32.gmra.mrb[36].mxu1 %vm1083_vm1, %v12631_v37  ;;  %11025 = vmatprep.mubr.msk.f32.mxu0 %vm1083_vm1, %v12948_v38  ;;  %v12970_v37 = vld [vmem:[%s12247_s17 + $0x9a] sm:$0xff]  ;;  %14738 = vst [vmem:[#allocation4_spill] sm:$0xff] %v13185_v27  ;;  %v669_v10 = vand.u32 15, %v13185_v27  ;;  %v13197_v11 = vadd.s32 16, %v13185_v27 }
  0xe5   : > { %10999 = vmatprep.mubr.msk.f32.mxu1 %vm1083_vm1, %v2749_v36 }
  0xe6   : > { %14739 = vst [vmem:[#allocation5_spill] sm:$0xff] %v13197_v11  ;;  %vm2031_vm2 = vcmp.gt.s32.totalorder %v669_v10, 0 }
  0xe7   : > { %11026 = vmatmul.mubr.msk.f32.gmra.mrb[46].mxu0 %vm1083_vm1, %v12959_v40 }
  0xe8   : > { %11000 = vmatmul.mubr.msk.f32.gmra.mrb[38].mxu1 %vm1083_vm1, %v2750_v39  ;;  %11028 = vmatprep.mubr.msk.f32.mxu0 %vm1083_vm1, %v12962_v41 }
  0xeb   : > { %11029 = vmatmul.mubr.msk.f32.gmra.mrb[48].mxu0 %vm1083_vm1, %v12970_v37 }
  0xec   : > { %11031 = vmatprep.mubr.msk.f32.mxu0 %vm1083_vm1, %v12973_v42 }
  0xef   : > { %11032 = vmatmul.mubr.msk.f32.gmra.mrb[50].mxu0 %vm1083_vm1, %v12980_v43  ;;  %v12997_v47 = vpop.f32.mrb[0].mxu1 }
  0xf0   : > { %11034 = vmatprep.mubr.msk.f32.mxu0 %vm1083_vm1, %v12983_v44  ;;  %v13007_v50 = vpop.f32.mrb[1].mxu1 }
  0xf3   : > { %11035 = vmatmul.mubr.msk.f32.gmra.mrb[52].mxu0 %vm1083_vm1, %v12990_v45  ;;  %v13011_v51 = vpop.f32.mrb[2].mxu1 }
  0xf4   : > { %11037 = vmatprep.mubr.msk.f32.mxu0 %vm1083_vm1, %v12993_v46  ;;  %v13018_v53 = vpop.f32.mrb[3].mxu1 }
  0xf7   : > { %11038 = vmatmul.mubr.msk.f32.gmra.mrb[54].mxu0 %vm1083_vm1, %v13002_v48  ;;  %v13023_v55 = vpop.f32.mrb[4].mxu1 }
  0xf8   : > { %11040 = vmatprep.mubr.msk.f32.mxu0 %vm1083_vm1, %v13005_v49  ;;  %v13025_v56 = vpop.f32.mrb[5].mxu1 }
  0xfb   : > { %11041 = vmatmul.mubr.msk.f32.gmra.mrb[56].mxu0 %vm1083_vm1, %v13016_v52  ;;  %v13029_v57 = vpop.f32.mrb[6].mxu1 }
  0xfc   : > { %11043 = vmatprep.mubr.msk.f32.mxu0 %vm1083_vm1, %v13021_v54  ;;  %v13036_v59 = vpop.f32.mrb[7].mxu1 }
  0xff   : > { %11044 = vmatmul.mubr.msk.f32.gmra.mrb[58].mxu0 %vm1083_vm1, %v13034_v58 }
 0x100   : > { %11046 = vmatprep.mubr.msk.f32.mxu0 %vm1083_vm1, %v13039_v61 }
 0x103   : > { %11047 = vmatmul.mubr.msk.f32.gmra.mrb[60].mxu0 %vm1083_vm1, %v13046_v62 }
 0x104   : > { %11049 = vmatprep.mubr.msk.f32.mxu0 %vm1083_vm1, %v13049_v0 }
 0x107   : > { %11050 = vmatmul.mubr.msk.f32.gmra.mrb[62].mxu0 %vm1083_vm1, %v13056_v1 }
 0x108   : > { %11054 = vmatprep.mubr.msk.f32.mxu0 %vm1083_vm1, %v3267_v2 }
 0x10b   : > { %11055 = vmatmul.mubr.msk.f32.vlgmr.msra.gmra.mrb[32].mxu0 %vm1083_vm1, %v3268_v3 }
 0x10c   : > { %11103 = vmatpush3.msk.msra.mxu0 %vm1180_vm0, %v629_v18  ;;  %11057 = vmatprep.mubr.msk.f32.mxu0 %vm1083_vm1, %v12840_v15  ;;  %v13209_v18 = vadd.s32 32, %v13185_v27 }
 0x10e   : > { %14740 = vst [vmem:[#allocation6_spill] sm:$0xff] %v13209_v18 }
 0x10f   : > { %11058 = vmatmul.mubr.msk.f32.gmra.mrb[34].mxu0 %vm1083_vm1, %v12853_v17  ;;  %v683_v17 = vand.u32 15, %v13197_v11 }
 0x110   : > { %11060 = vmatprep.mubr.msk.f32.mxu0 %vm1083_vm1, %v12857_v20 }
 0x111   : > { %vm2033_vm3 = vcmp.gt.s32.totalorder %v683_v17, 0 }
 0x113   : > { %11061 = vmatmul.mubr.msk.f32.gmra.mrb[36].mxu0 %vm1083_vm1, %v12869_v21 }
 0x114   : > { %11063 = vmatprep.mubr.msk.f32.mxu0 %vm1083_vm1, %v12874_v22 }
 0x117   : > { %11064 = vmatmul.mubr.msk.f32.gmra.mrb[38].mxu0 %vm1083_vm1, %v12888_v24 }
 0x118   : > { %11066 = vmatprep.mubr.msk.f32.mxu0 %vm1083_vm1, %v12891_v26 }
 0x11b   : > { %11067 = vmatmul.mubr.msk.f32.gmra.mrb[40].mxu0 %vm1083_vm1, %v12902_v28 }
 0x11c   : > { %11069 = vmatprep.mubr.msk.f32.mxu0 %vm1083_vm1, %v12905_v29 }
 0x11f   : > { %11070 = vmatmul.mubr.msk.f32.gmra.mrb[42].mxu0 %vm1083_vm1, %v12916_v30 }
 0x120   : > { %11072 = vmatprep.mubr.msk.f32.mxu0 %vm1083_vm1, %v12919_v31 }
 0x123   : > { %11073 = vmatmul.mubr.msk.f32.gmra.mrb[44].mxu0 %vm1083_vm1, %v12930_v32 }
 0x124   : > { %11075 = vmatprep.mubr.msk.f32.mxu0 %vm1083_vm1, %v12933_v33 }
 0x127   : > { %11076 = vmatmul.mubr.msk.f32.gmra.mrb[46].mxu0 %vm1083_vm1, %v12944_v35 }
 0x128   : > { %11078 = vmatprep.mubr.msk.f32.mxu0 %vm1083_vm1, %v12948_v38 }
 0x12b   : > { %11079 = vmatmul.mubr.msk.f32.gmra.mrb[48].mxu0 %vm1083_vm1, %v12959_v40 }
 0x12c   : > { %11081 = vmatprep.mubr.msk.f32.mxu0 %vm1083_vm1, %v12962_v41 }
 0x12f   : > { %11082 = vmatmul.mubr.msk.f32.gmra.mrb[50].mxu0 %vm1083_vm1, %v12970_v37 }
 0x130   : > { %11084 = vmatprep.mubr.msk.f32.mxu0 %vm1083_vm1, %v12973_v42 }
 0x133   : > { %11085 = vmatmul.mubr.msk.f32.gmra.mrb[52].mxu0 %vm1083_vm1, %v12980_v43 }
 0x134   : > { %11087 = vmatprep.mubr.msk.f32.mxu0 %vm1083_vm1, %v12983_v44 }
 0x137   : > { %11088 = vmatmul.mubr.msk.f32.gmra.mrb[54].mxu0 %vm1083_vm1, %v12990_v45 }
 0x138   : > { %11090 = vmatprep.mubr.msk.f32.mxu0 %vm1083_vm1, %v12993_v46 }
 0x13b   : > { %11091 = vmatmul.mubr.msk.f32.gmra.mrb[56].mxu0 %vm1083_vm1, %v13002_v48 }
 0x13c   : > { %11093 = vmatprep.mubr.msk.f32.mxu0 %vm1083_vm1, %v13005_v49 }
 0x13f   : > { %11094 = vmatmul.mubr.msk.f32.gmra.mrb[58].mxu0 %vm1083_vm1, %v13016_v52 }
 0x140   : > { %11096 = vmatprep.mubr.msk.f32.mxu0 %vm1083_vm1, %v13021_v54 }
 0x143   : > { %11097 = vmatmul.mubr.msk.f32.gmra.mrb[60].mxu0 %vm1083_vm1, %v13034_v58 }
 0x144   : > { %11099 = vmatprep.mubr.msk.f32.mxu0 %vm1083_vm1, %v13039_v61 }
 0x147   : > { %11100 = vmatmul.mubr.msk.f32.gmra.mrb[62].mxu0 %vm1083_vm1, %v13046_v62 }
 0x148   : > { %11104 = vmatprep.mubr.msk.f32.mxu0 %vm1083_vm1, %v12857_v20 }
 0x14b   : > { %11105 = vmatmul.mubr.msk.f32.vlgmr.msra.gmra.mrb[32].mxu0 %vm1083_vm1, %v12869_v21  ;;  %v14714_v21 = vmov 0.0  }
 0x14c   : > { %11107 = vmatprep.mubr.msk.f32.mxu0 %vm1083_vm1, %v12874_v22  ;;  %v9533_v22 = vsel %vm2031_vm2, 1.0, %v14714_v21  ;;  %v9534_v34 = vsel %vm2033_vm3, 1.0, %v14714_v21  ;;  %6085 = vst.msk [vmem:[#allocation2] sm:$0xff] %vm6084_vm13, %v14714_v21  ;;  %6231 = vst.msk [vmem:[#allocation2 + $0x49] sm:$0xff] %vm6084_vm13, %v14714_v21 }
 0x14f   : > { %11108 = vmatmul.mubr.msk.f32.gmra.mrb[34].mxu0 %vm1083_vm1, %v12888_v24 }
 0x150   : > { %11110 = vmatprep.mubr.msk.f32.mxu0 %vm1083_vm1, %v12891_v26 }
 0x153   : > { %11111 = vmatmul.mubr.msk.f32.gmra.mrb[36].mxu0 %vm1083_vm1, %v12902_v28  ;;  %v697_v28 = vand.u32 15, %v13209_v18 }
 0x154   : > { %11113 = vmatprep.mubr.msk.f32.mxu0 %vm1083_vm1, %v12905_v29  ;;  %v13222_v29 = vadd.s32 48, %v13185_v27 }
 0x155   : > { %vm2035_vm4 = vcmp.gt.s32.totalorder %v697_v28, 0 }
 0x156   : > { %14741 = vst [vmem:[#allocation7_spill] sm:$0xff] %v13222_v29  ;;  %v711_v39 = vand.u32 15, %v13222_v29 }
 0x157   : > { %11114 = vmatmul.mubr.msk.f32.gmra.mrb[38].mxu0 %vm1083_vm1, %v12916_v30 }
 0x158   : > { %11116 = vmatprep.mubr.msk.f32.mxu0 %vm1083_vm1, %v12919_v31  ;;  %vm2037_vm5 = vcmp.gt.s32.totalorder %v711_v39, 0 }
 0x159   : > { %v9536_v2 = vsel %vm2037_vm5, 1.0, %v14714_v21 }
 0x15b   : > { %11117 = vmatmul.mubr.msk.f32.gmra.mrb[40].mxu0 %vm1083_vm1, %v12930_v32 }
 0x15c   : > { %11119 = vmatprep.mubr.msk.f32.mxu0 %vm1083_vm1, %v12933_v33 }
 0x15e   : > { %v10806_v9 = vpop.f32.mrb[0].mxu0 }
 0x15f   : > { %v1840_v4 = vpop.f32.mrb[1].mxu0  ;;  %11120 = vmatmul.mubr.msk.f32.gmra.mrb[42].mxu0 %vm1083_vm1, %v12944_v35  ;;  %v3889_v35 = vld [vmem:[%s12247_s17 + $0x112] sm:$0xff] }
 0x160   : > { %11122 = vmatprep.mubr.msk.f32.mxu0 %vm1083_vm1, %v12948_v38 }
 0x162   : > { %v10809_v6 = vpop.f32.mrb[2].mxu0 }
 0x163   : > { %v13153_v7 = vpop.f32.mrb[3].mxu0  ;;  %11123 = vmatmul.mubr.msk.f32.gmra.mrb[44].mxu0 %vm1083_vm1, %v12959_v40  ;;  %v641_v40 = vadd.s32 64, %v13185_v27 }
 0x164   : > { %11125 = vmatprep.mubr.msk.f32.mxu0 %vm1083_vm1, %v12962_v41 }
 0x166   : > { %v13159_v12 = vpop.f32.mrb[4].mxu0 }
 0x167   : > { %v13161_v13 = vpop.f32.mrb[5].mxu0  ;;  %11126 = vmatmul.mubr.msk.f32.gmra.mrb[46].mxu0 %vm1083_vm1, %v12970_v37 }
 0x168   : > { %11128 = vmatprep.mubr.msk.f32.mxu0 %vm1083_vm1, %v12973_v42 }
 0x16a   : > { %v13167_v14 = vpop.f32.mrb[6].mxu0 }
 0x16b   : > { %v13169_v19 = vpop.f32.mrb[7].mxu0  ;;  %11129 = vmatmul.mubr.msk.f32.gmra.mrb[48].mxu0 %vm1083_vm1, %v12980_v43 }
 0x16c   : > { %11131 = vmatprep.mubr.msk.f32.mxu0 %vm1083_vm1, %v12983_v44 }
 0x16e   : > { %v13175_v60 = vpop.f32.mrb[8].mxu0 }
 0x16f   : > { %v13177_v23 = vpop.f32.mrb[9].mxu0  ;;  %11132 = vmatmul.mubr.msk.f32.gmra.mrb[50].mxu0 %vm1083_vm1, %v12990_v45  ;;  %v3890_v45 = vld [vmem:[%s12247_s17 + $0x11a] sm:$0xff]  ;;  %s12043_s17 = smul.u32 288, %s14820_s22 }
 0x170   : > { %11134 = vmatprep.mubr.msk.f32.mxu0 %vm1083_vm1, %v12993_v46  ;;  %v9535_v46 = vsel %vm2035_vm4, 1.0, %v14714_v21 }
 0x172   : > { %v13183_v25 = vpop.f32.mrb[10].mxu0 }
 0x173   : > { %v13187_v5 = vpop.f32.mrb[11].mxu0  ;;  %11135 = vmatmul.mubr.msk.f32.gmra.mrb[52].mxu0 %vm1083_vm1, %v13002_v48 }
 0x174   : > { %11137 = vmatprep.mubr.msk.f32.mxu0 %vm1083_vm1, %v13005_v49 }
 0x176   : > { %v13193_v8 = vpop.f32.mrb[12].mxu0 }
 0x177   : > { %v13199_v15 = vpop.f32.mrb[13].mxu0  ;;  %11138 = vmatmul.mubr.msk.f32.gmra.mrb[54].mxu0 %vm1083_vm1, %v13016_v52  ;;  %v725_v52 = vand.u32 15, %v641_v40 }
 0x178   : > { %11140 = vmatprep.mubr.msk.f32.mxu0 %vm1083_vm1, %v13021_v54  ;;  %v643_v54 = vadd.s32 80, %v13185_v27 }
 0x179   : > { %vm2039_vm6 = vcmp.gt.s32.totalorder %v725_v52, 0 }
 0x17a   : > { %v13205_v16 = vpop.f32.mrb[14].mxu0 }
 0x17b   : > { %v13211_v20 = vpop.f32.mrb[15].mxu0  ;;  %11141 = vmatmul.mubr.msk.f32.gmra.mrb[56].mxu0 %vm1083_vm1, %v13034_v58 }
 0x17c   : > { %11143 = vmatprep.mubr.msk.f32.mxu0 %vm1083_vm1, %v13039_v61 }
 0x17e   : > { %v13218_v24 = vpop.f32.mrb[16].mxu0 }
 0x17f   : > { %v10956_v26 = vpop.f32.mrb[8].mxu1  ;;  %v13226_v31 = vpop.f32.mrb[17].mxu0  ;;  %11144 = vmatmul.mubr.msk.f32.gmra.mrb[58].mxu0 %vm1083_vm1, %v13046_v62 }
 0x180   : > { %v13224_v30 = vadd.f32 %v10956_v26, %v10806_v9  ;;  %v2916_v32 = vpop.f32.mrb[9].mxu1  ;;  %11146 = vmatprep.mubr.msk.f32.mxu0 %vm1083_vm1, %v13049_v0 }
 0x181   : > { %v3107_v33 = vmul.f32 %v9533_v22, %v2916_v32  ;;  %v9537_v22 = vsel %vm2039_vm6, 1.0, %v14714_v21  ;;  %vm5123_vm6 = vcmask 254976  }
 0x182   : > { %v13234_v36 = vpop.f32.mrb[18].mxu0 }
 0x183   : > { %v10959_v38 = vpop.f32.mrb[10].mxu1  ;;  %v13238_v41 = vadd.f32 %v3107_v33, %v1840_v4  ;;  %v13242_v42 = vpop.f32.mrb[19].mxu0  ;;  %11147 = vmatmul.mubr.msk.f32.gmra.mrb[60].mxu0 %vm1083_vm1, %v13056_v1  ;;  %v739_v4 = vand.u32 15, %v643_v54  ;;  %v647_v33 = vadd.s32 112, %v13185_v27 }
 0x184   : > { %v13240_v37 = vadd.f32 %v10959_v38, %v10809_v6  ;;  %v2926_v43 = vpop.f32.mrb[11].mxu1  ;;  %11149 = vmatprep.mubr.msk.f32.mxu0 %vm1083_vm1, %v3889_v35  ;;  %v645_v6 = vadd.s32 96, %v13185_v27 }
 0x185   : > { %v3109_v44 = vmul.f32 %v9534_v34, %v2926_v43  ;;  %vm2041_vm7 = vcmp.gt.s32.totalorder %v739_v4, 0 }
 0x186   : > { %v13249_v48 = vpop.f32.mrb[20].mxu0  ;;  %v753_v32 = vand.u32 15, %v645_v6  ;;  %v9538_v43 = vsel %vm2041_vm7, 1.0, %v14714_v21  ;;  %v649_v6 = vadd.s32 128, %v13185_v27 }
 0x187   : > { %v10962_v49 = vpop.f32.mrb[12].mxu1  ;;  %v13253_v58 = vadd.f32 %v3109_v44, %v13153_v7  ;;  %v13258_v62 = vpop.f32.mrb[21].mxu0  ;;  %11150 = vmatmul.mubr.msk.f32.gmra.mrb[62].mxu0 %vm1083_vm1, %v3890_v45 }
 0x188   : > { %v13256_v61 = vadd.f32 %v10962_v49, %v13159_v12  ;;  %v2936_v0 = vpop.f32.mrb[13].mxu1  ;;  %vm2043_vm8 = vcmp.gt.s32.totalorder %v753_v32, 0 }
 0x189   : > { %v3111_v1 = vmul.f32 %v9535_v46, %v2936_v0  ;;  %v767_v46 = vand.u32 15, %v647_v33  ;;  %v9539_v0 = vsel %vm2043_vm8, 1.0, %v14714_v21  ;;  %v781_v33 = vand.u32 15, %v649_v6 }
 0x18a   : > { %v13262_v3 = vpop.f32.mrb[22].mxu0 }
 0x18b   : > { %v10965_v9 = vpop.f32.mrb[14].mxu1  ;;  %v13266_v7 = vadd.f32 %v3111_v1, %v13161_v13  ;;  %v13271_v63 = vpop.f32.mrb[23].mxu0  ;;  %vm2045_vm9 = vcmp.gt.s32.totalorder %v767_v46, 0  ;;  %vm2047_vm10 = vcmp.gt.s32.totalorder %v781_v33, 0 }
 0x18c   : > { %v13269_v12 = vadd.f32 %v10965_v9, %v13167_v14  ;;  %v2946_v10 = vpop.f32.mrb[15].mxu1 }
 0x18d   : > { %v3113_v17 = vmul.f32 %v9536_v2, %v2946_v10 }
 0x18e   : > { %v10842_v26 = vpop.f32.mrb[24].mxu0 }
 0x18f   : > { %v10968_v28 = vpop.f32.mrb[16].mxu1  ;;  %v13276_v34 = vadd.f32 %v3113_v17, %v13169_v19  ;;  %v11788_v13 = vadd.f32 %v10842_v26, %v12997_v47  ;;  %v1960_v35 = vpop.f32.mrb[25].mxu0  ;;  %v9540_v17 = vsel %vm2045_vm9, 1.0, %v14714_v21 }
 0x190   : > { %v13280_v14 = vadd.f32 %v10968_v28, %v13175_v60  ;;  %v2956_v38 = vpop.f32.mrb[17].mxu1  ;;  %v13283_v39 = vadd.f32 %v1960_v35, %v13007_v50 }
 0x191   : > { %v3115_v40 = vmul.f32 %v9537_v22, %v2956_v38 }
 0x192   : > { %v10845_v44 = vpop.f32.mrb[26].mxu0 }
 0x193   : > { %v10971_v45 = vpop.f32.mrb[18].mxu1  ;;  %v13287_v19 = vadd.f32 %v3115_v40, %v13177_v23  ;;  %v11790_v47 = vadd.f32 %v10845_v44, %v13011_v51  ;;  %v1970_v49 = vpop.f32.mrb[27].mxu0 }
 0x194   : > { %v13291_v60 = vadd.f32 %v10971_v45, %v13183_v25  ;;  %v2966_v52 = vpop.f32.mrb[19].mxu1  ;;  %v13294_v50 = vadd.f32 %v1970_v49, %v13018_v53 }
 0x195   : > { %v3117_v54 = vmul.f32 %v9538_v43, %v2966_v52 }
 0x196   : > { %v10848_v1 = vpop.f32.mrb[28].mxu0 }
 0x197   : > { %v10974_v2 = vpop.f32.mrb[20].mxu1  ;;  %v13298_v9 = vadd.f32 %v3117_v54, %v13187_v5  ;;  %v11792_v23 = vadd.f32 %v10848_v1, %v13023_v55  ;;  %v1980_v25 = vpop.f32.mrb[29].mxu0  ;;  %v651_v54 = vadd.s32 144, %v13185_v27 }
 0x198   : > { %v13302_v51 = vadd.f32 %v10974_v2, %v13193_v8  ;;  %v2976_v4 = vpop.f32.mrb[21].mxu1  ;;  %v13306_v53 = vadd.f32 %v1980_v25, %v13025_v56 }
 0x199   : > { %v3119_v10 = vmul.f32 %v9539_v0, %v2976_v4 }
 0x19a   : > { %14742 = vst [vmem:[#allocation8_spill] sm:$0xff] %v13306_v53  ;;  %v10851_v22 = vpop.f32.mrb[30].mxu0 }
 0x19b   : > { %v10977_v26 = vpop.f32.mrb[22].mxu1  ;;  %v13310_v5 = vadd.f32 %v3119_v10, %v13199_v15  ;;  %v11794_v55 = vadd.f32 %v10851_v22, %v13029_v57  ;;  %v1990_v28 = vpop.f32.mrb[31].mxu0  ;;  %v9541_v57 = vsel %vm2047_vm10, 1.0, %v14714_v21 }
 0x19c   : > { %v13314_v8 = vadd.f32 %v10977_v26, %v13205_v16  ;;  %v2986_v32 = vpop.f32.mrb[23].mxu1  ;;  %v13317_v35 = vadd.f32 %v1990_v28, %v13036_v59 }
 0x19d   : > { %v3121_v56 = vmul.f32 %v9540_v17, %v2986_v32 }
 0x19e   : > { %14743 = vst [vmem:[#allocation9_spill] sm:$0xff] %v13314_v8  ;;  %14744 = vst [vmem:[#allocation10_spill] sm:$0xff] %v13317_v35 }
 0x19f   : > { %v10980_v38 = vpop.f32.mrb[24].mxu1  ;;  %v13320_v40 = vadd.f32 %v3121_v56, %v13211_v20 }
 0x1a0   : > { %v13323_v43 = vadd.f32 %v10980_v38, %v13218_v24  ;;  %v2996_v15 = vpop.f32.mrb[25].mxu1 }
 0x1a1   : > { %14745 = vst [vmem:[#allocation11_spill] sm:$0xff] %v13320_v40  ;;  %v3123_v46 = vmul.f32 %v9541_v57, %v2996_v15 }
 0x1a2   : > { %14746 = vst [vmem:[#allocation12_spill] sm:$0xff] %v13323_v43 }
 0x1a3   : > { %v10983_v16 = vpop.f32.mrb[26].mxu1  ;;  %v13333_v20 = vadd.f32 %v3123_v46, %v13226_v31 }
 0x1a4   : > { %v13327_v44 = vadd.f32 %v10983_v16, %v13234_v36  ;;  %v3006_v45 = vpop.f32.mrb[27].mxu1  ;;  %v795_v36 = vand.u32 15, %v651_v54  ;;  %v659_v54 = vadd.s32 208, %v13185_v27 }
 0x1a5   : > { %14749 = vst [vmem:[#allocation15_spill] sm:$0xff] %v13333_v20 }
 0x1a6   : > { %14747 = vst [vmem:[#allocation13_spill] sm:$0xff] %v13327_v44  ;;  %vm2049_vm11 = vcmp.gt.s32.totalorder %v795_v36, 0 }
 0x1a7   : > { %v10986_v59 = vpop.f32.mrb[28].mxu1  ;;  %v9542_v31 = vsel %vm2049_vm11, 1.0, %v14714_v21 }
 0x1a8   : > { %v13330_v49 = vadd.f32 %v10986_v59, %v13249_v48  ;;  %v3016_v52 = vpop.f32.mrb[29].mxu1 }
 0x1aa   : > { %14748 = vst [vmem:[#allocation14_spill] sm:$0xff] %v13330_v49 }
 0x1ab   : > { %v10989_v24 = vpop.f32.mrb[30].mxu1 }
 0x1ac   : > { %v13337_v0 = vadd.f32 %v10989_v24, %v13262_v3  ;;  %v3026_v1 = vpop.f32.mrb[31].mxu1  ;;  %v3125_v3 = vmul.f32 %v9542_v31, %v3006_v45  ;;  %v657_v45 = vadd.s32 192, %v13185_v27  ;;  %v661_v31 = vadd.s32 224, %v13185_v27 }
 0x1ae   : > { %14750 = vst [vmem:[#allocation16_spill] sm:$0xff] %v13337_v0  ;;  %v837_v59 = vand.u32 15, %v657_v45 }
 0x1af   : > { %v10992_v2 = vpop.f32.mrb[32].mxu1 }
 0x1b0   : > { %v13339_v25 = vadd.f32 %v11788_v13, %v10992_v2  ;;  %v3036_v4 = vpop.f32.mrb[33].mxu1  ;;  %v13353_v13 = vadd.f32 %v3125_v3, %v13242_v42  ;;  %v655_v42 = vadd.s32 176, %v13185_v27  ;;  %vm2055_vm15 = vcmp.gt.s32.totalorder %v837_v59, 0 }
 0x1b1   : > { %v851_v2 = vand.u32 15, %v659_v54  ;;  %v865_v3 = vand.u32 15, %v661_v31 }
 0x1b2   : > { %14751 = vst [vmem:[#allocation17_spill] sm:$0xff] %v13339_v25  ;;  %14757 = vst [vmem:[#allocation23_spill] sm:$0xff] %v13353_v13 }
 0x1b3   : > { %v10995_v6 = vpop.f32.mrb[34].mxu1  ;;  %vm2057_vm0 = vcmp.gt.s32.totalorder %v851_v2, 0  ;;  %vm13404_vm2 = vcmp.gt.s32.totalorder %v865_v3, 0 }
 0x1b4   : > { %v13341_v48 = vadd.f32 %v11790_v47, %v10995_v6  ;;  %v3046_v10 = vpop.f32.mrb[35].mxu1  ;;  %v653_v47 = vadd.s32 160, %v13185_v27  ;;  %v9546_v36 = vsel %vm2057_vm0, 1.0, %v14714_v21  ;;  %v13377_v6 = vadd.s32 8, %v13185_v27 }
 0x1b5   : > { %v13424_v3 = vsel %vm13404_vm2, 1.0, %v14714_v21  ;;  %vm6158_vm0 = vcmask 1044484   ;;  %vm6162_vm2 = vcmask 1046534  }
 0x1b6   : > { %14752 = vst [vmem:[#allocation18_spill] sm:$0xff] %v13341_v48  ;;  %v809_v56 = vand.u32 15, %v653_v47  ;;  %14761 = vst [vmem:[#allocation27_spill] sm:$0xff] %v13377_v6 }
 0x1b7   : > { %v10998_v17 = vpop.f32.mrb[36].mxu1  ;;  %14768 = vst [vmem:[#allocation32_spill] sm:$0xff] %v13424_v3 }
 0x1b8   : > { %v13344_v22 = vadd.f32 %v11792_v23, %v10998_v17  ;;  %v13346_v26 = vpop.f32.mrb[37].mxu1  ;;  %vm2051_vm12 = vcmp.gt.s32.totalorder %v809_v56, 0  ;;  %v663_v17 = vadd.s32 240, %v13185_v27 }
 0x1b9   : > { %14754 = vst [vmem:[#allocation20_spill] sm:$0xff] %v13346_v26  ;;  %v9543_v38 = vsel %vm2051_vm12, 1.0, %v14714_v21  ;;  %vm6152_vm12 = vcmask 1041409  }
 0x1ba   : > { %14753 = vst [vmem:[#allocation19_spill] sm:$0xff] %v13344_v22  ;;  %v3127_v15 = vmul.f32 %v9543_v38, %v3016_v52  ;;  %v9545_v52 = vsel %vm2055_vm15, 1.0, %v14714_v21  ;;  %v879_v56 = vand.u32 15, %v663_v17  ;;  %v13393_v38 = vadd.s32 56, %v13185_v27 }
 0x1bb   : > { %v11001_v28 = vpop.f32.mrb[38].mxu1  ;;  %v3131_v24 = vmul.f32 %v9545_v52, %v3036_v4  ;;  %v676_v4 = vand.u32 15, %v13377_v6  ;;  %v648_v52 = vadd.s32 120, %v13185_v27  ;;  %vm6156_vm15 = vcmask 1043459  }
 0x1bc   : > { %v13348_v32 = vadd.f32 %v11794_v55, %v11001_v28  ;;  %v13350_v33 = vpop.f32.mrb[39].mxu1  ;;  %v13362_v23 = vadd.f32 %v3127_v15, %v13258_v62  ;;  %v823_v55 = vand.u32 15, %v655_v42  ;;  %v12135_v28 = vmov 1983009808   ;;  %14765 = vst [vmem:[#allocation31_spill] sm:$0xff] %v13393_v38 }
 0x1bd   : > { %14756 = vst [vmem:[#allocation22_spill] sm:$0xff] %v13350_v33  ;;  %v13372_v62 = vadd.f32 %v13283_v39, %v3131_v24  ;;  %v13385_v39 = vadd.s32 24, %v13185_v27  ;;  %vm3172_vm1 = vcmp.lt.s32.totalorder %v676_v4, 15  ;;  %v642_v15 = vadd.s32 72, %v13185_v27 }
 0x1be   : > { %14755 = vst [vmem:[#allocation21_spill] sm:$0xff] %v13348_v32  ;;  %14758 = vst [vmem:[#allocation24_spill] sm:$0xff] %v13362_v23  ;;  %vm2053_vm14 = vcmp.gt.s32.totalorder %v823_v55, 0  ;;  %v644_v42 = vadd.s32 88, %v13185_v27  ;;  %v646_v55 = vadd.s32 104, %v13185_v27  ;;  %vm2061_vm4 = vcmp.gt.s32.totalorder %v879_v56, 0 }
 0x1bf   : > { %v9544_v57 = vsel %vm2053_vm14, 1.0, %v14714_v21  ;;  %14760 = vst [vmem:[#allocation26_spill] sm:$0xff] %v13372_v62  ;;  %14763 = vst [vmem:[#allocation29_spill] sm:$0xff] %v13385_v39  ;;  %v690_v47 = vand.u32 15, %v13385_v39  ;;  %v718_v54 = vand.u32 15, %v13393_v38  ;;  %v732_v2 = vand.u32 15, %v642_v15 }
 0x1c0   : > { %v3129_v16 = vmul.f32 %v9544_v57, %v3026_v1  ;;  %v3133_v1 = vmul.f32 %v9546_v36, %v3046_v10  ;;  %v4453_v10 = vunpack.c.l.s4 %v12135_v28  ;;  %v13419_v36 = vld [vmem:[%s13402_s20] ss:$0 sm:$0xff]  ;;  %v746_v4 = vand.u32 15, %v644_v42 }
 0x1c1   : > { %vm3174_vm3 = vcmp.lt.s32.totalorder %v690_v47, 15  ;;  %v760_v17 = vand.u32 15, %v646_v55  ;;  %v774_v47 = vand.u32 15, %v648_v52  ;;  %v13429_v56 = vld [vmem:[%s13415_s30] ss:$0 sm:$0xff]  ;;  %v13432_v15 = vsel %vm2061_vm4, 1.0, %v14714_v21 }
 0x1c2   : > { %v13368_v46 = vadd.f32 %v3129_v16, %v13271_v63  ;;  %v13380_v63 = vadd.f32 %v13294_v50, %v3133_v1  ;;  %v13390_v50 = vadd.s32 40, %v13185_v27  ;;  %v9648_v16 = vsel %vm3172_vm1, 1.0, %v14714_v21  ;;  %14769 = vst [vmem:[#allocation33_spill] sm:$0xff] %v13432_v15 }
 0x1c3   : > { %v4454_v45 = vunpack.c.0.s8 %v4453_v10  ;;  %v9649_v10 = vsel %vm3174_vm3, 1.0, %v14714_v21  ;;  %vm3178_vm7 = vcmp.lt.s32.totalorder %v718_v54, 15  ;;  %vm3180_vm8 = vcmp.lt.s32.totalorder %v732_v2, 15 }
 0x1c4   : > { %14759 = vst [vmem:[#allocation25_spill] sm:$0xff] %v13368_v46  ;;  %14762 = vst [vmem:[#allocation28_spill] sm:$0xff] %v13380_v63  ;;  %v704_v59 = vand.u32 15, %v13390_v50  ;;  %vm3182_vm9 = vcmp.lt.s32.totalorder %v746_v4, 15  ;;  %vm3184_vm10 = vcmp.lt.s32.totalorder %v760_v17, 15  ;;  %vm3186_vm11 = vcmp.lt.s32.totalorder %v774_v47, 15 }
 0x1c5   : > { %14764 = vst [vmem:[#allocation30_spill] sm:$0xff] %v13390_v50  ;;  %v13436_v42 = vsub.s32 %v4454_v45, %v13185_v27  ;;  %v13446_v54 = vsel %vm3178_vm7, 1.0, %v14714_v21  ;;  %v13449_v2 = vsel %vm3180_vm8, 1.0, %v14714_v21  ;;  %vm6154_vm14 = vcmask 1042434  }
 0x1c6   : > { %vm3176_vm5 = vcmp.lt.s32.totalorder %v704_v59, 15  ;;  %vm6160_vm1 = vcmask 1045509   ;;  %vm6164_vm3 = vcmask 1047559  }
 0x1c7   : > { %v9650_v45 = vsel %vm3176_vm5, 1.0, %v14714_v21 }
 0x21e   : > { %v11106_v24 = vpop.f32.mrb[32].mxu0 }
 0x21f   : > { %v4248_v1 = vmul.f32 %v11106_v24, %v9648_v16  ;;  %v4056_v31 = vpop.f32.mrb[33].mxu0 }
 0x220   : > { %v4279_v28 = vadd.f32 %v4056_v31, %v13238_v41 }
 0x221   : > { %v4280_v16 = vadd.f32 %v4248_v1, %v13224_v30 }
 0x222   : > { %v4317_v55 = vmul.f32 %v13419_v36, %v4279_v28  ;;  %v11109_v57 = vpop.f32.mrb[34].mxu0 }
 0x223   : > { %v4318_v41 = vmul.f32 %v13419_v36, %v4280_v16  ;;  %v4250_v52 = vmul.f32 %v11109_v57, %v9649_v10  ;;  %v4066_v24 = vpop.f32.mrb[35].mxu0  ;;  %v13453_v10 = vsel %vm3182_vm9, 1.0, %v14714_v21  ;;  %v13460_v57 = vsel %vm3186_vm11, 1.0, %v14714_v21 }
 0x224   : > { %v4355_v31 = vadd.f32 %v13429_v56, %v4317_v55  ;;  %v4281_v30 = vadd.f32 %v4066_v24, %v13253_v58  ;;  %v13456_v58 = vsel %vm3184_vm10, 1.0, %v14714_v21 }
 0x225   : > { %v4356_v59 = vadd.f32 %v13429_v56, %v4318_v41  ;;  %v4282_v1 = vadd.f32 %v4250_v52, %v13240_v37 }
 0x226   : > { %v4387_v28 = vmax.f32 %v4355_v31, 0.0  ;;  %v4319_v4 = vmul.f32 %v13419_v36, %v4281_v30  ;;  %v11112_v17 = vpop.f32.mrb[36].mxu0 }
 0x227   : > { %v4388_v47 = vmax.f32 %v4356_v59, 0.0  ;;  %v4320_v16 = vmul.f32 %v13419_v36, %v4282_v1  ;;  %v4252_v37 = vmul.f32 %v11112_v17, %v9650_v45  ;;  %v4076_v55 = vpop.f32.mrb[37].mxu0 }
 0x228   : > { %v4451_v41 = vcombine.high %v4387_v28, %v4387_v28  ;;  %v4458_v52 = vrot.slane %v4387_v28, %v13436_v42  ;;  %v4357_v24 = vadd.f32 %v13429_v56, %v4319_v4  ;;  %v13465_v31 = vadd.f32 %v4076_v55, %v13266_v7 }
 0x229   : > { %v4468_v30 = vcombine.high %v4388_v47, %v4388_v47  ;;  %v4475_v29 = vrot.slane %v4388_v47, %v13436_v42  ;;  %v13469_v59 = vadd.f32 %v13429_v56, %v4320_v16  ;;  %v13472_v45 = vadd.f32 %v4252_v37, %v13256_v61 }
 0x22a   : > { %v4465_v1 = vrot.slane %v4451_v41, %v13436_v42  ;;  %v4466_v17 = vcombine.high %v4458_v52, %v4458_v52  ;;  %v5124_v21 = vsel %vm5123_vm6, %v4458_v52, -inf  ;;  %v13476_v28 = vmax.f32 %v4357_v24, 0.0  ;;  %v13478_v4 = vpop.f32.mrb[38].mxu0 }
 0x22b   : > { %v4482_v7 = vrot.slane %v4468_v30, %v13436_v42  ;;  %v4483_v55 = vcombine.high %v4475_v29, %v4475_v29  ;;  %v5152_v47 = vsel %vm5123_vm6, %v4475_v29, -inf  ;;  %v5125_v38 = vrot.slane %v5124_v21, 4  ;;  %v13482_v16 = vpop.f32.mrb[39].mxu0 }
 0x22c   : > { %v5153_v18 = vrot.slane %v5152_v47, 4  ;;  %v4467_v61 = vcombine.high %v4465_v1, %v4465_v1  ;;  %v5131_v37 = vsel %vm5123_vm6, %v4466_v17, -inf  ;;  %v5138_v41 = vsel %vm5123_vm6, %v4465_v1, -inf }
 0x22d   : > { %v4484_v50 = vcombine.high %v4482_v7, %v4482_v7  ;;  %v5159_v52 = vsel %vm5123_vm6, %v4483_v55, -inf  ;;  %v5166_v24 = vsel %vm5123_vm6, %v4482_v7, -inf  ;;  %v5126_v11 = vmax.f32 %v5124_v21, %v5125_v38 }
 0x22e   : > { %v5154_v39 = vmax.f32 %v5152_v47, %v5153_v18  ;;  %v5160_v30 = vrot.slane %v5159_v52, 4  ;;  %v5167_v6 = vrot.slane %v5166_v24, 4  ;;  %v5132_v32 = vrot.slane %v5131_v37, 4  ;;  %v13488_v29 = vpop.f32.mrb[40].mxu0 }
 0x22f   : > { %v5173_v22 = vsel %vm5123_vm6, %v4484_v50, -inf  ;;  %v5127_v35 = vrot.slane %v5126_v11, 2  ;;  %v5139_v48 = vrot.slane %v5138_v41, 4  ;;  %v5145_v17 = vsel %vm5123_vm6, %v4467_v61, -inf  ;;  %v13492_v25 = vpop.f32.mrb[41].mxu0 }
 0x230   : > { %v5155_v1 = vrot.slane %v5154_v39, 2  ;;  %v5161_v53 = vmax.f32 %v5159_v52, %v5160_v30  ;;  %v5168_v55 = vmax.f32 %v5166_v24, %v5167_v6  ;;  %v5174_v63 = vrot.slane %v5173_v22, 4 }
 0x231   : > { %v5128_v7 = vmax.f32 %v5126_v11, %v5127_v35  ;;  %v5133_v21 = vmax.f32 %v5131_v37, %v5132_v32  ;;  %v5140_v18 = vmax.f32 %v5138_v41, %v5139_v48  ;;  %v5146_v38 = vrot.slane %v5145_v17, 4 }
 0x232   : > { %v5156_v47 = vmax.f32 %v5154_v39, %v5155_v1  ;;  %v5162_v0 = vrot.slane %v5161_v53, 2  ;;  %v5169_v62 = vrot.slane %v5168_v55, 2  ;;  %v5175_v15 = vmax.f32 %v5173_v22, %v5174_v63  ;;  %v13494_v33 = vpop.f32.mrb[42].mxu0 }
 0x233   : > { %v5129_v50 = vrot.slane %v5128_v7, 1  ;;  %v5134_v46 = vrot.slane %v5133_v21, 2  ;;  %v5141_v49 = vrot.slane %v5140_v18, 2  ;;  %v5147_v61 = vmax.f32 %v5145_v17, %v5146_v38  ;;  %v13496_v44 = vpop.f32.mrb[43].mxu0 }
 0x234   : > { %v5157_v23 = vrot.slane %v5156_v47, 1  ;;  %v5163_v52 = vmax.f32 %v5161_v53, %v5162_v0  ;;  %v5170_v6 = vmax.f32 %v5168_v55, %v5169_v62  ;;  %v5176_v24 = vrot.slane %v5175_v15, 2 }
 0x235   : > { %v13498_v11 = vmax.f32 %v5128_v7, %v5129_v50  ;;  %v5135_v35 = vmax.f32 %v5133_v21, %v5134_v46  ;;  %v5142_v48 = vmax.f32 %v5140_v18, %v5141_v49  ;;  %v5148_v32 = vrot.slane %v5147_v61, 2 }
 0x236   : > { %v13500_v39 = vmax.f32 %v5156_v47, %v5157_v23  ;;  %v5164_v22 = vrot.slane %v5163_v52, 1  ;;  %v5171_v63 = vrot.slane %v5170_v6, 1  ;;  %v5177_v37 = vmax.f32 %v5175_v15, %v5176_v24  ;;  %v13502_v41 = vpop.f32.mrb[44].mxu0 }
 0x237   : > { %v5136_v30 = vrot.slane %v5135_v35, 1  ;;  %v5143_v17 = vrot.slane %v5142_v48, 1  ;;  %v5149_v1 = vmax.f32 %v5147_v61, %v5148_v32  ;;  %v4390_v53 = vmax.f32 %v13469_v59, 0.0  ;;  %v13505_v0 = vpop.f32.mrb[45].mxu0 }
 0x238   : > { %v13507_v62 = vmax.f32 %v5163_v52, %v5164_v22  ;;  %v13509_v46 = vmax.f32 %v5170_v6, %v5171_v63  ;;  %v5178_v49 = vrot.slane %v5177_v37, 1  ;;  %v4485_v23 = vcombine.high %v13476_v28, %v13476_v28  ;;  %v10137_v63 = vld [vmem:[%s13540_s16 + $0x40] sm:$0xff]  }
 0x239   : > { %v13513_v55 = vmax.f32 %v5135_v35, %v5136_v30  ;;  %v13515_v15 = vmax.f32 %v5142_v48, %v5143_v17  ;;  %v5150_v7 = vrot.slane %v5149_v1, 1  ;;  %v4502_v21 = vcombine.high %v4390_v53, %v4390_v53  ;;  %11539 = vmatprep.subr.bf16.mxu1 %v10137_v63 }
 0x23a   : > { %v13518_v18 = vmax.f32 %v5177_v37, %v5178_v49  ;;  %v4509_v59 = vrot.slane %v4390_v53, %v13436_v42  ;;  %v4492_v38 = vrot.slane %v13476_v28, %v13436_v42  ;;  %v4499_v47 = vrot.slane %v4485_v23, %v13436_v42  ;;  %v13524_v50 = vpop.f32.mrb[46].mxu0  ;;  %11541 = vmatpush3.bf16.msra.mxu1 %v10137_v63 }
 0x23b   : > { %14770 = vst [vmem:[#allocation34_spill] sm:$0xff] %v13524_v50  ;;  %v13526_v61 = vmax.f32 %v5149_v1, %v5150_v7  ;;  %v4516_v52 = vrot.slane %v4502_v21, %v13436_v42  ;;  %v13531_v6 = vmul.f32 %v13419_v36, %v13472_v45  ;;  %v13535_v24 = vmul.f32 %v13419_v36, %v13465_v31  ;;  %v13542_v28 = vpop.f32.mrb[47].mxu0 }
 0x23c   : > { %14771 = vst [vmem:[#allocation35_spill] sm:$0xff] %v13542_v28  ;;  %v4517_v35 = vcombine.high %v4509_v59, %v4509_v59  ;;  %v5208_v48 = vsel %vm5123_vm6, %v4509_v59, -inf  ;;  %v4500_v32 = vcombine.high %v4492_v38, %v4492_v38  ;;  %v4501_v22 = vcombine.high %v4499_v47, %v4499_v47 }
 0x23d   : > { %v4518_v45 = vcombine.high %v4516_v52, %v4516_v52  ;;  %v5209_v37 = vrot.slane %v5208_v48, 4  ;;  %v5222_v30 = vsel %vm5123_vm6, %v4516_v52, -inf  ;;  %v5180_v31 = vsel %vm5123_vm6, %v4492_v38, -inf }
 0x23e   : > { %v5215_v17 = vsel %vm5123_vm6, %v4517_v35, -inf  ;;  %v5223_v1 = vrot.slane %v5222_v30, 4  ;;  %v5181_v53 = vrot.slane %v5180_v31, 4  ;;  %v5187_v49 = vsel %vm5123_vm6, %v4500_v32, -inf }
 0x23f   : > { %v5210_v23 = vmax.f32 %v5208_v48, %v5209_v37  ;;  %v5216_v7 = vrot.slane %v5215_v17, 4  ;;  %v5229_v21 = vsel %vm5123_vm6, %v4518_v45, -inf  ;;  %v5188_v59 = vrot.slane %v5187_v49, 4 }
 0x240   : > { %v5224_v13 = vmax.f32 %v5222_v30, %v5223_v1  ;;  %v5230_v43 = vrot.slane %v5229_v21, 4  ;;  %v5182_v20 = vmax.f32 %v5180_v31, %v5181_v53  ;;  %v5194_v52 = vsel %vm5123_vm6, %v4499_v47, -inf }
 0x241   : > { %v5211_v27 = vrot.slane %v5210_v23, 2  ;;  %v5217_v38 = vmax.f32 %v5215_v17, %v5216_v7  ;;  %v5189_v3 = vmax.f32 %v5187_v49, %v5188_v59  ;;  %v5195_v26 = vrot.slane %v5194_v52, 4  ;;  %v13553_v7 = vpop.f32.mrb[48].mxu0 }
 0x242   : > { %v5225_v35 = vrot.slane %v5224_v13, 2  ;;  %v5231_v28 = vmax.f32 %v5229_v21, %v5230_v43  ;;  %v5183_v40 = vrot.slane %v5182_v20, 2  ;;  %v5201_v32 = vsel %vm5123_vm6, %v4501_v22, -inf  ;;  %v13555_v50 = vpop.f32.mrb[49].mxu0 }
 0x243   : > { %v5212_v48 = vmax.f32 %v5210_v23, %v5211_v27  ;;  %v5218_v63 = vrot.slane %v5217_v38, 2  ;;  %v5190_v37 = vrot.slane %v5189_v3, 2  ;;  %v5196_v45 = vmax.f32 %v5194_v52, %v5195_v26 }
 0x244   : > { %v5226_v8 = vmax.f32 %v5224_v13, %v5225_v35  ;;  %v5232_v30 = vrot.slane %v5231_v28, 2  ;;  %v5184_v1 = vmax.f32 %v5182_v20, %v5183_v40  ;;  %v5202_v31 = vrot.slane %v5201_v32, 4 }
 0x245   : > { %v5213_v47 = vrot.slane %v5212_v48, 1  ;;  %v5219_v53 = vmax.f32 %v5217_v38, %v5218_v63  ;;  %v5191_v17 = vmax.f32 %v5189_v3, %v5190_v37  ;;  %v5197_v49 = vrot.slane %v5196_v45, 2 }
 0x246   : > { %v5227_v43 = vrot.slane %v5226_v8, 1  ;;  %v5233_v21 = vmax.f32 %v5231_v28, %v5232_v30  ;;  %v5185_v59 = vrot.slane %v5184_v1, 1  ;;  %v5203_v22 = vmax.f32 %v5201_v32, %v5202_v31 }
 0x247   : > { %v5214_v27 = vmax.f32 %v5212_v48, %v5213_v47  ;;  %v5220_v23 = vrot.slane %v5219_v53, 1  ;;  %v5192_v26 = vrot.slane %v5191_v17, 1  ;;  %v5198_v13 = vmax.f32 %v5196_v45, %v5197_v49 }
 0x248   : > { %v5228_v40 = vmax.f32 %v5226_v8, %v5227_v43  ;;  %v5234_v20 = vrot.slane %v5233_v21, 1  ;;  %v5186_v52 = vmax.f32 %v5184_v1, %v5185_v59  ;;  %v5204_v35 = vrot.slane %v5203_v22, 2 }
 0x249   : > { %v5221_v3 = vmax.f32 %v5219_v53, %v5220_v23  ;;  %v6024_v38 = vmax.f32 %v13500_v39, %v5214_v27  ;;  %v5193_v63 = vmax.f32 %v5191_v17, %v5192_v26  ;;  %v5199_v37 = vrot.slane %v5198_v13, 1 }
 0x24a   : > { %v5235_v28 = vmax.f32 %v5233_v21, %v5234_v20  ;;  %v6026_v32 = vmax.f32 %v13509_v46, %v5228_v40  ;;  %v5205_v30 = vmax.f32 %v5203_v22, %v5204_v35  ;;  %v6020_v48 = vmax.f32 %v13498_v11, %v5186_v52  ;;  %v13569_v11 = vpop.f32.mrb[50].mxu0 }
 0x24b   : > { %v6025_v45 = vmax.f32 %v13507_v62, %v5221_v3  ;;  %v5200_v8 = vmax.f32 %v5198_v13, %v5199_v37  ;;  %v6021_v1 = vmax.f32 %v13513_v55, %v5193_v63  ;;  %v4360_v31 = vadd.f32 %v13429_v56, %v13531_v6 }
 0x24c   : > { %v6027_v39 = vmax.f32 %v13518_v18, %v5235_v28  ;;  %v5206_v47 = vrot.slane %v5205_v30, 1  ;;  %v4359_v53 = vadd.f32 %v13429_v56, %v13535_v24  ;;  %v4254_v46 = vmul.f32 %v13478_v4, %v13446_v54 }
 0x24d   : > { %v6022_v62 = vmax.f32 %v13515_v15, %v5200_v8  ;;  %v6153_v17 = vsel %vm6152_vm12, %v6021_v1, %v6020_v48  ;;  %v4392_v55 = vmax.f32 %v4360_v31, 0.0  ;;  %v4285_v49 = vadd.f32 %v13482_v16, %v13276_v34 }
 0x24e   : > { %v5207_v6 = vmax.f32 %v5205_v30, %v5206_v47  ;;  %v4391_v43 = vmax.f32 %v4359_v53, 0.0  ;;  %v4286_v18 = vadd.f32 %v4254_v46, %v13269_v12  ;;  %v13578_v24 = vmul.f32 %v13488_v29, %v13449_v2 }
 0x24f   : > { %v6155_v54 = vsel %vm6154_vm14, %v6022_v62, %v6153_v17  ;;  %v4536_v4 = vcombine.high %v4392_v55, %v4392_v55  ;;  %v4543_v21 = vrot.slane %v4392_v55, %v13436_v42  ;;  %v4323_v15 = vmul.f32 %v13419_v36, %v4285_v49 }
 0x250   : > { %v6023_v59 = vmax.f32 %v13526_v61, %v5207_v6  ;;  %v4519_v22 = vcombine.high %v4391_v43, %v4391_v43  ;;  %v4526_v34 = vrot.slane %v4391_v43, %v13436_v42  ;;  %v4324_v16 = vmul.f32 %v13419_v36, %v4286_v18 }
 0x251   : > { %v4550_v12 = vrot.slane %v4536_v4, %v13436_v42  ;;  %v4551_v27 = vcombine.high %v4543_v21, %v4543_v21  ;;  %v5264_v2 = vsel %vm5123_vm6, %v4543_v21, -inf  ;;  %v4361_v29 = vadd.f32 %v13429_v56, %v4323_v15 }
 0x252   : > { %v6157_v23 = vsel %vm6156_vm15, %v6023_v59, %v6155_v54  ;;  %v5265_v26 = vrot.slane %v5264_v2, 4  ;;  %v4533_v13 = vrot.slane %v4519_v22, %v13436_v42  ;;  %v4534_v40 = vcombine.high %v4526_v34, %v4526_v34  ;;  %v13603_v22 = vpop.f32.mrb[51].mxu0 }
 0x253   : > { %v6159_v61 = vsel %vm6158_vm0, %v6024_v38, %v6157_v23  ;;  %v4552_v20 = vcombine.high %v4550_v12, %v4550_v12  ;;  %v5271_v52 = vsel %vm5123_vm6, %v4551_v27, -inf  ;;  %v5278_v35 = vsel %vm5123_vm6, %v4550_v12, -inf }
 0x254   : > { %v6161_v3 = vsel %vm6160_vm1, %v6025_v45, %v6159_v61  ;;  %v5266_v63 = vmax.f32 %v5264_v2, %v5265_v26  ;;  %v5272_v37 = vrot.slane %v5271_v52, 4  ;;  %v5279_v28 = vrot.slane %v5278_v35, 4 }
 0x255   : > { %v6163_v30 = vsel %vm6162_vm2, %v6026_v32, %v6161_v3  ;;  %v5285_v48 = vsel %vm5123_vm6, %v4552_v20, -inf  ;;  %v4535_v8 = vcombine.high %v4533_v13, %v4533_v13  ;;  %v5236_v1 = vsel %vm5123_vm6, %v4526_v34, -inf }
 0x256   : > { %v6165_v31 = vsel %vm6164_vm3, %v6027_v39, %v6163_v30  ;;  %v5267_v38 = vrot.slane %v5266_v63, 2  ;;  %v5273_v47 = vmax.f32 %v5271_v52, %v5272_v37  ;;  %v5280_v53 = vmax.f32 %v5278_v35, %v5279_v28 }
 0x257   : > { %6223 = vst.msk [vmem:[#allocation2 + $0x9] sm:$0xff] %vm6084_vm13, %v6165_v31  ;;  %v5286_v46 = vrot.slane %v5285_v48, 4  ;;  %v5237_v62 = vrot.slane %v5236_v1, 4  ;;  %v5243_v45 = vsel %vm5123_vm6, %v4534_v40, -inf  ;;  %v5250_v17 = vsel %vm5123_vm6, %v4533_v13, -inf }
 0x258   : > { %v5268_v55 = vmax.f32 %v5266_v63, %v5267_v38  ;;  %v5274_v32 = vrot.slane %v5273_v47, 2  ;;  %v5281_v49 = vrot.slane %v5280_v53, 2  ;;  %v5244_v6 = vrot.slane %v5243_v45, 4 }
 0x259   : > { %v5287_v43 = vmax.f32 %v5285_v48, %v5286_v46  ;;  %v5238_v18 = vmax.f32 %v5236_v1, %v5237_v62  ;;  %v5251_v54 = vrot.slane %v5250_v17, 4  ;;  %v5257_v39 = vsel %vm5123_vm6, %v4535_v8, -inf }
 0x25a   : > { %v5269_v4 = vrot.slane %v5268_v55, 1  ;;  %v5275_v21 = vmax.f32 %v5273_v47, %v5274_v32  ;;  %v5282_v15 = vmax.f32 %v5280_v53, %v5281_v49  ;;  %v5245_v59 = vmax.f32 %v5243_v45, %v5244_v6 }
 0x25b   : > { %v5288_v34 = vrot.slane %v5287_v43, 2  ;;  %v5239_v12 = vrot.slane %v5238_v18, 2  ;;  %v5252_v27 = vmax.f32 %v5250_v17, %v5251_v54  ;;  %v5258_v2 = vrot.slane %v5257_v39, 4 }
 0x25c   : > { %v13605_v23 = vmax.f32 %v5268_v55, %v5269_v4  ;;  %v5276_v26 = vrot.slane %v5275_v21, 1  ;;  %v5283_v13 = vrot.slane %v5282_v15, 1  ;;  %v5246_v40 = vrot.slane %v5245_v59, 2  ;;  %v13618_v55 = vpop.f32.mrb[52].mxu0 }
 0x25d   : > { %v5289_v61 = vmax.f32 %v5287_v43, %v5288_v34  ;;  %v5240_v20 = vmax.f32 %v5238_v18, %v5239_v12  ;;  %v5253_v52 = vrot.slane %v5252_v27, 2  ;;  %v5259_v35 = vmax.f32 %v5257_v39, %v5258_v2 }
 0x25e   : > { %v13607_v3 = vmax.f32 %v5275_v21, %v5276_v26  ;;  %v13609_v63 = vmax.f32 %v5282_v15, %v5283_v13  ;;  %v5247_v37 = vmax.f32 %v5245_v59, %v5246_v40  ;;  %v4362_v28 = vadd.f32 %v13429_v56, %v4324_v16 }
 0x25f   : > { %v5290_v30 = vrot.slane %v5289_v61, 1  ;;  %v5241_v48 = vrot.slane %v5240_v20, 1  ;;  %v5254_v8 = vmax.f32 %v5252_v27, %v5253_v52  ;;  %v5260_v1 = vrot.slane %v5259_v35, 2 }
 0x260   : > { %v5248_v31 = vrot.slane %v5247_v37, 1  ;;  %v4394_v38 = vmax.f32 %v4362_v28, 0.0  ;;  %v4393_v47 = vmax.f32 %v4361_v29, 0.0  ;;  %v4288_v53 = vadd.f32 %v13578_v24, %v13280_v14 }
 0x261   : > { %v13614_v46 = vmax.f32 %v5289_v61, %v5290_v30  ;;  %v13616_v62 = vmax.f32 %v5240_v20, %v5241_v48  ;;  %v5255_v45 = vrot.slane %v5254_v8, 1  ;;  %v5261_v17 = vmax.f32 %v5259_v35, %v5260_v1 }
 0x262   : > { %v13620_v32 = vmax.f32 %v5247_v37, %v5248_v31  ;;  %v4570_v16 = vcombine.high %v4394_v38, %v4394_v38  ;;  %v4577_v49 = vrot.slane %v4394_v38, %v13436_v42  ;;  %v4553_v6 = vcombine.high %v4393_v47, %v4393_v47 }
 0x263   : > { %v13623_v43 = vmax.f32 %v5254_v8, %v5255_v45  ;;  %v5262_v29 = vrot.slane %v5261_v17, 1  ;;  %v4560_v18 = vrot.slane %v4393_v47, %v13436_v42  ;;  %v13627_v14 = vmul.f32 %v13419_v36, %v4288_v53 }
 0x264   : > { %v4584_v24 = vrot.slane %v4570_v16, %v13436_v42  ;;  %v4585_v54 = vcombine.high %v4577_v49, %v4577_v49  ;;  %v5320_v39 = vsel %vm5123_vm6, %v4577_v49, -inf  ;;  %v4567_v4 = vrot.slane %v4553_v6, %v13436_v42 }
 0x265   : > { %v13632_v21 = vmax.f32 %v5261_v17, %v5262_v29  ;;  %v5321_v15 = vrot.slane %v5320_v39, 4  ;;  %v4568_v59 = vcombine.high %v4560_v18, %v4560_v18  ;;  %v5292_v34 = vsel %vm5123_vm6, %v4560_v18, -inf }
 0x266   : > { %v4586_v12 = vcombine.high %v4584_v24, %v4584_v24  ;;  %v5327_v27 = vsel %vm5123_vm6, %v4585_v54, -inf  ;;  %v5334_v2 = vsel %vm5123_vm6, %v4584_v24, -inf  ;;  %v4569_v26 = vcombine.high %v4567_v4, %v4567_v4 }
 0x267   : > { %v5322_v13 = vmax.f32 %v5320_v39, %v5321_v15  ;;  %v5328_v40 = vrot.slane %v5327_v27, 4  ;;  %v5335_v61 = vrot.slane %v5334_v2, 4  ;;  %v5293_v20 = vrot.slane %v5292_v34, 4 }
 0x268   : > { %v5341_v52 = vsel %vm5123_vm6, %v4586_v12, -inf  ;;  %v5299_v35 = vsel %vm5123_vm6, %v4568_v59, -inf  ;;  %v5306_v37 = vsel %vm5123_vm6, %v4567_v4, -inf  ;;  %v5313_v28 = vsel %vm5123_vm6, %v4569_v26, -inf }
 0x269   : > { %v5323_v30 = vrot.slane %v5322_v13, 2  ;;  %v5329_v48 = vmax.f32 %v5327_v27, %v5328_v40  ;;  %v5336_v8 = vmax.f32 %v5334_v2, %v5335_v61  ;;  %v5342_v1 = vrot.slane %v5341_v52, 4 }
 0x26a   : > { %v5294_v31 = vmax.f32 %v5292_v34, %v5293_v20  ;;  %v5300_v38 = vrot.slane %v5299_v35, 4  ;;  %v5307_v47 = vrot.slane %v5306_v37, 4  ;;  %v5314_v53 = vrot.slane %v5313_v28, 4  ;;  %v13641_v34 = vpop.f32.mrb[53].mxu0 }
 0x26b   : > { %v5324_v45 = vmax.f32 %v5322_v13, %v5323_v30  ;;  %v5330_v17 = vrot.slane %v5329_v48, 2  ;;  %v5337_v16 = vrot.slane %v5336_v8, 2  ;;  %v5343_v49 = vmax.f32 %v5341_v52, %v5342_v1 }
 0x26c   : > { %v5295_v6 = vrot.slane %v5294_v31, 2  ;;  %v5301_v29 = vmax.f32 %v5299_v35, %v5300_v38  ;;  %v5308_v18 = vmax.f32 %v5306_v37, %v5307_v47  ;;  %v5315_v24 = vmax.f32 %v5313_v28, %v5314_v53 }
 0x26d   : > { %v5325_v54 = vrot.slane %v5324_v45, 1  ;;  %v5331_v39 = vmax.f32 %v5329_v48, %v5330_v17  ;;  %v5338_v4 = vmax.f32 %v5336_v8, %v5337_v16  ;;  %v5344_v15 = vrot.slane %v5343_v49, 2 }
 0x26e   : > { %v5296_v59 = vmax.f32 %v5294_v31, %v5295_v6  ;;  %v5302_v12 = vrot.slane %v5301_v29, 2  ;;  %v5309_v27 = vrot.slane %v5308_v18, 2  ;;  %v5316_v2 = vrot.slane %v5315_v24, 2 }
 0x26f   : > { %v5326_v26 = vmax.f32 %v5324_v45, %v5325_v54  ;;  %v5332_v40 = vrot.slane %v5331_v39, 1  ;;  %v5339_v13 = vrot.slane %v5338_v4, 1  ;;  %v5345_v61 = vmax.f32 %v5343_v49, %v5344_v15 }
 0x270   : > { %v5297_v20 = vrot.slane %v5296_v59, 1  ;;  %v5303_v52 = vmax.f32 %v5301_v29, %v5302_v12  ;;  %v5310_v30 = vmax.f32 %v5308_v18, %v5309_v27  ;;  %v5317_v35 = vmax.f32 %v5315_v24, %v5316_v2 }
 0x271   : > { %v5333_v37 = vmax.f32 %v5331_v39, %v5332_v40  ;;  %v5340_v28 = vmax.f32 %v5338_v4, %v5339_v13  ;;  %v5346_v1 = vrot.slane %v5345_v61, 1  ;;  %v6032_v48 = vmax.f32 %v13605_v23, %v5326_v26 }
 0x272   : > { %v5298_v8 = vmax.f32 %v5296_v59, %v5297_v20  ;;  %v5304_v31 = vrot.slane %v5303_v52, 1  ;;  %v5311_v38 = vrot.slane %v5310_v30, 1  ;;  %v5318_v47 = vrot.slane %v5317_v35, 1 }
 0x273   : > { %v5347_v53 = vmax.f32 %v5345_v61, %v5346_v1  ;;  %v6033_v17 = vmax.f32 %v13607_v3, %v5333_v37  ;;  %v6034_v45 = vmax.f32 %v13609_v63, %v5340_v28  ;;  %v4364_v16 = vadd.f32 %v13429_v56, %v13627_v14 }
 0x274   : > { %v5305_v49 = vmax.f32 %v5303_v52, %v5304_v31  ;;  %v5312_v6 = vmax.f32 %v5310_v30, %v5311_v38  ;;  %v5319_v29 = vmax.f32 %v5317_v35, %v5318_v47  ;;  %v6028_v18 = vmax.f32 %v13616_v62, %v5298_v8 }
 0x275   : > { %v6035_v24 = vmax.f32 %v13614_v46, %v5347_v53  ;;  %v4396_v23 = vmax.f32 %v4364_v16, 0.0  ;;  %v4287_v54 = vadd.f32 %v13492_v25, %v13287_v19  ;;  %v4258_v39 = vmul.f32 %v13494_v33, %v13453_v10 }
 0x276   : > { %v6029_v3 = vmax.f32 %v13620_v32, %v5305_v49  ;;  %v6030_v63 = vmax.f32 %v13623_v43, %v5312_v6  ;;  %v6031_v14 = vmax.f32 %v13632_v21, %v5319_v29  ;;  %v4289_v4 = vadd.f32 %v13496_v44, %v13298_v9 }
 0x277   : > { %v4604_v15 = vcombine.high %v4396_v23, %v4396_v23  ;;  %v4611_v62 = vrot.slane %v4396_v23, %v13436_v42  ;;  %v4325_v46 = vmul.f32 %v13419_v36, %v4287_v54  ;;  %v4290_v59 = vadd.f32 %v4258_v39, %v13291_v60 }
 0x278   : > { %v6166_v19 = vsel %vm6152_vm12, %v6029_v3, %v6028_v18  ;;  %v4327_v25 = vmul.f32 %v13419_v36, %v4289_v4  ;;  %v13666_v33 = vmul.f32 %v13502_v41, %v13456_v58  ;;  %v13670_v10 = vadd.f32 %v13505_v0, %v13310_v5 }
 0x279   : > { %v6167_v9 = vsel %vm6154_vm14, %v6030_v63, %v6166_v19  ;;  %v4618_v44 = vrot.slane %v4604_v15, %v13436_v42  ;;  %v4619_v32 = vcombine.high %v4611_v62, %v4611_v62  ;;  %v5376_v43 = vsel %vm5123_vm6, %v4611_v62, -inf }
 0x27a   : > { %v6168_v60 = vsel %vm6156_vm15, %v6031_v14, %v6167_v9  ;;  %v5377_v21 = vrot.slane %v5376_v43, 4  ;;  %v4363_v12 = vadd.f32 %v13429_v56, %v4325_v46  ;;  %v4328_v27 = vmul.f32 %v13419_v36, %v4290_v59 }
 0x27b   : > { %v6169_v58 = vsel %vm6158_vm0, %v6032_v48, %v6168_v60  ;;  %v4620_v41 = vcombine.high %v4618_v44, %v4618_v44  ;;  %v5383_v5 = vsel %vm5123_vm6, %v4619_v32, -inf  ;;  %v5390_v0 = vsel %vm5123_vm6, %v4618_v44, -inf }
 0x27c   : > { %v6170_v2 = vsel %vm6160_vm1, %v6033_v17, %v6169_v58  ;;  %v5378_v26 = vmax.f32 %v5376_v43, %v5377_v21  ;;  %v5384_v40 = vrot.slane %v5383_v5, 4  ;;  %v5391_v13 = vrot.slane %v5390_v0, 4 }
 0x27d   : > { %v6171_v61 = vsel %vm6162_vm2, %v6034_v45, %v6170_v2  ;;  %v5397_v20 = vsel %vm5123_vm6, %v4620_v41, -inf  ;;  %v4395_v52 = vmax.f32 %v4363_v12, 0.0  ;;  %v4366_v30 = vadd.f32 %v13429_v56, %v4328_v27 }
 0x27e   : > { %v6172_v36 = vsel %vm6164_vm3, %v6035_v24, %v6171_v61  ;;  %v5379_v35 = vrot.slane %v5378_v26, 2  ;;  %v5385_v37 = vmax.f32 %v5383_v5, %v5384_v40  ;;  %v5392_v28 = vmax.f32 %v5390_v0, %v5391_v13  ;;  %v13701_v0 = vpop.f32.mrb[54].mxu0 }
 0x27f   : > { %6224 = vst.msk [vmem:[#allocation2 + $0x11] sm:$0xff] %vm6084_vm13, %v6172_v36  ;;  %v5398_v1 = vrot.slane %v5397_v20, 4  ;;  %v4587_v48 = vcombine.high %v4395_v52, %v4395_v52  ;;  %v4594_v8 = vrot.slane %v4395_v52, %v13436_v42  ;;  %v4398_v31 = vmax.f32 %v4366_v30, 0.0  ;;  %v13706_v61 = vpop.f32.mrb[55].mxu0 }
 0x280   : > { %v5380_v38 = vmax.f32 %v5378_v26, %v5379_v35  ;;  %v5386_v47 = vrot.slane %v5385_v37, 2  ;;  %v5393_v53 = vrot.slane %v5392_v28, 2  ;;  %v4365_v17 = vadd.f32 %v13429_v56, %v4327_v25 }
 0x281   : > { %v5399_v45 = vmax.f32 %v5397_v20, %v5398_v1  ;;  %v4601_v16 = vrot.slane %v4587_v48, %v13436_v42  ;;  %v4602_v49 = vcombine.high %v4594_v8, %v4594_v8  ;;  %v5348_v6 = vsel %vm5123_vm6, %v4594_v8, -inf }
 0x282   : > { %v5381_v29 = vrot.slane %v5380_v38, 1  ;;  %v5387_v18 = vmax.f32 %v5385_v37, %v5386_v47  ;;  %v5394_v24 = vmax.f32 %v5392_v28, %v5393_v53  ;;  %v5349_v23 = vrot.slane %v5348_v6, 4 }
 0x283   : > { %v5400_v54 = vrot.slane %v5399_v45, 2  ;;  %v4603_v39 = vcombine.high %v4601_v16, %v4601_v16  ;;  %v5355_v3 = vsel %vm5123_vm6, %v4602_v49, -inf  ;;  %v5362_v63 = vsel %vm5123_vm6, %v4601_v16, -inf }
 0x284   : > { %v13693_v14 = vmax.f32 %v5380_v38, %v5381_v29  ;;  %v5388_v4 = vrot.slane %v5387_v18, 1  ;;  %v5395_v56 = vrot.slane %v5394_v24, 1  ;;  %v5350_v15 = vmax.f32 %v5348_v6, %v5349_v23 }
 0x285   : > { %v5401_v62 = vmax.f32 %v5399_v45, %v5400_v54  ;;  %v5356_v46 = vrot.slane %v5355_v3, 4  ;;  %v5363_v59 = vrot.slane %v5362_v63, 4  ;;  %v5369_v19 = vsel %vm5123_vm6, %v4603_v39, -inf }
 0x286   : > { %v13696_v25 = vmax.f32 %v5387_v18, %v5388_v4  ;;  %v13698_v9 = vmax.f32 %v5394_v24, %v5395_v56  ;;  %v5351_v44 = vrot.slane %v5350_v15, 2  ;;  %v5370_v32 = vrot.slane %v5369_v19, 4  ;;  %v13714_v18 = vpop.f32.mrb[56].mxu0 }
 0x287   : > { %v5402_v43 = vrot.slane %v5401_v62, 1  ;;  %v5357_v60 = vmax.f32 %v5355_v3, %v5356_v46  ;;  %v5364_v21 = vmax.f32 %v5362_v63, %v5363_v59  ;;  %v4638_v12 = vcombine.high %v4398_v31, %v4398_v31 }
 0x288   : > { %v5352_v27 = vmax.f32 %v5350_v15, %v5351_v44  ;;  %v5371_v58 = vmax.f32 %v5369_v19, %v5370_v32  ;;  %v4645_v41 = vrot.slane %v4398_v31, %v13436_v42  ;;  %v4397_v5 = vmax.f32 %v4365_v17, 0.0 }
 0x289   : > { %v13703_v2 = vmax.f32 %v5401_v62, %v5402_v43  ;;  %v5358_v26 = vrot.slane %v5357_v60, 2  ;;  %v5365_v40 = vrot.slane %v5364_v21, 2  ;;  %v4652_v13 = vrot.slane %v4638_v12, %v13436_v42 }
 0x28a   : > { %v5353_v20 = vrot.slane %v5352_v27, 1  ;;  %v5372_v52 = vrot.slane %v5371_v58, 2  ;;  %v4653_v30 = vcombine.high %v4645_v41, %v4645_v41  ;;  %v5432_v36 = vsel %vm5123_vm6, %v4645_v41, -inf }
 0x28b   : > { %v5359_v35 = vmax.f32 %v5357_v60, %v5358_v26  ;;  %v5366_v37 = vmax.f32 %v5364_v21, %v5365_v40  ;;  %v4654_v28 = vcombine.high %v4652_v13, %v4652_v13  ;;  %v5433_v1 = vrot.slane %v5432_v36, 4 }
 0x28c   : > { %v13709_v48 = vmax.f32 %v5352_v27, %v5353_v20  ;;  %v5373_v8 = vmax.f32 %v5371_v58, %v5372_v52  ;;  %v5439_v31 = vsel %vm5123_vm6, %v4653_v30, -inf  ;;  %v5446_v38 = vsel %vm5123_vm6, %v4652_v13, -inf }
 0x28d   : > { %v5360_v47 = vrot.slane %v5359_v35, 1  ;;  %v5367_v53 = vrot.slane %v5366_v37, 1  ;;  %v5434_v17 = vmax.f32 %v5432_v36, %v5433_v1  ;;  %v5440_v45 = vrot.slane %v5439_v31, 4 }
 0x28e   : > { %v5374_v16 = vrot.slane %v5373_v8, 1  ;;  %v5447_v49 = vrot.slane %v5446_v38, 4  ;;  %v5453_v6 = vsel %vm5123_vm6, %v4654_v28, -inf  ;;  %v4621_v29 = vcombine.high %v4397_v5, %v4397_v5 }
 0x28f   : > { %v13716_v24 = vmax.f32 %v5359_v35, %v5360_v47  ;;  %v13718_v23 = vmax.f32 %v5366_v37, %v5367_v53  ;;  %v5435_v54 = vrot.slane %v5434_v17, 2  ;;  %v5441_v39 = vmax.f32 %v5439_v31, %v5440_v45 }
 0x290   : > { %v13720_v3 = vmax.f32 %v5373_v8, %v5374_v16  ;;  %v5448_v63 = vmax.f32 %v5446_v38, %v5447_v49  ;;  %v5454_v4 = vrot.slane %v5453_v6, 4  ;;  %v4628_v56 = vrot.slane %v4397_v5, %v13436_v42  ;;  %v6404_v8 = vld [vmem:[#allocation2 + $0x9] sm:$0xff]  ;;  %v13742_v49 = vld [vmem:[%s13402_s20] ss:$0 sm:$0xff] }
 0x291   : > { %v5436_v15 = vmax.f32 %v5434_v17, %v5435_v54  ;;  %v5442_v62 = vrot.slane %v5441_v39, 2  ;;  %v4635_v46 = vrot.slane %v4621_v29, %v13436_v42  ;;  %v4292_v59 = vadd.f32 %v13666_v33, %v13302_v51  ;;  %11160 = vmatprep.mubr.msk.f32.mxu1 %vm6084_vm13, %v6404_v8  ;;  %v13745_v29 = vpop.f32.mrb[57].mxu0 }
 0x292   : > { %v5449_v19 = vrot.slane %v5448_v63, 2  ;;  %v5455_v44 = vmax.f32 %v5453_v6, %v5454_v4  ;;  %v4636_v32 = vcombine.high %v4628_v56, %v4628_v56  ;;  %v5404_v43 = vsel %vm5123_vm6, %v4628_v56, -inf }
 0x293   : > { %v5437_v60 = vrot.slane %v5436_v15, 1  ;;  %v5443_v21 = vmax.f32 %v5441_v39, %v5442_v62  ;;  %v4637_v12 = vcombine.high %v4635_v46, %v4635_v46  ;;  %v5405_v27 = vrot.slane %v5404_v43, 4  ;;  %v13752_v62 = vld [vmem:[%s13415_s30] ss:$0 sm:$0xff] }
 0x294   : > { %v5450_v58 = vmax.f32 %v5448_v63, %v5449_v19  ;;  %v5456_v41 = vrot.slane %v5455_v44, 2  ;;  %v5411_v5 = vsel %vm5123_vm6, %v4636_v32, -inf  ;;  %v5418_v26 = vsel %vm5123_vm6, %v4635_v46, -inf }
 0x295   : > { %v13729_v40 = vmax.f32 %v5436_v15, %v5437_v60  ;;  %v5444_v13 = vrot.slane %v5443_v21, 1  ;;  %v5406_v20 = vmax.f32 %v5404_v43, %v5405_v27  ;;  %v5412_v51 = vrot.slane %v5411_v5, 4  ;;  %v14772_v43 = vld [vmem:[#allocation34_spill] sm:$0xff] }
 0x296   : > { %v5451_v33 = vrot.slane %v5450_v58, 1  ;;  %v5457_v52 = vmax.f32 %v5455_v44, %v5456_v41  ;;  %v5419_v30 = vrot.slane %v5418_v26, 4  ;;  %v5425_v36 = vsel %vm5123_vm6, %v4637_v12, -inf }
 0x297   : > { %v13732_v35 = vmax.f32 %v5443_v21, %v5444_v13  ;;  %v6040_v37 = vmax.f32 %v13693_v14, %v13729_v40  ;;  %v5407_v28 = vrot.slane %v5406_v20, 2  ;;  %v5413_v1 = vmax.f32 %v5411_v5, %v5412_v51  ;;  %v14773_v5 = vld [vmem:[#allocation9_spill] sm:$0xff]  ;;  %v14774_v13 = vld [vmem:[#allocation11_spill] sm:$0xff] }
 0x298   : > { %v13736_v31 = vmax.f32 %v5450_v58, %v5451_v33  ;;  %v5458_v38 = vrot.slane %v5457_v52, 1  ;;  %v5420_v47 = vmax.f32 %v5418_v26, %v5419_v30  ;;  %v5426_v53 = vrot.slane %v5425_v36, 4 }
 0x299   : > { %v6041_v17 = vmax.f32 %v13696_v25, %v13732_v35  ;;  %v5408_v45 = vmax.f32 %v5406_v20, %v5407_v28  ;;  %v5414_v16 = vrot.slane %v5413_v1, 2  ;;  %v4330_v6 = vmul.f32 %v13742_v49, %v4292_v59  ;;  %v14775_v20 = vld [vmem:[#allocation35_spill] sm:$0xff] }
 0x29a   : > { %v13747_v54 = vmax.f32 %v5457_v52, %v5458_v38  ;;  %v6042_v39 = vmax.f32 %v13698_v9, %v13736_v31  ;;  %v5421_v63 = vrot.slane %v5420_v47, 2  ;;  %v5427_v4 = vmax.f32 %v5425_v36, %v5426_v53 }
 0x29b   : > { %v5409_v56 = vrot.slane %v5408_v45, 1  ;;  %v5415_v15 = vmax.f32 %v5413_v1, %v5414_v16  ;;  %v4368_v46 = vadd.f32 %v13752_v62, %v4330_v6  ;;  %v4329_v19 = vmul.f32 %v13742_v49, %v13670_v10  ;;  %v13776_v16 = vpop.f32.mrb[58].mxu0 }
 0x29c   : > { %v6043_v59 = vmax.f32 %v13703_v2, %v13747_v54  ;;  %v5422_v44 = vmax.f32 %v5420_v47, %v5421_v63  ;;  %v5428_v32 = vrot.slane %v5427_v4, 2  ;;  %v4262_v60 = vmul.f32 %v14772_v43, %v13460_v57 }
 0x29d   : > { %v5410_v9 = vmax.f32 %v5408_v45, %v5409_v56  ;;  %v5416_v21 = vrot.slane %v5415_v15, 1  ;;  %v4400_v12 = vmax.f32 %v4368_v46, 0.0  ;;  %v4367_v27 = vadd.f32 %v13752_v62, %v4329_v19 }
 0x29e   : > { %v5423_v58 = vrot.slane %v5422_v44, 1  ;;  %v5429_v41 = vmax.f32 %v5427_v4, %v5428_v32  ;;  %v4294_v26 = vadd.f32 %v4262_v60, %v14773_v5  ;;  %v13765_v10 = vadd.f32 %v14775_v20, %v14774_v13 }
 0x29f   : > { %v5417_v51 = vmax.f32 %v5415_v15, %v5416_v21  ;;  %v6036_v2 = vmax.f32 %v13709_v48, %v5410_v9  ;;  %v4672_v33 = vcombine.high %v4400_v12, %v4400_v12  ;;  %v4679_v52 = vrot.slane %v4400_v12, %v13436_v42 }
 0x2a0   : > { %v5424_v57 = vmax.f32 %v5422_v44, %v5423_v58  ;;  %v5430_v30 = vrot.slane %v5429_v41, 1  ;;  %v4399_v36 = vmax.f32 %v4367_v27, 0.0  ;;  %v13770_v28 = vmul.f32 %v13742_v49, %v4294_v26 }
 0x2a1   : > { %v6037_v1 = vmax.f32 %v13716_v24, %v5417_v51  ;;  %v4686_v8 = vrot.slane %v4672_v33, %v13436_v42  ;;  %v4687_v31 = vcombine.high %v4679_v52, %v4679_v52  ;;  %v5488_v38 = vsel %vm5123_vm6, %v4679_v52, -inf }
 0x2a2   : > { %v5431_v47 = vmax.f32 %v5429_v41, %v5430_v30  ;;  %v6038_v53 = vmax.f32 %v13718_v23, %v5424_v57  ;;  %v5489_v48 = vrot.slane %v5488_v38, 4  ;;  %v4655_v45 = vcombine.high %v4399_v36, %v4399_v36  ;;  %v14776_v30 = vld [vmem:[#allocation20_spill] sm:$0xff] }
 0x2a3   : > { %v6173_v6 = vsel %vm6152_vm12, %v6037_v1, %v6036_v2  ;;  %v4688_v54 = vcombine.high %v4686_v8, %v4686_v8  ;;  %v5495_v63 = vsel %vm5123_vm6, %v4687_v31, -inf  ;;  %v5502_v4 = vsel %vm5123_vm6, %v4686_v8, -inf }
 0x2a4   : > { %v6039_v24 = vmax.f32 %v13720_v3, %v5431_v47  ;;  %v6174_v56 = vsel %vm6154_vm14, %v6038_v53, %v6173_v6  ;;  %v5490_v15 = vmax.f32 %v5488_v38, %v5489_v48  ;;  %v5496_v46 = vrot.slane %v5495_v63, 4 }
 0x2a5   : > { %v5503_v19 = vrot.slane %v5502_v4, 4  ;;  %v5509_v23 = vsel %vm5123_vm6, %v4688_v54, -inf  ;;  %v4662_v44 = vrot.slane %v4399_v36, %v13436_v42  ;;  %v4669_v32 = vrot.slane %v4655_v45, %v13436_v42 }
 0x2a6   : > { %v6175_v43 = vsel %vm6156_vm15, %v6039_v24, %v6174_v56  ;;  %v5491_v60 = vrot.slane %v5490_v15, 2  ;;  %v5497_v9 = vmax.f32 %v5495_v63, %v5496_v46  ;;  %v5510_v21 = vrot.slane %v5509_v23, 4  ;;  %v10138_v63 = vld [vmem:[%s13540_s16 + $0x48] sm:$0xff]  }
 0x2a7   : > { %v6176_v3 = vsel %vm6158_vm0, %v6040_v37, %v6175_v43  ;;  %v5504_v12 = vmax.f32 %v5502_v4, %v5503_v19  ;;  %v4670_v27 = vcombine.high %v4662_v44, %v4662_v44  ;;  %v4671_v58 = vcombine.high %v4669_v32, %v4669_v32  ;;  %11543 = vmatprep.subr.bf16.mxu1 %v10138_v63 }
 0x2a8   : > { %v6177_v41 = vsel %vm6160_vm1, %v6041_v17, %v6176_v3  ;;  %v5492_v5 = vmax.f32 %v5490_v15, %v5491_v60  ;;  %v5498_v26 = vrot.slane %v5497_v9, 2  ;;  %v5511_v13 = vmax.f32 %v5509_v23, %v5510_v21  ;;  %11545 = vmatpush3.bf16.msra.mxu1 %v10138_v63  ;;  %v14778_v21 = vld [vmem:[#allocation4_spill] sm:$0xff] }
 0x2a9   : > { %v6178_v20 = vsel %vm6162_vm2, %v6042_v39, %v6177_v41  ;;  %v5505_v51 = vrot.slane %v5504_v12, 2  ;;  %v5460_v2 = vsel %vm5123_vm6, %v4662_v44, -inf  ;;  %v5467_v14 = vsel %vm5123_vm6, %v4670_v27, -inf  ;;  %v14777_v39 = vld [vmem:[#allocation32_spill] sm:$0xff] }
 0x2aa   : > { %v6179_v40 = vsel %vm6164_vm3, %v6043_v59, %v6178_v20  ;;  %v5493_v37 = vrot.slane %v5492_v5, 1  ;;  %v5499_v33 = vmax.f32 %v5497_v9, %v5498_v26  ;;  %v5512_v52 = vrot.slane %v5511_v13, 2 }
 0x2ab   : > { %6225 = vst.msk [vmem:[#allocation2 + $0x19] sm:$0xff] %vm6084_vm13, %v6179_v40  ;;  %v5506_v25 = vmax.f32 %v5504_v12, %v5505_v51  ;;  %v5461_v35 = vrot.slane %v5460_v2, 4  ;;  %v5468_v17 = vrot.slane %v5467_v14, 4  ;;  %v5474_v57 = vsel %vm5123_vm6, %v4669_v32, -inf  ;;  %v13817_v32 = vpop.f32.mrb[59].mxu0 }
 0x2ac   : > { %v13803_v36 = vmul.f32 %v14777_v39, %v14776_v30  ;;  %v5500_v1 = vrot.slane %v5499_v33, 1  ;;  %v5513_v8 = vmax.f32 %v5511_v13, %v5512_v52  ;;  %v5475_v31 = vrot.slane %v5474_v57, 4 }
 0x2ad   : > { %v5507_v38 = vrot.slane %v5506_v25, 1  ;;  %v5462_v59 = vmax.f32 %v5460_v2, %v5461_v35  ;;  %v5469_v47 = vmax.f32 %v5467_v14, %v5468_v17  ;;  %v5481_v53 = vsel %vm5123_vm6, %v4671_v58, -inf  ;;  %v14779_v58 = vld [vmem:[#allocation15_spill] sm:$0xff] }
 0x2ae   : > { %v13806_v48 = vmax.f32 %v5492_v5, %v5493_v37  ;;  %v13808_v45 = vmax.f32 %v5499_v33, %v5500_v1  ;;  %v5476_v6 = vmax.f32 %v5474_v57, %v5475_v31  ;;  %v5482_v54 = vrot.slane %v5481_v53, 4 }
 0x2af   : > { %v5514_v4 = vrot.slane %v5513_v8, 1  ;;  %v5463_v24 = vrot.slane %v5462_v59, 2  ;;  %v5470_v56 = vrot.slane %v5469_v47, 2  ;;  %v4370_v15 = vadd.f32 %v13752_v62, %v13770_v28 }
 0x2b0   : > { %v13813_v46 = vmax.f32 %v5506_v25, %v5507_v38  ;;  %v5477_v19 = vrot.slane %v5476_v6, 2  ;;  %v5483_v23 = vmax.f32 %v5481_v53, %v5482_v54  ;;  %v4331_v44 = vmul.f32 %v13742_v49, %v13765_v10 }
 0x2b1   : > { %v5464_v43 = vmax.f32 %v5462_v59, %v5463_v24  ;;  %v5471_v60 = vmax.f32 %v5469_v47, %v5470_v56  ;;  %v4402_v9 = vmax.f32 %v4370_v15, 0.0  ;;  %v650_v3 = vadd.s32 136, %v14778_v21 }
 0x2b2   : > { %v5478_v12 = vmax.f32 %v5476_v6, %v5477_v19  ;;  %v5484_v27 = vrot.slane %v5483_v23, 2  ;;  %v4369_v28 = vadd.f32 %v13752_v62, %v4331_v44  ;;  %v13823_v41 = vadd.f32 %v13555_v50, %v14779_v58 }
 0x2b3   : > { %v5465_v5 = vrot.slane %v5464_v43, 1  ;;  %v5472_v26 = vrot.slane %v5471_v60, 1  ;;  %v4706_v13 = vcombine.high %v4402_v9, %v4402_v9  ;;  %v4713_v10 = vrot.slane %v4402_v9, %v13436_v42 }
 0x2b4   : > { %v13826_v20 = vmax.f32 %v5513_v8, %v5514_v4  ;;  %v5479_v51 = vrot.slane %v5478_v12, 1  ;;  %v5485_v2 = vmax.f32 %v5483_v23, %v5484_v27  ;;  %v4401_v14 = vmax.f32 %v4369_v28, 0.0  ;;  %v13836_v8 = vpop.f32.mrb[60].mxu0 }
 0x2b5   : > { %v13828_v40 = vmax.f32 %v5464_v43, %v5465_v5  ;;  %v4720_v37 = vrot.slane %v4706_v13, %v13436_v42  ;;  %v4721_v33 = vcombine.high %v4713_v10, %v4713_v10  ;;  %v788_v52 = vand.u32 15, %v650_v3 }
 0x2b6   : > { %v13831_v25 = vmax.f32 %v5471_v60, %v5472_v26  ;;  %v5486_v50 = vrot.slane %v5485_v2, 1  ;;  %v5544_v35 = vsel %vm5123_vm6, %v4713_v10, -inf  ;;  %v4689_v17 = vcombine.high %v4401_v14, %v4401_v14 }
 0x2b7   : > { %v4722_v57 = vcombine.high %v4720_v37, %v4720_v37  ;;  %v5545_v30 = vrot.slane %v5544_v35, 4  ;;  %v5551_v39 = vsel %vm5123_vm6, %v4721_v33, -inf  ;;  %v5558_v1 = vsel %vm5123_vm6, %v4720_v37, -inf }
 0x2b8   : > { %v13838_v31 = vmax.f32 %v5478_v12, %v5479_v51  ;;  %v5552_v38 = vrot.slane %v5551_v39, 4  ;;  %v5559_v59 = vrot.slane %v5558_v1, 4  ;;  %v4696_v47 = vrot.slane %v4401_v14, %v13436_v42 }
 0x2b9   : > { %v13841_v53 = vmax.f32 %v5485_v2, %v5486_v50  ;;  %v5546_v6 = vmax.f32 %v5544_v35, %v5545_v30  ;;  %v5565_v54 = vsel %vm5123_vm6, %v4722_v57, -inf  ;;  %v4703_v63 = vrot.slane %v4689_v17, %v13436_v42 }
 0x2ba   : > { %v5553_v4 = vmax.f32 %v5551_v39, %v5552_v38  ;;  %v5560_v24 = vmax.f32 %v5558_v1, %v5559_v59  ;;  %v5566_v56 = vrot.slane %v5565_v54, 4  ;;  %v4704_v15 = vcombine.high %v4696_v47, %v4696_v47 }
 0x2bb   : > { %vm13845_vm4 = vcmp.lt.s32.totalorder %v788_v52, 15  ;;  %v5547_v23 = vrot.slane %v5546_v6, 2  ;;  %v4705_v44 = vcombine.high %v4703_v63, %v4703_v63  ;;  %v5516_v43 = vsel %vm5123_vm6, %v4696_v47, -inf }
 0x2bc   : > { %v5530_v60 = vsel %vm5123_vm6, %v4703_v63, -inf  ;;  %v5554_v9 = vrot.slane %v5553_v4, 2  ;;  %v5561_v3 = vrot.slane %v5560_v24, 2  ;;  %v5567_v12 = vmax.f32 %v5565_v54, %v5566_v56 }
 0x2bd   : > { %v5517_v27 = vrot.slane %v5516_v43, 4  ;;  %v5548_v28 = vmax.f32 %v5546_v6, %v5547_v23  ;;  %v5523_v58 = vsel %vm5123_vm6, %v4704_v15, -inf  ;;  %v5531_v5 = vrot.slane %v5530_v60, 4 }
 0x2be   : > { %v5537_v26 = vsel %vm5123_vm6, %v4705_v44, -inf  ;;  %v5555_v13 = vmax.f32 %v5553_v4, %v5554_v9  ;;  %v5562_v10 = vmax.f32 %v5560_v24, %v5561_v3  ;;  %v5568_v51 = vrot.slane %v5567_v12, 2 }
 0x2bf   : > { %v5518_v2 = vmax.f32 %v5516_v43, %v5517_v27  ;;  %v5549_v14 = vrot.slane %v5548_v28, 1  ;;  %v5524_v37 = vrot.slane %v5523_v58, 4  ;;  %v5532_v33 = vmax.f32 %v5530_v60, %v5531_v5 }
 0x2c0   : > { %v5538_v52 = vrot.slane %v5537_v26, 4  ;;  %v5556_v50 = vrot.slane %v5555_v13, 1  ;;  %v5563_v35 = vrot.slane %v5562_v10, 1  ;;  %v5569_v17 = vmax.f32 %v5567_v12, %v5568_v51  ;;  %v14783_v51 = vld [vmem:[#allocation12_spill] sm:$0xff] }
 0x2c1   : > { %v5519_v57 = vrot.slane %v5518_v2, 2  ;;  %v13853_v30 = vmax.f32 %v5548_v28, %v5549_v14  ;;  %v5525_v39 = vmax.f32 %v5523_v58, %v5524_v37  ;;  %v5533_v1 = vrot.slane %v5532_v33, 2 }
 0x2c2   : > { %v5539_v38 = vmax.f32 %v5537_v26, %v5538_v52  ;;  %v13855_v59 = vmax.f32 %v5555_v13, %v5556_v50  ;;  %v13857_v47 = vmax.f32 %v5562_v10, %v5563_v35  ;;  %v5570_v6 = vrot.slane %v5569_v17, 1 }
 0x2c3   : > { %v5520_v54 = vmax.f32 %v5518_v2, %v5519_v57  ;;  %v6048_v63 = vmax.f32 %v13806_v48, %v13853_v30  ;;  %v5526_v4 = vrot.slane %v5525_v39, 2  ;;  %v5534_v24 = vmax.f32 %v5532_v33, %v5533_v1  ;;  %v6405_v48 = vld [vmem:[#allocation2 + $0x11] sm:$0xff] }
 0x2c4   : > { %v5540_v56 = vrot.slane %v5539_v38, 2  ;;  %v13861_v15 = vmax.f32 %v5569_v17, %v5570_v6  ;;  %v6049_v23 = vmax.f32 %v13808_v45, %v13855_v59  ;;  %v6050_v44 = vmax.f32 %v13813_v46, %v13857_v47  ;;  %11161 = vmatmul.mubr.msk.f32.vlgmr.msra.gmra.mrb[40].mxu1 %vm6084_vm13, %v6405_v48 }
 0x2c5   : > { %v5521_v43 = vrot.slane %v5520_v54, 1  ;;  %v5527_v60 = vmax.f32 %v5525_v39, %v5526_v4  ;;  %v5535_v9 = vrot.slane %v5534_v24, 1  ;;  %v14782_v12 = vmov 0.0   ;;  %v14785_v39 = vld [vmem:[#allocation24_spill] sm:$0xff] }
 0x2c6   : > { %v5541_v3 = vmax.f32 %v5539_v38, %v5540_v56  ;;  %v9656_v27 = vsel %vm13845_vm4, 1.0, %v14782_v12  ;;  %v6051_v28 = vmax.f32 %v13826_v20, %v13861_v15  ;;  %v4333_v45 = vmul.f32 %v13742_v49, %v13823_v41  ;;  %v14784_v20 = vld [vmem:[#allocation23_spill] sm:$0xff] }
 0x2c7   : > { %v5522_v58 = vmax.f32 %v5520_v54, %v5521_v43  ;;  %v4264_v5 = vmul.f32 %v13553_v7, %v9656_v27  ;;  %v5528_v46 = vrot.slane %v5527_v60, 1  ;;  %v5536_v26 = vmax.f32 %v5534_v24, %v5535_v9  ;;  %v14786_v43 = vld [vmem:[#allocation13_spill] sm:$0xff] }
 0x2c8   : > { %v5542_v13 = vrot.slane %v5541_v3, 1  ;;  %v652_v10 = vadd.s32 152, %v14778_v21  ;;  %v4371_v14 = vadd.f32 %v13752_v62, %v4333_v45  ;;  %v4297_v37 = vadd.f32 %v13603_v22, %v14784_v20 }
 0x2c9   : > { %v6044_v19 = vmax.f32 %v13828_v40, %v5522_v58  ;;  %v4296_v2 = vadd.f32 %v4264_v5, %v14783_v51  ;;  %v5529_v7 = vmax.f32 %v5527_v60, %v5528_v46  ;;  %v6046_v41 = vmax.f32 %v13838_v31, %v5536_v26 }
 0x2ca   : > { %v5543_v33 = vmax.f32 %v5541_v3, %v5542_v13  ;;  %v802_v52 = vand.u32 15, %v652_v10  ;;  %v4403_v35 = vmax.f32 %v4371_v14, 0.0  ;;  %v4335_v17 = vmul.f32 %v13742_v49, %v4297_v37 }
 0x2cb   : > { %v4334_v50 = vmul.f32 %v13742_v49, %v4296_v2  ;;  %v13886_v57 = vadd.s32 168, %v14778_v21  ;;  %v6045_v40 = vmax.f32 %v13831_v25, %v5529_v7  ;;  %v13892_v22 = vadd.f32 %v13641_v34, %v14785_v39 }
 0x2cc   : > { %v6047_v30 = vmax.f32 %v13841_v53, %v5543_v33  ;;  %vm3190_vm5 = vcmp.lt.s32.totalorder %v802_v52, 15  ;;  %v4723_v1 = vcombine.high %v4403_v35, %v4403_v35  ;;  %v4730_v38 = vrot.slane %v4403_v35, %v13436_v42 }
 0x2cd   : > { %v4372_v31 = vadd.f32 %v13752_v62, %v4334_v50  ;;  %v9657_v59 = vsel %vm3190_vm5, 1.0, %v14782_v12  ;;  %v6180_v47 = vsel %vm6152_vm12, %v6045_v40, %v6044_v19  ;;  %v4373_v25 = vadd.f32 %v13752_v62, %v4335_v17 }
 0x2ce   : > { %v4266_v6 = vmul.f32 %v13569_v11, %v9657_v59  ;;  %v816_v53 = vand.u32 15, %v13886_v57  ;;  %v6181_v54 = vsel %vm6154_vm14, %v6046_v41, %v6180_v47  ;;  %v4737_v34 = vrot.slane %v4723_v1, %v13436_v42 }
 0x2cf   : > { %v4404_v4 = vmax.f32 %v4372_v31, 0.0  ;;  %v4738_v24 = vcombine.high %v4730_v38, %v4730_v38  ;;  %v6182_v56 = vsel %vm6156_vm15, %v6047_v30, %v6181_v54  ;;  %v5572_v15 = vsel %vm5123_vm6, %v4730_v38, -inf }
 0x2d0   : > { %v4298_v60 = vadd.f32 %v4266_v6, %v14786_v43  ;;  %v13906_v9 = vmax.f32 %v4373_v25, 0.0  ;;  %v6183_v11 = vsel %vm6158_vm0, %v6048_v63, %v6182_v56  ;;  %v4739_v48 = vcombine.high %v4737_v34, %v4737_v34 }
 0x2d1   : > { %v4740_v3 = vcombine.high %v4404_v4, %v4404_v4  ;;  %v4747_v27 = vrot.slane %v4404_v4, %v13436_v42  ;;  %v6184_v58 = vsel %vm6160_vm1, %v6049_v23, %v6183_v11  ;;  %v5573_v5 = vrot.slane %v5572_v15, 4 }
 0x2d2   : > { %v5579_v45 = vsel %vm5123_vm6, %v4738_v24, -inf  ;;  %v5586_v46 = vsel %vm5123_vm6, %v4737_v34, -inf  ;;  %v6185_v26 = vsel %vm6162_vm2, %v6050_v44, %v6184_v58  ;;  %vm3192_vm7 = vcmp.lt.s32.totalorder %v816_v53, 15 }
 0x2d3   : > { %v4754_v13 = vrot.slane %v4740_v3, %v13436_v42  ;;  %v4755_v10 = vcombine.high %v4747_v27, %v4747_v27  ;;  %v5600_v19 = vsel %vm5123_vm6, %v4747_v27, -inf  ;;  %v6186_v63 = vsel %vm6164_vm3, %v6051_v28, %v6185_v26 }
 0x2d4   : > { %v5601_v51 = vrot.slane %v5600_v19, 4  ;;  %v5574_v2 = vmax.f32 %v5572_v15, %v5573_v5  ;;  %v5580_v14 = vrot.slane %v5579_v45, 4  ;;  %6226 = vst.msk [vmem:[#allocation2 + $0x21] sm:$0xff] %vm6084_vm13, %v6186_v63  ;;  %v5587_v7 = vrot.slane %v5586_v46, 4 }
 0x2d5   : > { %v4756_v23 = vcombine.high %v4754_v13, %v4754_v13  ;;  %v5607_v20 = vsel %vm5123_vm6, %v4755_v10, -inf  ;;  %v5614_v37 = vsel %vm5123_vm6, %v4754_v13, -inf  ;;  %v5593_v28 = vsel %vm5123_vm6, %v4739_v48, -inf }
 0x2d6   : > { %v5602_v33 = vmax.f32 %v5600_v19, %v5601_v51  ;;  %v5608_v44 = vrot.slane %v5607_v20, 4  ;;  %v5615_v41 = vrot.slane %v5614_v37, 4  ;;  %v5575_v52 = vrot.slane %v5574_v2, 2 }
 0x2d7   : > { %v5621_v50 = vsel %vm5123_vm6, %v4756_v23, -inf  ;;  %v5581_v35 = vmax.f32 %v5579_v45, %v5580_v14  ;;  %v5588_v17 = vmax.f32 %v5586_v46, %v5587_v7  ;;  %v5594_v47 = vrot.slane %v5593_v28, 4 }
 0x2d8   : > { %v5603_v40 = vrot.slane %v5602_v33, 2  ;;  %v5609_v30 = vmax.f32 %v5607_v20, %v5608_v44  ;;  %v5616_v39 = vmax.f32 %v5614_v37, %v5615_v41  ;;  %v5622_v31 = vrot.slane %v5621_v50, 4 }
 0x2d9   : > { %v5576_v1 = vmax.f32 %v5574_v2, %v5575_v52  ;;  %v5582_v38 = vrot.slane %v5581_v35, 2  ;;  %v5589_v59 = vrot.slane %v5588_v17, 2  ;;  %v5595_v15 = vmax.f32 %v5593_v28, %v5594_v47 }
 0x2da   : > { %v5604_v6 = vmax.f32 %v5602_v33, %v5603_v40  ;;  %v5610_v25 = vrot.slane %v5609_v30, 2  ;;  %v5617_v54 = vrot.slane %v5616_v39, 2  ;;  %v5623_v4 = vmax.f32 %v5621_v50, %v5622_v31 }
 0x2db   : > { %v5577_v34 = vrot.slane %v5576_v1, 1  ;;  %v5583_v24 = vmax.f32 %v5581_v35, %v5582_v38  ;;  %v5590_v56 = vmax.f32 %v5588_v17, %v5589_v59  ;;  %v5596_v45 = vrot.slane %v5595_v15, 2 }
 0x2dc   : > { %v5605_v43 = vrot.slane %v5604_v6, 1  ;;  %v5611_v11 = vmax.f32 %v5609_v30, %v5610_v25  ;;  %v5618_v3 = vmax.f32 %v5616_v39, %v5617_v54  ;;  %v5624_v27 = vrot.slane %v5623_v4, 2  ;;  %v14787_v54 = vld [vmem:[#allocation14_spill] sm:$0xff] }
 0x2dd   : > { %v13922_v48 = vmax.f32 %v5576_v1, %v5577_v34  ;;  %v5584_v58 = vrot.slane %v5583_v24, 1  ;;  %v5591_v5 = vrot.slane %v5590_v56, 1  ;;  %v5597_v51 = vmax.f32 %v5595_v15, %v5596_v45 }
 0x2de   : > { %v13924_v46 = vmax.f32 %v5604_v6, %v5605_v43  ;;  %v5612_v26 = vrot.slane %v5611_v11, 1  ;;  %v5619_v13 = vrot.slane %v5618_v3, 1  ;;  %v5625_v10 = vmax.f32 %v5623_v4, %v5624_v27 }
 0x2df   : > { %v13926_v19 = vmax.f32 %v5583_v24, %v5584_v58  ;;  %v13928_v63 = vmax.f32 %v5590_v56, %v5591_v5  ;;  %v4336_v2 = vmul.f32 %v13742_v49, %v4298_v60  ;;  %v4757_v37 = vcombine.high %v13906_v9, %v13906_v9 }
 0x2e0   : > { %v13931_v14 = vmax.f32 %v5611_v11, %v5612_v26  ;;  %v13933_v23 = vmax.f32 %v5618_v3, %v5619_v13  ;;  %v5626_v20 = vrot.slane %v5625_v10, 1  ;;  %v5598_v7 = vrot.slane %v5597_v51, 1 }
 0x2e1   : > { %v4374_v33 = vadd.f32 %v13752_v62, %v4336_v2  ;;  %v4764_v44 = vrot.slane %v13906_v9, %v13436_v42  ;;  %v4771_v60 = vrot.slane %v4757_v37, %v13436_v42  ;;  %v9658_v52 = vsel %vm3192_vm7, 1.0, %v14782_v12  ;;  %v13953_v9 = vpop.f32.mrb[61].mxu0 }
 0x2e2   : > { %v13942_v41 = vmax.f32 %v5625_v10, %v5626_v20  ;;  %v13948_v50 = vmul.f32 %v13742_v49, %v13892_v22  ;;  %v13950_v35 = vmax.f32 %v5597_v51, %v5598_v7  ;;  %v4268_v39 = vmul.f32 %v13618_v55, %v9658_v52  ;;  %v13957_v31 = vpop.f32.mrb[62].mxu0 }
 0x2e3   : > { %v4406_v17 = vmax.f32 %v4374_v33, 0.0  ;;  %v4772_v28 = vcombine.high %v4764_v44, %v4764_v44  ;;  %v5628_v40 = vsel %vm5123_vm6, %v4764_v44, -inf  ;;  %v4773_v57 = vcombine.high %v4771_v60, %v4771_v60 }
 0x2e4   : > { %v5629_v53 = vrot.slane %v5628_v40, 4  ;;  %v5642_v30 = vsel %vm5123_vm6, %v4771_v60, -inf  ;;  %v4300_v4 = vadd.f32 %v4268_v39, %v14787_v54  ;;  %vm6086_vm4 = vcmask 253952  }
 0x2e5   : > { %v4774_v1 = vcombine.high %v4406_v17, %v4406_v17  ;;  %v4781_v22 = vrot.slane %v4406_v17, %v13436_v42  ;;  %v5635_v38 = vsel %vm5123_vm6, %v4772_v28, -inf  ;;  %v5643_v59 = vrot.slane %v5642_v30, 4  ;;  %6087 = vst.msk [vmem:[#allocation2 + $0x8] sm:$0x1] %vm6086_vm4, %v14782_v12  ;;  %6232 = vst.msk [vmem:[#allocation2 + $0x51] sm:$0x1] %vm6086_vm4, %v14782_v12 }
 0x2e6   : > { %v5630_v47 = vmax.f32 %v5628_v40, %v5629_v53  ;;  %v5636_v6 = vrot.slane %v5635_v38, 4  ;;  %v5649_v25 = vsel %vm5123_vm6, %v4773_v57, -inf }
 0x2e7   : > { %v4788_v34 = vrot.slane %v4774_v1, %v13436_v42  ;;  %v4789_v24 = vcombine.high %v4781_v22, %v4781_v22  ;;  %v5656_v56 = vsel %vm5123_vm6, %v4781_v22, -inf  ;;  %v5644_v55 = vmax.f32 %v5642_v30, %v5643_v59 }
 0x2e8   : > { %v5657_v15 = vrot.slane %v5656_v56, 4  ;;  %v5631_v43 = vrot.slane %v5630_v47, 2  ;;  %v5637_v11 = vmax.f32 %v5635_v38, %v5636_v6  ;;  %v5650_v3 = vrot.slane %v5649_v25, 4 }
 0x2e9   : > { %v4790_v27 = vcombine.high %v4788_v34, %v4788_v34  ;;  %v5663_v58 = vsel %vm5123_vm6, %v4789_v24, -inf  ;;  %v5670_v5 = vsel %vm5123_vm6, %v4788_v34, -inf  ;;  %v5645_v45 = vrot.slane %v5644_v55, 2 }
 0x2ea   : > { %v5658_v26 = vmax.f32 %v5656_v56, %v5657_v15  ;;  %v5664_v13 = vrot.slane %v5663_v58, 4  ;;  %v5671_v10 = vrot.slane %v5670_v5, 4  ;;  %v5632_v51 = vmax.f32 %v5630_v47, %v5631_v43 }
 0x2eb   : > { %v5677_v2 = vsel %vm5123_vm6, %v4790_v27, -inf  ;;  %v5638_v20 = vrot.slane %v5637_v11, 2  ;;  %v5646_v37 = vmax.f32 %v5644_v55, %v5645_v45  ;;  %v5651_v7 = vmax.f32 %v5649_v25, %v5650_v3 }
 0x2ec   : > { %v5659_v33 = vrot.slane %v5658_v26, 2  ;;  %v5665_v44 = vmax.f32 %v5663_v58, %v5664_v13  ;;  %v5672_v60 = vmax.f32 %v5670_v5, %v5671_v10  ;;  %v5678_v52 = vrot.slane %v5677_v2, 4 }
 0x2ed   : > { %v5633_v17 = vrot.slane %v5632_v51, 1  ;;  %v5639_v28 = vmax.f32 %v5637_v11, %v5638_v20  ;;  %v5647_v40 = vrot.slane %v5646_v37, 1  ;;  %v5652_v57 = vrot.slane %v5651_v7, 2 }
 0x2ee   : > { %v5660_v53 = vmax.f32 %v5658_v26, %v5659_v33  ;;  %v5666_v30 = vrot.slane %v5665_v44, 2  ;;  %v5673_v39 = vrot.slane %v5672_v60, 2  ;;  %v5679_v1 = vmax.f32 %v5677_v2, %v5678_v52 }
 0x2ef   : > { %v5634_v22 = vmax.f32 %v5632_v51, %v5633_v17  ;;  %v5640_v38 = vrot.slane %v5639_v28, 1  ;;  %v5648_v59 = vmax.f32 %v5646_v37, %v5647_v40  ;;  %v5653_v47 = vmax.f32 %v5651_v7, %v5652_v57 }
 0x2f0   : > { %v5661_v6 = vrot.slane %v5660_v53, 1  ;;  %v5667_v54 = vmax.f32 %v5665_v44, %v5666_v30  ;;  %v5674_v34 = vmax.f32 %v5672_v60, %v5673_v39  ;;  %v5680_v25 = vrot.slane %v5679_v1, 2 }
 0x2f1   : > { %v5641_v24 = vmax.f32 %v5639_v28, %v5640_v38  ;;  %v5654_v56 = vrot.slane %v5653_v47, 1  ;;  %v6052_v55 = vmax.f32 %v13922_v48, %v5634_v22  ;;  %v6054_v15 = vmax.f32 %v13928_v63, %v5648_v59  ;;  %v14788_v28 = vld [vmem:[#allocation25_spill] sm:$0xff] }
 0x2f2   : > { %v5662_v43 = vmax.f32 %v5660_v53, %v5661_v6  ;;  %v5668_v11 = vrot.slane %v5667_v54, 1  ;;  %v5675_v3 = vrot.slane %v5674_v34, 1  ;;  %v5681_v27 = vmax.f32 %v5679_v1, %v5680_v25 }
 0x2f3   : > { %v5655_v58 = vmax.f32 %v5653_v47, %v5654_v56  ;;  %v6053_v5 = vmax.f32 %v13926_v19, %v5641_v24  ;;  %v4338_v45 = vmul.f32 %v13742_v49, %v4300_v4  ;;  %v4375_v26 = vadd.f32 %v13752_v62, %v13948_v50 }
 0x2f4   : > { %v5669_v13 = vmax.f32 %v5667_v54, %v5668_v11  ;;  %v5676_v10 = vmax.f32 %v5674_v34, %v5675_v3  ;;  %v5682_v51 = vrot.slane %v5681_v27, 1  ;;  %v6056_v2 = vmax.f32 %v13924_v46, %v5662_v43 }
 0x2f5   : > { %v6055_v48 = vmax.f32 %v13950_v35, %v5655_v58  ;;  %v6187_v63 = vsel %vm6152_vm12, %v6053_v5, %v6052_v55  ;;  %v4376_v20 = vadd.f32 %v13752_v62, %v4338_v45  ;;  %v4407_v37 = vmax.f32 %v4375_v26, 0.0 }
 0x2f6   : > { %v5683_v7 = vmax.f32 %v5681_v27, %v5682_v51  ;;  %v6057_v19 = vmax.f32 %v13931_v14, %v5669_v13  ;;  %v6058_v4 = vmax.f32 %v13933_v23, %v5676_v10  ;;  %v6188_v33 = vsel %vm6154_vm14, %v6054_v15, %v6187_v63  ;;  %v14005_v15 = vpop.f32.mrb[63].mxu0 }
 0x2f7   : > { %v6189_v50 = vsel %vm6156_vm15, %v6055_v48, %v6188_v33  ;;  %v4408_v44 = vmax.f32 %v4376_v20, 0.0  ;;  %v4791_v60 = vcombine.high %v4407_v37, %v4407_v37  ;;  %v4798_v46 = vrot.slane %v4407_v37, %v13436_v42 }
 0x2f8   : > { %v6059_v35 = vmax.f32 %v13942_v41, %v5683_v7  ;;  %v6190_v52 = vsel %vm6158_vm0, %v6056_v2, %v6189_v50  ;;  %v13986_v17 = vadd.s32 184, %v14778_v21  ;;  %v13990_v14 = vadd.f32 %v13706_v61, %v14788_v28  ;;  %v14010_v7 = vld [vmem:[#allocation2 + $0x19] sm:$0xff] }
 0x2f9   : > { %v6191_v23 = vsel %vm6160_vm1, %v6057_v19, %v6190_v52  ;;  %v4808_v40 = vcombine.high %v4408_v44, %v4408_v44  ;;  %v4815_v57 = vrot.slane %v4408_v44, %v13436_v42  ;;  %v4805_v53 = vrot.slane %v4791_v60, %v13436_v42  ;;  %v14012_v19 = vld [vmem:[#allocation2 + $0x21] sm:$0xff]  ;;  %11163 = vmatprep.mubr.msk.f32.mxu1 %vm6084_vm13, %v14010_v7  ;;  %v10131_v60 = vld [vmem:[%s13540_s16 + $0x10] sm:$0xff]  }
 0x2fa   : > { %v6192_v30 = vsel %vm6162_vm2, %v6058_v4, %v6191_v23  ;;  %v4806_v39 = vcombine.high %v4798_v46, %v4798_v46  ;;  %v5684_v41 = vsel %vm5123_vm6, %v4798_v46, -inf  ;;  %v830_v1 = vand.u32 15, %v13986_v17  ;;  %11164 = vmatmul.mubr.msk.f32.gmra.mrb[42].mxu1 %vm6084_vm13, %v14012_v19  ;;  %11547 = vmatprep.subr.bf16.mxu1 %v10131_v60 }
 0x2fb   : > { %v6193_v22 = vsel %vm6164_vm3, %v6059_v35, %v6192_v30  ;;  %v4822_v38 = vrot.slane %v4808_v40, %v13436_v42  ;;  %v4823_v61 = vcombine.high %v4815_v57, %v4815_v57  ;;  %v5712_v59 = vsel %vm5123_vm6, %v4815_v57, -inf  ;;  %v10132_v40 = vld [vmem:[%s13540_s16 + $0x18] sm:$0xff]   ;;  %11549 = vmatpush3.bf16.msra.mxu1 %v10131_v60 }
 0x2fc   : > { %6227 = vst.msk [vmem:[#allocation2 + $0x29] sm:$0xff] %vm6084_vm13, %v6193_v22  ;;  %v5713_v47 = vrot.slane %v5712_v59, 4  ;;  %v4807_v6 = vcombine.high %v4805_v53, %v4805_v53  ;;  %v5685_v54 = vrot.slane %v5684_v41, 4  ;;  %v5691_v34 = vsel %vm5123_vm6, %v4806_v39, -inf  ;;  %11551 = vmatprep.subr.bf16.mxu1 %v10132_v40 }
 0x2fd   : > { %v4824_v25 = vcombine.high %v4822_v38, %v4822_v38  ;;  %v5719_v24 = vsel %vm5123_vm6, %v4823_v61, -inf  ;;  %v5726_v56 = vsel %vm5123_vm6, %v4822_v38, -inf  ;;  %v5692_v55 = vrot.slane %v5691_v34, 4 }
 0x2fe   : > { %v5714_v43 = vmax.f32 %v5712_v59, %v5713_v47  ;;  %v5720_v11 = vrot.slane %v5719_v24, 4  ;;  %v5727_v3 = vrot.slane %v5726_v56, 4  ;;  %v5686_v27 = vmax.f32 %v5684_v41, %v5685_v54  ;;  %v14789_v59 = vld [vmem:[#allocation22_spill] sm:$0xff]  ;;  %v14790_v47 = vld [vmem:[#allocation33_spill] sm:$0xff] }
 0x2ff   : > { %v5733_v58 = vsel %vm5123_vm6, %v4824_v25, -inf  ;;  %v5693_v5 = vmax.f32 %v5691_v34, %v5692_v55  ;;  %v5698_v45 = vsel %vm5123_vm6, %v4805_v53, -inf  ;;  %v5705_v26 = vsel %vm5123_vm6, %v4807_v6, -inf  ;;  %11553 = vmatpush3.bf16.msra.mxu1 %v10132_v40 }
 0x300   : > { %v5715_v13 = vrot.slane %v5714_v43, 2  ;;  %v5721_v10 = vmax.f32 %v5719_v24, %v5720_v11  ;;  %v5728_v51 = vmax.f32 %v5726_v56, %v5727_v3  ;;  %v5734_v2 = vrot.slane %v5733_v58, 4 }
 0x301   : > { %v5687_v48 = vrot.slane %v5686_v27, 2  ;;  %v5694_v63 = vrot.slane %v5693_v5, 2  ;;  %v5699_v20 = vrot.slane %v5698_v45, 4  ;;  %v5706_v37 = vrot.slane %v5705_v26, 4 }
 0x302   : > { %v5716_v4 = vmax.f32 %v5714_v43, %v5715_v13  ;;  %v5722_v33 = vrot.slane %v5721_v10, 2  ;;  %v5729_v50 = vrot.slane %v5728_v51, 2  ;;  %v5735_v44 = vmax.f32 %v5733_v58, %v5734_v2  ;;  %v14791_v2 = vld [vmem:[#allocation26_spill] sm:$0xff] }
 0x303   : > { %v5688_v46 = vmax.f32 %v5686_v27, %v5687_v48  ;;  %v5695_v35 = vmax.f32 %v5693_v5, %v5694_v63  ;;  %v5700_v52 = vmax.f32 %v5698_v45, %v5699_v20  ;;  %v5707_v28 = vmax.f32 %v5705_v26, %v5706_v37  ;;  %v14019_v23 = vld [vmem:[#allocation2 + $0x29] sm:$0xff] }
 0x304   : > { %v5717_v57 = vrot.slane %v5716_v4, 1  ;;  %v5723_v53 = vmax.f32 %v5721_v10, %v5722_v33  ;;  %v5730_v30 = vmax.f32 %v5728_v51, %v5729_v50  ;;  %v5736_v39 = vrot.slane %v5735_v44, 2  ;;  %11166 = vmatprep.mubr.msk.f32.mxu1 %vm6084_vm13, %v14019_v23  ;;  %v14793_v50 = vld [vmem:[#allocation28_spill] sm:$0xff] }
 0x305   : > { %v5689_v41 = vrot.slane %v5688_v46, 1  ;;  %v5696_v22 = vrot.slane %v5695_v35, 1  ;;  %v5701_v38 = vrot.slane %v5700_v52, 2  ;;  %v5708_v61 = vrot.slane %v5707_v28, 2 }
 0x306   : > { %v14026_v6 = vmul.f32 %v14790_v47, %v14789_v59  ;;  %v5724_v54 = vrot.slane %v5723_v53, 1  ;;  %v5731_v34 = vrot.slane %v5730_v30, 1  ;;  %v5737_v25 = vmax.f32 %v5735_v44, %v5736_v39 }
 0x307   : > { %v14028_v24 = vmax.f32 %v5716_v4, %v5717_v57  ;;  %v14030_v56 = vmax.f32 %v5688_v46, %v5689_v41  ;;  %v5702_v55 = vmax.f32 %v5700_v52, %v5701_v38  ;;  %v5709_v43 = vmax.f32 %v5707_v28, %v5708_v61  ;;  %v14794_v46 = vld [vmem:[#allocation8_spill] sm:$0xff]  ;;  %v14066_v52 = vld [vmem:[%s13540_s16 + $0x70] sm:$0xff]  }
 0x308   : > { %v14032_v11 = vmax.f32 %v5723_v53, %v5724_v54  ;;  %v5738_v3 = vrot.slane %v5737_v25, 1  ;;  %v14034_v27 = vmax.f32 %v5695_v35, %v5696_v22  ;;  %vm3194_vm8 = vcmp.lt.s32.totalorder %v830_v1, 15  ;;  %11555 = vmatprep.subr.bf16.mxu1 %v14066_v52 }
 0x309   : > { %v5703_v58 = vrot.slane %v5702_v55, 1  ;;  %v5710_v5 = vrot.slane %v5709_v43, 1  ;;  %v9659_v45 = vsel %vm3194_vm8, 1.0, %v14782_v12  ;;  %v4339_v26 = vmul.f32 %v13742_v49, %v13990_v14  ;;  %v14792_v14 = vld [vmem:[#allocation16_spill] sm:$0xff] }
 0x30a   : > { %v14041_v13 = vmax.f32 %v5730_v30, %v5731_v34  ;;  %v4270_v10 = vmul.f32 %v13701_v0, %v9659_v45  ;;  %v658_v51 = vadd.s32 200, %v14778_v21  ;;  %v4303_v48 = vadd.f32 %v13745_v29, %v14791_v2  ;;  %v14795_v34 = vld [vmem:[#allocation17_spill] sm:$0xff] }
 0x30b   : > { %v14047_v17 = vmax.f32 %v5737_v25, %v5738_v3  ;;  %v14049_v1 = vmax.f32 %v5702_v55, %v5703_v58  ;;  %v4377_v63 = vadd.f32 %v13752_v62, %v4339_v26  ;;  %v660_v20 = vadd.s32 216, %v14778_v21 }
 0x30c   : > { %v4302_v37 = vadd.f32 %v4270_v10, %v14792_v14  ;;  %v844_v4 = vand.u32 15, %v658_v51  ;;  %v4341_v33 = vmul.f32 %v13742_v49, %v4303_v48  ;;  %v14057_v0 = vadd.f32 %v13817_v32, %v14793_v50  ;;  %v14093_v51 = vld [vmem:[%s13402_s20] ss:$0 sm:$0xff]  ;;  %s14427_s20 = scalar_lea.vmem %s14701_s7, %s12043_s17 }
 0x30d   : > { %v14059_v44 = vmax.f32 %v5709_v43, %v5710_v5  ;;  %v4409_v29 = vmax.f32 %v4377_v63, 0.0  ;;  %v858_v60 = vand.u32 15, %v660_v20  ;;  %v14063_v35 = vadd.f32 %v14794_v46, %v13803_v36 }
 0x30e   : > { %v4340_v28 = vmul.f32 %v13742_v49, %v4302_v37  ;;  %vm3196_vm9 = vcmp.lt.s32.totalorder %v844_v4, 15  ;;  %v4379_v40 = vadd.f32 %v13752_v62, %v4341_v33  ;;  %v14071_v57 = vadd.s32 232, %v14778_v21 }
 0x30f   : > { %v4825_v32 = vcombine.high %v4409_v29, %v4409_v29  ;;  %v4832_v53 = vrot.slane %v4409_v29, %v13436_v42  ;;  %v9660_v30 = vsel %vm3196_vm9, 1.0, %v14782_v12  ;;  %vm3198_vm10 = vcmp.lt.s32.totalorder %v858_v60, 15 }
 0x310   : > { %v4378_v36 = vadd.f32 %v13752_v62, %v4340_v28  ;;  %v4272_v39 = vmul.f32 %v13714_v18, %v9660_v30  ;;  %v4411_v41 = vmax.f32 %v4379_v40, 0.0  ;;  %v9661_v49 = vsel %vm3198_vm10, 1.0, %v14782_v12 }
 0x311   : > { %v4839_v22 = vrot.slane %v4825_v32, %v13436_v42  ;;  %v4840_v38 = vcombine.high %v4832_v53, %v4832_v53  ;;  %v5740_v61 = vsel %vm5123_vm6, %v4832_v53, -inf  ;;  %v14082_v59 = vmul.f32 %v13776_v16, %v9661_v49 }
 0x312   : > { %v4410_v47 = vmax.f32 %v4378_v36, 0.0  ;;  %v5741_v54 = vrot.slane %v5740_v61, 4  ;;  %v4304_v25 = vadd.f32 %v4272_v39, %v14795_v34  ;;  %v4859_v55 = vcombine.high %v4411_v41, %v4411_v41 }
 0x313   : > { %v4841_v62 = vcombine.high %v4839_v22, %v4839_v22  ;;  %v5747_v18 = vsel %vm5123_vm6, %v4840_v38, -inf  ;;  %v5754_v43 = vsel %vm5123_vm6, %v4839_v22, -inf  ;;  %v14088_v3 = vrot.slane %v4411_v41, %v13436_v42 }
 0x314   : > { %v4842_v58 = vcombine.high %v4410_v47, %v4410_v47  ;;  %v4849_v5 = vrot.slane %v4410_v47, %v13436_v42  ;;  %v5742_v45 = vmax.f32 %v5740_v61, %v5741_v54  ;;  %v5748_v26 = vrot.slane %v5747_v18, 4 }
 0x315   : > { %v5755_v16 = vrot.slane %v5754_v43, 4  ;;  %v5761_v10 = vsel %vm5123_vm6, %v4841_v62, -inf  ;;  %v4342_v2 = vmul.f32 %v14093_v51, %v4304_v25  ;;  %v14097_v48 = vrot.slane %v4859_v55, %v13436_v42 }
 0x316   : > { %v4856_v63 = vrot.slane %v4842_v58, %v13436_v42  ;;  %v4857_v20 = vcombine.high %v4849_v5, %v4849_v5  ;;  %v5768_v14 = vsel %vm5123_vm6, %v4849_v5, -inf  ;;  %v5743_v37 = vrot.slane %v5742_v45, 2 }
 0x317   : > { %v5769_v4 = vrot.slane %v5768_v14, 4  ;;  %v5749_v33 = vmax.f32 %v5747_v18, %v5748_v26  ;;  %v5756_v50 = vmax.f32 %v5754_v43, %v5755_v16  ;;  %v5762_v29 = vrot.slane %v5761_v10, 4 }
 0x318   : > { %v4858_v60 = vcombine.high %v4856_v63, %v4856_v63  ;;  %v5775_v46 = vsel %vm5123_vm6, %v4857_v20, -inf  ;;  %v5782_v28 = vsel %vm5123_vm6, %v4856_v63, -inf  ;;  %v5744_v40 = vmax.f32 %v5742_v45, %v5743_v37 }
 0x319   : > { %v5770_v32 = vmax.f32 %v5768_v14, %v5769_v4  ;;  %v5776_v53 = vrot.slane %v5775_v46, 4  ;;  %v5783_v30 = vrot.slane %v5782_v28, 4  ;;  %v5750_v36 = vrot.slane %v5749_v33, 2 }
 0x31a   : > { %v5789_v39 = vsel %vm5123_vm6, %v4858_v60, -inf  ;;  %v5745_v41 = vrot.slane %v5744_v40, 1  ;;  %v5757_v49 = vrot.slane %v5756_v50, 2  ;;  %v5763_v22 = vmax.f32 %v5761_v10, %v5762_v29 }
 0x31b   : > { %v5771_v38 = vrot.slane %v5770_v32, 2  ;;  %v5777_v61 = vmax.f32 %v5775_v46, %v5776_v53  ;;  %v5784_v47 = vmax.f32 %v5782_v28, %v5783_v30  ;;  %v5790_v54 = vrot.slane %v5789_v39, 4 }
 0x31c   : > { %v5746_v34 = vmax.f32 %v5744_v40, %v5745_v41  ;;  %v5751_v25 = vmax.f32 %v5749_v33, %v5750_v36  ;;  %v5758_v55 = vmax.f32 %v5756_v50, %v5757_v49  ;;  %v5764_v62 = vrot.slane %v5763_v22, 2  ;;  %v14106_v33 = vld [vmem:[%s13415_s30] ss:$0 sm:$0xff]  ;;  %s581_s30 = scalar_lea.vmem %s14699_s5, %s14820_s22 }
 0x31d   : > { %v5772_v18 = vmax.f32 %v5770_v32, %v5771_v38  ;;  %v5778_v43 = vrot.slane %v5777_v61, 2  ;;  %v5785_v58 = vrot.slane %v5784_v47, 2  ;;  %v5791_v5 = vmax.f32 %v5789_v39, %v5790_v54 }
 0x31e   : > { %v5752_v45 = vrot.slane %v5751_v25, 1  ;;  %v5759_v26 = vrot.slane %v5758_v55, 1  ;;  %v5765_v16 = vmax.f32 %v5763_v22, %v5764_v62  ;;  %v6060_v63 = vmax.f32 %v14030_v56, %v5746_v34 }
 0x31f   : > { %v5773_v20 = vrot.slane %v5772_v18, 1  ;;  %v5779_v10 = vmax.f32 %v5777_v61, %v5778_v43  ;;  %v5786_v14 = vmax.f32 %v5784_v47, %v5785_v58  ;;  %v5792_v37 = vrot.slane %v5791_v5, 2 }
 0x320   : > { %v5753_v4 = vmax.f32 %v5751_v25, %v5752_v45  ;;  %v5760_v29 = vmax.f32 %v5758_v55, %v5759_v26  ;;  %v5766_v60 = vrot.slane %v5765_v16, 1  ;;  %v4380_v50 = vadd.f32 %v14106_v33, %v4342_v2 }
 0x321   : > { %v5774_v46 = vmax.f32 %v5772_v18, %v5773_v20  ;;  %v5780_v28 = vrot.slane %v5779_v10, 1  ;;  %v5787_v40 = vrot.slane %v5786_v14, 1  ;;  %v5793_v32 = vmax.f32 %v5791_v5, %v5792_v37 }
 0x322   : > { %v5767_v53 = vmax.f32 %v5765_v16, %v5766_v60  ;;  %v6061_v30 = vmax.f32 %v14034_v27, %v5753_v4  ;;  %v6062_v56 = vmax.f32 %v14049_v1, %v5760_v29  ;;  %v4412_v36 = vmax.f32 %v4380_v50, 0.0 }
 0x323   : > { %v5781_v39 = vmax.f32 %v5779_v10, %v5780_v28  ;;  %v5788_v41 = vmax.f32 %v5786_v14, %v5787_v40  ;;  %v5794_v49 = vrot.slane %v5793_v32, 1  ;;  %v6064_v22 = vmax.f32 %v14028_v24, %v5774_v46 }
 0x324   : > { %v6063_v38 = vmax.f32 %v14059_v44, %v5767_v53  ;;  %v6194_v61 = vsel %vm6152_vm12, %v6061_v30, %v6060_v63  ;;  %v4876_v2 = vcombine.high %v4412_v36, %v4412_v36  ;;  %v4883_v47 = vrot.slane %v4412_v36, %v13436_v42 }
 0x325   : > { %v5795_v54 = vmax.f32 %v5793_v32, %v5794_v49  ;;  %v6065_v34 = vmax.f32 %v14032_v11, %v5781_v39  ;;  %v6066_v27 = vmax.f32 %v14041_v13, %v5788_v41  ;;  %v6195_v1 = vsel %vm6154_vm14, %v6062_v56, %v6194_v61 }
 0x326   : > { %v6196_v25 = vsel %vm6156_vm15, %v6063_v38, %v6195_v1  ;;  %v4890_v55 = vrot.slane %v4876_v2, %v13436_v42  ;;  %v4891_v62 = vcombine.high %v4883_v47, %v4883_v47  ;;  %v5824_v24 = vsel %vm5123_vm6, %v4883_v47, -inf }
 0x327   : > { %v6067_v44 = vmax.f32 %v14047_v17, %v5795_v54  ;;  %v6197_v18 = vsel %vm6158_vm0, %v6064_v22, %v6196_v25  ;;  %v5825_v43 = vrot.slane %v5824_v24, 4  ;;  %v4874_v58 = vcombine.high %v14088_v3, %v14088_v3 }
 0x328   : > { %v6198_v11 = vsel %vm6160_vm1, %v6065_v34, %v6197_v18  ;;  %v4892_v13 = vcombine.high %v4890_v55, %v4890_v55  ;;  %v5831_v5 = vsel %vm5123_vm6, %v4891_v62, -inf  ;;  %v5838_v45 = vsel %vm5123_vm6, %v4890_v55, -inf }
 0x329   : > { %v6199_v26 = vsel %vm6162_vm2, %v6066_v27, %v6198_v11  ;;  %v5826_v16 = vmax.f32 %v5824_v24, %v5825_v43  ;;  %v5832_v63 = vrot.slane %v5831_v5, 4  ;;  %v5839_v20 = vrot.slane %v5838_v45, 4 }
 0x32a   : > { %v6200_v17 = vsel %vm6164_vm3, %v6067_v44, %v6199_v26  ;;  %v5845_v10 = vsel %vm5123_vm6, %v4892_v13, -inf  ;;  %v4875_v14 = vcombine.high %v14097_v48, %v14097_v48  ;;  %v5796_v37 = vsel %vm5123_vm6, %v14088_v3, -inf }
 0x32b   : > { %6228 = vst.msk [vmem:[#allocation2 + $0x31] sm:$0xff] %vm6084_vm13, %v6200_v17  ;;  %v5827_v4 = vrot.slane %v5826_v16, 2  ;;  %v5833_v29 = vmax.f32 %v5831_v5, %v5832_v63  ;;  %v5840_v60 = vmax.f32 %v5838_v45, %v5839_v20  ;;  %v5846_v50 = vrot.slane %v5845_v10, 4  ;;  %v14796_v5 = vld [vmem:[#allocation18_spill] sm:$0xff] }
 0x32c   : > { %v5797_v46 = vrot.slane %v5796_v37, 4  ;;  %v5803_v28 = vsel %vm5123_vm6, %v4874_v58, -inf  ;;  %v5810_v40 = vsel %vm5123_vm6, %v14097_v48, -inf  ;;  %v5817_v32 = vsel %vm5123_vm6, %v4875_v14, -inf }
 0x32d   : > { %v5828_v53 = vmax.f32 %v5826_v16, %v5827_v4  ;;  %v5834_v30 = vrot.slane %v5833_v29, 2  ;;  %v5841_v56 = vrot.slane %v5840_v60, 2  ;;  %v5847_v36 = vmax.f32 %v5845_v10, %v5846_v50 }
 0x32e   : > { %v5798_v39 = vmax.f32 %v5796_v37, %v5797_v46  ;;  %v5804_v3 = vrot.slane %v5803_v28, 4  ;;  %v5811_v41 = vrot.slane %v5810_v40, 4  ;;  %v5818_v49 = vrot.slane %v5817_v32, 4 }
 0x32f   : > { %v5829_v22 = vrot.slane %v5828_v53, 1  ;;  %v5835_v38 = vmax.f32 %v5833_v29, %v5834_v30  ;;  %v5842_v61 = vmax.f32 %v5840_v60, %v5841_v56  ;;  %v5848_v2 = vrot.slane %v5847_v36, 2 }
 0x330   : > { %v5799_v47 = vrot.slane %v5798_v39, 2  ;;  %v5805_v54 = vmax.f32 %v5803_v28, %v5804_v3  ;;  %v5812_v34 = vmax.f32 %v5810_v40, %v5811_v41  ;;  %v5819_v27 = vmax.f32 %v5817_v32, %v5818_v49 }
 0x331   : > { %v5836_v1 = vrot.slane %v5835_v38, 1  ;;  %v5843_v48 = vrot.slane %v5842_v61, 1  ;;  %v5849_v25 = vmax.f32 %v5847_v36, %v5848_v2  ;;  %v4343_v55 = vmul.f32 %v14093_v51, %v14057_v0 }
 0x332   : > { %v5800_v62 = vmax.f32 %v5798_v39, %v5799_v47  ;;  %v5806_v24 = vrot.slane %v5805_v54, 2  ;;  %v5813_v44 = vrot.slane %v5812_v34, 2  ;;  %v5820_v18 = vrot.slane %v5819_v27, 2  ;;  %v14142_v43 = vld [vmem:[#allocation2 + $0x31] sm:$0xff] }
 0x333   : > { %v14144_v58 = vmax.f32 %v5828_v53, %v5829_v22  ;;  %v14146_v11 = vmax.f32 %v5835_v38, %v5836_v1  ;;  %v5850_v13 = vrot.slane %v5849_v25, 1  ;;  %v4306_v45 = vadd.f32 %v14082_v59, %v14796_v5  ;;  %11167 = vmatmul.mubr.msk.f32.gmra.mrb[44].mxu1 %vm6084_vm13, %v14142_v43 }
 0x334   : > { %v5801_v26 = vrot.slane %v5800_v62, 1  ;;  %v5807_v16 = vmax.f32 %v5805_v54, %v5806_v24  ;;  %v5814_v0 = vmax.f32 %v5812_v34, %v5813_v44  ;;  %v5821_v63 = vmax.f32 %v5819_v27, %v5820_v18 }
 0x335   : > { %v14152_v20 = vmax.f32 %v5842_v61, %v5843_v48  ;;  %v4344_v17 = vmul.f32 %v14093_v51, %v4306_v45  ;;  %v4381_v10 = vadd.f32 %v14106_v33, %v4343_v55  ;;  %v872_v14 = vand.u32 15, %v14071_v57  ;;  %v14798_v61 = vld [vmem:[#allocation19_spill] sm:$0xff] }
 0x336   : > { %v14157_v37 = vmax.f32 %v5849_v25, %v5850_v13  ;;  %v5808_v4 = vrot.slane %v5807_v16, 1  ;;  %v5815_v29 = vrot.slane %v5814_v0, 1  ;;  %v5822_v59 = vrot.slane %v5821_v63, 1 }
 0x337   : > { %v4382_v60 = vadd.f32 %v14106_v33, %v4344_v17  ;;  %v4413_v50 = vmax.f32 %v4381_v10, 0.0  ;;  %vm3200_vm11 = vcmp.lt.s32.totalorder %v872_v14, 15  ;;  %v4307_v46 = vadd.f32 %v13953_v9, %v14063_v35  ;;  %v14797_v9 = vld [vmem:[#allocation10_spill] sm:$0xff] }
 0x338   : > { %v14162_v28 = vmax.f32 %v5800_v62, %v5801_v26  ;;  %v14164_v40 = vmax.f32 %v5807_v16, %v5808_v4  ;;  %v14166_v32 = vmax.f32 %v5814_v0, %v5815_v29  ;;  %v9662_v57 = vsel %vm3200_vm11, 1.0, %v14782_v12 }
 0x339   : > { %v4414_v53 = vmax.f32 %v4382_v60, 0.0  ;;  %v4893_v30 = vcombine.high %v4413_v50, %v4413_v50  ;;  %v4900_v56 = vrot.slane %v4413_v50, %v13436_v42  ;;  %v4276_v36 = vmul.f32 %v13836_v8, %v9662_v57 }
 0x33a   : > { %v14171_v39 = vmax.f32 %v5821_v63, %v5822_v59  ;;  %v4345_v3 = vmul.f32 %v14093_v51, %v4307_v46  ;;  %v14176_v35 = vadd.f32 %v14797_v9, %v14026_v6  ;;  %v14190_v6 = vadd.s32 248, %v14778_v21 }
 0x33b   : > { %v4910_v41 = vcombine.high %v4414_v53, %v4414_v53  ;;  %v4917_v49 = vrot.slane %v4414_v53, %v13436_v42  ;;  %v4907_v22 = vrot.slane %v4893_v30, %v13436_v42  ;;  %v4908_v38 = vcombine.high %v4900_v56, %v4900_v56 }
 0x33c   : > { %v5852_v8 = vsel %vm5123_vm6, %v4900_v56, -inf  ;;  %v14184_v2 = vadd.f32 %v4276_v36, %v14798_v61  ;;  %v14187_v47 = vadd.f32 %v14106_v33, %v4345_v3 }
 0x33d   : > { %v4924_v54 = vrot.slane %v4910_v41, %v13436_v42  ;;  %v4925_v34 = vcombine.high %v4917_v49, %v4917_v49  ;;  %v5880_v27 = vsel %vm5123_vm6, %v4917_v49, -inf  ;;  %v4909_v1 = vcombine.high %v4907_v22, %v4907_v22 }
 0x33e   : > { %v5881_v48 = vrot.slane %v5880_v27, 4  ;;  %v5853_v25 = vrot.slane %v5852_v8, 4  ;;  %v5859_v55 = vsel %vm5123_vm6, %v4908_v38, -inf  ;;  %v5866_v62 = vsel %vm5123_vm6, %v4907_v22, -inf }
 0x33f   : > { %v4926_v24 = vcombine.high %v4924_v54, %v4924_v54  ;;  %v5887_v44 = vsel %vm5123_vm6, %v4925_v34, -inf  ;;  %v5894_v18 = vsel %vm5123_vm6, %v4924_v54, -inf  ;;  %v5860_v13 = vrot.slane %v5859_v55, 4 }
 0x340   : > { %v5882_v5 = vmax.f32 %v5880_v27, %v5881_v48  ;;  %v5888_v45 = vrot.slane %v5887_v44, 4  ;;  %v5895_v26 = vrot.slane %v5894_v18, 4  ;;  %v5854_v16 = vmax.f32 %v5852_v8, %v5853_v25 }
 0x341   : > { %v5901_v0 = vsel %vm5123_vm6, %v4926_v24, -inf  ;;  %v5861_v63 = vmax.f32 %v5859_v55, %v5860_v13  ;;  %v5867_v17 = vrot.slane %v5866_v62, 4  ;;  %v5873_v10 = vsel %vm5123_vm6, %v4909_v1, -inf }
 0x342   : > { %v5883_v14 = vrot.slane %v5882_v5, 2  ;;  %v5889_v4 = vmax.f32 %v5887_v44, %v5888_v45  ;;  %v5896_v29 = vmax.f32 %v5894_v18, %v5895_v26  ;;  %v5902_v59 = vrot.slane %v5901_v0, 4 }
 0x343   : > { %v5855_v60 = vrot.slane %v5854_v16, 2  ;;  %v5862_v50 = vrot.slane %v5861_v63, 2  ;;  %v5868_v46 = vmax.f32 %v5866_v62, %v5867_v17  ;;  %v5874_v57 = vrot.slane %v5873_v10, 4 }
 0x344   : > { %v5884_v53 = vmax.f32 %v5882_v5, %v5883_v14  ;;  %v5890_v30 = vrot.slane %v5889_v4, 2  ;;  %v5897_v56 = vrot.slane %v5896_v29, 2  ;;  %v5903_v36 = vmax.f32 %v5901_v0, %v5902_v59 }
 0x345   : > { %v5856_v3 = vmax.f32 %v5854_v16, %v5855_v60  ;;  %v5863_v9 = vmax.f32 %v5861_v63, %v5862_v50  ;;  %v5869_v41 = vrot.slane %v5868_v46, 2  ;;  %v5875_v49 = vmax.f32 %v5873_v10, %v5874_v57 }
 0x346   : > { %v5885_v22 = vrot.slane %v5884_v53, 1  ;;  %v5891_v38 = vmax.f32 %v5889_v4, %v5890_v30  ;;  %v5898_v8 = vmax.f32 %v5896_v29, %v5897_v56  ;;  %v5904_v61 = vrot.slane %v5903_v36, 2 }
 0x347   : > { %v5857_v54 = vrot.slane %v5856_v3, 1  ;;  %v5864_v34 = vrot.slane %v5863_v9, 1  ;;  %v5870_v27 = vmax.f32 %v5868_v46, %v5869_v41  ;;  %v5876_v1 = vrot.slane %v5875_v49, 2 }
 0x348   : > { %v5886_v48 = vmax.f32 %v5884_v53, %v5885_v22  ;;  %v5892_v25 = vrot.slane %v5891_v38, 1  ;;  %v5899_v55 = vrot.slane %v5898_v8, 1  ;;  %v5905_v62 = vmax.f32 %v5903_v36, %v5904_v61 }
 0x349   : > { %v5858_v24 = vmax.f32 %v5856_v3, %v5857_v54  ;;  %v5865_v44 = vmax.f32 %v5863_v9, %v5864_v34  ;;  %v5871_v18 = vrot.slane %v5870_v27, 1  ;;  %v5877_v13 = vmax.f32 %v5875_v49, %v5876_v1 }
 0x34a   : > { %v5893_v5 = vmax.f32 %v5891_v38, %v5892_v25  ;;  %v5900_v45 = vmax.f32 %v5898_v8, %v5899_v55  ;;  %v5906_v26 = vrot.slane %v5905_v62, 1  ;;  %v6072_v16 = vmax.f32 %v14144_v58, %v5886_v48 }
 0x34b   : > { %v5872_v0 = vmax.f32 %v5870_v27, %v5871_v18  ;;  %v5878_v63 = vrot.slane %v5877_v13, 1  ;;  %v6068_v17 = vmax.f32 %v14162_v28, %v5858_v24  ;;  %v6069_v10 = vmax.f32 %v14164_v40, %v5865_v44 }
 0x34c   : > { %v5907_v14 = vmax.f32 %v5905_v62, %v5906_v26  ;;  %v6073_v4 = vmax.f32 %v14146_v11, %v5893_v5  ;;  %v6074_v29 = vmax.f32 %v14152_v20, %v5900_v45  ;;  %v4346_v59 = vmul.f32 %v14093_v51, %v14184_v2 }
 0x34d   : > { %v5879_v60 = vmax.f32 %v5877_v13, %v5878_v63  ;;  %v6070_v50 = vmax.f32 %v14166_v32, %v5872_v0  ;;  %v6201_v46 = vsel %vm6152_vm12, %v6069_v10, %v6068_v17  ;;  %v4415_v58 = vmax.f32 %v14187_v47, 0.0 }
 0x34e   : > { %v6075_v57 = vmax.f32 %v14157_v37, %v5907_v14  ;;  %v4384_v28 = vadd.f32 %v14106_v33, %v4346_v59  ;;  %v4309_v40 = vadd.f32 %v14005_v15, %v14176_v35  ;;  %v886_v32 = vand.u32 15, %v14190_v6 }
 0x34f   : > { %v6071_v11 = vmax.f32 %v14171_v39, %v5879_v60  ;;  %v6202_v20 = vsel %vm6154_vm14, %v6070_v50, %v6201_v46  ;;  %v4927_v53 = vcombine.high %v4415_v58, %v4415_v58  ;;  %v4934_v2 = vrot.slane %v4415_v58, %v13436_v42 }
 0x350   : > { %v4416_v30 = vmax.f32 %v4384_v28, 0.0  ;;  %vm3202_vm5 = vcmp.lt.s32.totalorder %v886_v32, 15  ;;  %v4347_v46 = vmul.f32 %v14093_v51, %v4309_v40 }
 0x351   : > { %v6203_v56 = vsel %vm6156_vm15, %v6071_v11, %v6202_v20  ;;  %v4941_v47 = vrot.slane %v4927_v53, %v13436_v42  ;;  %v4942_v37 = vcombine.high %v4934_v2, %v4934_v2  ;;  %v5908_v36 = vsel %vm5123_vm6, %v4934_v2, -inf }
 0x352   : > { %v6204_v3 = vsel %vm6158_vm0, %v6072_v16, %v6203_v56  ;;  %v4944_v15 = vcombine.high %v4416_v30, %v4416_v30  ;;  %v4951_v39 = vrot.slane %v4416_v30, %v13436_v42  ;;  %v5909_v35 = vrot.slane %v5908_v36, 4 }
 0x353   : > { %v6205_v9 = vsel %vm6160_vm1, %v6073_v4, %v6204_v3  ;;  %v4943_v41 = vcombine.high %v4941_v47, %v4941_v47  ;;  %v5915_v49 = vsel %vm5123_vm6, %v4942_v37, -inf  ;;  %v5922_v6 = vsel %vm5123_vm6, %v4941_v47, -inf  ;;  %v14799_v3 = vld [vmem:[#allocation21_spill] sm:$0xff] }
 0x354   : > { %v6206_v22 = vsel %vm6162_vm2, %v6074_v29, %v6205_v9  ;;  %v4958_v38 = vrot.slane %v4944_v15, %v13436_v42  ;;  %v4959_v8 = vcombine.high %v4951_v39, %v4951_v39  ;;  %v5936_v61 = vsel %vm5123_vm6, %v4951_v39, -inf }
 0x355   : > { %v6207_v54 = vsel %vm6164_vm3, %v6075_v57, %v6206_v22  ;;  %v5937_v34 = vrot.slane %v5936_v61, 4  ;;  %v5910_v27 = vmax.f32 %v5908_v36, %v5909_v35  ;;  %v5916_v1 = vrot.slane %v5915_v49, 4 }
 0x356   : > { %6229 = vst.msk [vmem:[#allocation2 + $0x39] sm:$0xff] %vm6084_vm13, %v6207_v54  ;;  %v4960_v48 = vcombine.high %v4958_v38, %v4958_v38  ;;  %v5943_v25 = vsel %vm5123_vm6, %v4959_v8, -inf  ;;  %v5950_v55 = vsel %vm5123_vm6, %v4958_v38, -inf  ;;  %v5923_v62 = vrot.slane %v5922_v6, 4 }
 0x357   : > { %v5938_v24 = vmax.f32 %v5936_v61, %v5937_v34  ;;  %v5944_v44 = vrot.slane %v5943_v25, 4  ;;  %v5951_v18 = vrot.slane %v5950_v55, 4  ;;  %v5917_v5 = vmax.f32 %v5915_v49, %v5916_v1 }
 0x358   : > { %v5957_v13 = vsel %vm5123_vm6, %v4960_v48, -inf  ;;  %v5924_v45 = vmax.f32 %v5922_v6, %v5923_v62  ;;  %v5929_v26 = vsel %vm5123_vm6, %v4943_v41, -inf  ;;  %v5911_v0 = vrot.slane %v5910_v27, 2 }
 0x359   : > { %v5945_v16 = vmax.f32 %v5943_v25, %v5944_v44  ;;  %v5939_v63 = vrot.slane %v5938_v24, 2  ;;  %v5952_v17 = vmax.f32 %v5950_v55, %v5951_v18  ;;  %v5958_v10 = vrot.slane %v5957_v13, 4 }
 0x35a   : > { %v5930_v14 = vrot.slane %v5929_v26, 4  ;;  %v5918_v4 = vrot.slane %v5917_v5, 2  ;;  %v5925_v29 = vrot.slane %v5924_v45, 2  ;;  %v5912_v60 = vmax.f32 %v5910_v27, %v5911_v0 }
 0x35b   : > { %v5946_v59 = vrot.slane %v5945_v16, 2  ;;  %v9663_v50 = vsel %vm3202_vm5, 1.0, %v14782_v12  ;;  %v5940_v57 = vmax.f32 %v5938_v24, %v5939_v63  ;;  %v5953_v28 = vrot.slane %v5952_v17, 2 }
 0x35c   : > { %v5959_v11 = vmax.f32 %v5957_v13, %v5958_v10  ;;  %v5931_v20 = vmax.f32 %v5929_v26, %v5930_v14  ;;  %v5919_v53 = vmax.f32 %v5917_v5, %v5918_v4  ;;  %v5926_v2 = vmax.f32 %v5924_v45, %v5925_v29 }
 0x35d   : > { %v14237_v58 = vld [vmem:[#allocation2 + $0x39] sm:$0xff]  ;;  %v4278_v30 = vmul.f32 %v13957_v31, %v9663_v50  ;;  %v5947_v32 = vmax.f32 %v5945_v16, %v5946_v59  ;;  %v5913_v56 = vrot.slane %v5912_v60, 1  ;;  %v4385_v47 = vadd.f32 %v14106_v33, %v4347_v46 }
 0x35e   : > { %11169 = vmatprep.mubr.msk.f32.mxu1 %vm6084_vm13, %v14237_v58  ;;  %v5941_v37 = vrot.slane %v5940_v57, 1  ;;  %v5954_v36 = vmax.f32 %v5952_v17, %v5953_v28  ;;  %v5960_v40 = vrot.slane %v5959_v11, 2  ;;  %v5932_v39 = vrot.slane %v5931_v20, 2 }
 0x35f   : > { %v4310_v15 = vadd.f32 %v4278_v30, %v14799_v3  ;;  %v4417_v35 = vmax.f32 %v4385_v47, 0.0  ;;  %v5920_v9 = vrot.slane %v5919_v53, 1  ;;  %v5927_v41 = vrot.slane %v5926_v2, 1 }
 0x360   : > { %v5948_v6 = vrot.slane %v5947_v32, 1  ;;  %v14245_v22 = vmax.f32 %v5912_v60, %v5913_v56  ;;  %v14248_v8 = vmax.f32 %v5940_v57, %v5941_v37  ;;  %v5955_v61 = vrot.slane %v5954_v36, 1 }
 0x361   : > { %v4348_v49 = vmul.f32 %v14093_v51, %v4310_v15  ;;  %v4961_v38 = vcombine.high %v4417_v35, %v4417_v35  ;;  %v4968_v31 = vrot.slane %v4417_v35, %v13436_v42  ;;  %v14250_v54 = vmax.f32 %v5959_v11, %v5960_v40 }
 0x362   : > { %v14253_v27 = vmax.f32 %v5931_v20, %v5932_v39  ;;  %v14257_v25 = vmax.f32 %v5919_v53, %v5920_v9  ;;  %v14259_v55 = vmax.f32 %v5926_v2, %v5927_v41  ;;  %v14261_v44 = vmax.f32 %v5947_v32, %v5948_v6 }
 0x363   : > { %v4386_v34 = vadd.f32 %v14106_v33, %v4348_v49  ;;  %v4975_v1 = vrot.slane %v4961_v38, %v13436_v42  ;;  %v4976_v48 = vcombine.high %v4968_v31, %v4968_v31  ;;  %v5964_v51 = vsel %vm5123_vm6, %v4968_v31, -inf }
 0x364   : > { %v5965_v24 = vrot.slane %v5964_v51, 4  ;;  %v14266_v0 = vmax.f32 %v5954_v36, %v5955_v61  ;;  %v5934_v63 = vrot.slane %v14253_v27, 1  ;;  %vm8109_vm5 = vcmask 520192  }
 0x365   : > { %v4418_v62 = vmax.f32 %v4386_v34, 0.0  ;;  %v4977_v18 = vcombine.high %v4975_v1, %v4975_v1  ;;  %v5971_v13 = vsel %vm5123_vm6, %v4976_v48, -inf  ;;  %v5978_v33 = vsel %vm5123_vm6, %v4975_v1, -inf  ;;  %8110 = vst.msk [vmem:[#allocation3] sm:$0x1f] %vm8109_vm5, %v14782_v12 }
 0x366   : > { %v5966_v26 = vmax.f32 %v5964_v51, %v5965_v24  ;;  %v5972_v16 = vrot.slane %v5971_v13, 4  ;;  %v5979_v17 = vrot.slane %v5978_v33, 4  ;;  %8146 = vst.msk [vmem:[#allocation3 + $0x15] sm:$0x1f] %vm8109_vm5, %v14782_v12 }
 0x367   : > { %v4978_v5 = vcombine.high %v4418_v62, %v4418_v62  ;;  %v4985_v45 = vrot.slane %v4418_v62, %v13436_v42  ;;  %v5985_v10 = vsel %vm5123_vm6, %v4977_v18, -inf }
 0x368   : > { %v5967_v59 = vrot.slane %v5966_v26, 2  ;;  %v5973_v50 = vmax.f32 %v5971_v13, %v5972_v16  ;;  %v5980_v46 = vmax.f32 %v5978_v33, %v5979_v17  ;;  %v5986_v57 = vrot.slane %v5985_v10, 4 }
 0x369   : > { %v4992_v14 = vrot.slane %v4978_v5, %v13436_v42  ;;  %v4993_v4 = vcombine.high %v4985_v45, %v4985_v45  ;;  %v5992_v29 = vsel %vm5123_vm6, %v4985_v45, -inf  ;;  %v5962_v5 = vrot.slane %v14250_v54, 1 }
 0x36a   : > { %v5993_v60 = vrot.slane %v5992_v29, 4  ;;  %v5968_v53 = vmax.f32 %v5966_v26, %v5967_v59  ;;  %v5974_v56 = vrot.slane %v5973_v50, 2  ;;  %v5981_v36 = vrot.slane %v5980_v46, 2 }
 0x36b   : > { %v4994_v28 = vcombine.high %v4992_v14, %v4992_v14  ;;  %v5999_v11 = vsel %vm5123_vm6, %v4993_v4, -inf  ;;  %v6006_v20 = vsel %vm5123_vm6, %v4992_v14, -inf  ;;  %v5987_v40 = vmax.f32 %v5985_v10, %v5986_v57 }
 0x36c   : > { %v5994_v2 = vmax.f32 %v5992_v29, %v5993_v60  ;;  %v6000_v30 = vrot.slane %v5999_v11, 4  ;;  %v6007_v32 = vrot.slane %v6006_v20, 4  ;;  %v5969_v37 = vrot.slane %v5968_v53, 1 }
 0x36d   : > { %v6013_v47 = vsel %vm5123_vm6, %v4994_v28, -inf  ;;  %v5975_v41 = vmax.f32 %v5973_v50, %v5974_v56  ;;  %v5982_v49 = vmax.f32 %v5980_v46, %v5981_v36  ;;  %v5988_v6 = vrot.slane %v5987_v40, 2  ;;  %v12091_v36 = vld [vmem:[#allocation2 + $0x11] sm:$0xff] }
 0x36e   : > { %v5995_v3 = vrot.slane %v5994_v2, 2  ;;  %v6001_v15 = vmax.f32 %v5999_v11, %v6000_v30  ;;  %v6008_v39 = vmax.f32 %v6006_v20, %v6007_v32  ;;  %v6014_v35 = vrot.slane %v6013_v47, 4 }
 0x36f   : > { %v5970_v9 = vmax.f32 %v5968_v53, %v5969_v37  ;;  %v5976_v1 = vrot.slane %v5975_v41, 1  ;;  %v5983_v48 = vrot.slane %v5982_v49, 1  ;;  %v5989_v51 = vmax.f32 %v5987_v40, %v5988_v6  ;;  %v12090_v37 = vld [vmem:[#allocation2 + $0x9] sm:$0xff]  ;;  %v6825_v6 = vld [vmem:[#allocation2 + $0x38] sm:$0xff] }
 0x370   : > { %v5996_v38 = vmax.f32 %v5994_v2, %v5995_v3  ;;  %v6002_v31 = vrot.slane %v6001_v15, 2  ;;  %v6009_v61 = vrot.slane %v6008_v39, 2  ;;  %v6015_v34 = vmax.f32 %v6013_v47, %v6014_v35  ;;  %v6403_v47 = vld [vmem:[#allocation2 + $0x1] sm:$0xff]  ;;  %v10135_v40 = vld [vmem:[%s13540_s16 + $0x30] sm:$0xff]   ;;  %v12092_v3 = vld [vmem:[#allocation2 + $0x19] sm:$0xff] }
 0x371   : > { %v6076_v62 = vmax.f32 %v14245_v22, %v5970_v9  ;;  %v5977_v45 = vmax.f32 %v5975_v41, %v5976_v1  ;;  %v5984_v26 = vmax.f32 %v5982_v49, %v5983_v48  ;;  %v5990_v16 = vrot.slane %v5989_v51, 1  ;;  %v6820_v35 = vld [vmem:[#allocation2 + $0x10] sm:$0xff]  ;;  %v10130_v9 = vld [vmem:[%s13540_s16 + $0x8] sm:$0xff]   ;;  %v10140_v1 = vld [vmem:[%s13540_s16 + $0x58] sm:$0xff]  }
 0x372   : > { %v5997_v24 = vrot.slane %v5996_v38, 1  ;;  %v6003_v18 = vmax.f32 %v6001_v15, %v6002_v31  ;;  %v6010_v13 = vmax.f32 %v6008_v39, %v6009_v61  ;;  %v6016_v33 = vrot.slane %v6015_v34, 2  ;;  %v6656_v15 = vld [vmem:[#allocation2 + $0x49] sm:$0xff]  ;;  %v10133_v48 = vld [vmem:[%s13540_s16 + $0x20] sm:$0xff]  }
 0x373   : > { %v5935_v29 = vmax.f32 %v14253_v27, %v5934_v63  ;;  %v5991_v59 = vmax.f32 %v5989_v51, %v5990_v16  ;;  %v6077_v60 = vmax.f32 %v14257_v25, %v5977_v45  ;;  %v6078_v22 = vmax.f32 %v14259_v55, %v5984_v26  ;;  %v6819_v39 = vld [vmem:[#allocation2 + $0x8] sm:$0xff]  ;;  %v6824_v49 = vld [vmem:[#allocation2 + $0x30] sm:$0xff] }
 0x374   : > { %v5998_v17 = vmax.f32 %v5996_v38, %v5997_v24  ;;  %v6004_v10 = vrot.slane %v6003_v18, 1  ;;  %v6011_v14 = vrot.slane %v6010_v13, 1  ;;  %v6017_v4 = vmax.f32 %v6015_v34, %v6016_v33  ;;  %v6823_v41 = vld [vmem:[#allocation2 + $0x28] sm:$0xff]  ;;  %v6818_v38 = vld [vmem:[#allocation2] sm:$0xff]  ;;  %v10139_v34 = vld [vmem:[%s13540_s16 + $0x50] sm:$0xff]  }
 0x375   : > { %v5963_v11 = vmax.f32 %v14250_v54, %v5962_v5  ;;  %v6079_v20 = vmax.f32 %v5935_v29, %v5991_v59  ;;  %v6208_v53 = vsel %vm6152_vm12, %v6077_v60, %v6076_v62  ;;  %v10142_v61 = vld [vmem:[%s13540_s16 + $0x68] sm:$0xff]   ;;  %v7251_v24 = vld [vmem:[#allocation2 + $0x12] sm:$0xff]  ;;  %v10145_v5 = vld [vmem:[%s13540_s16 + $0x80] sm:$0xff]  }
 0x376   : > { %v6005_v50 = vmax.f32 %v6003_v18, %v6004_v10  ;;  %v6012_v46 = vmax.f32 %v6010_v13, %v6011_v14  ;;  %v6018_v57 = vrot.slane %v6017_v4, 1  ;;  %v6080_v28 = vmax.f32 %v14248_v8, %v5998_v17  ;;  %v7250_v62 = vld [vmem:[#allocation2 + $0xa] sm:$0xff]  ;;  %v7252_v13 = vld [vmem:[#allocation2 + $0x1a] sm:$0xff]  ;;  %v7253_v33 = vld [vmem:[#allocation2 + $0x22] sm:$0xff] }
 0x377   : > { %v6209_v25 = vsel %vm6154_vm14, %v6078_v22, %v6208_v53  ;;  %v10134_v18 = vld [vmem:[%s13540_s16 + $0x28] sm:$0xff]   ;;  %v7255_v26 = vld [vmem:[#allocation2 + $0x32] sm:$0xff]  ;;  %v6311_v53 = vand.u32 7, %v14778_v21 }
 0x378   : > { %v6019_v2 = vmax.f32 %v6017_v4, %v6018_v57  ;;  %v6081_v30 = vmax.f32 %v14261_v44, %v6005_v50  ;;  %v6082_v27 = vmax.f32 %v14266_v0, %v6012_v46  ;;  %v6210_v55 = vsel %vm6156_vm15, %v6079_v20, %v6209_v25  ;;  %v10144_v0 = vld [vmem:[%s13540_s16 + $0x78] sm:$0xff]   ;;  %v7254_v45 = vld [vmem:[#allocation2 + $0x2a] sm:$0xff]  ;;  %v7249_v10 = vld [vmem:[#allocation2 + $0x2] sm:$0xff] }
 0x379   : > { %v6211_v32 = vsel %vm6158_vm0, %v6080_v28, %v6210_v55  ;;  %v10146_v14 = vld [vmem:[%s13540_s16 + $0x88] sm:$0xff]  }
 0x37a   : > { %v6083_v63 = vmax.f32 %v5963_v11, %v6019_v2  ;;  %v6212_v8 = vsel %vm6160_vm1, %v6081_v30, %v6211_v32  ;;  %v7502_v4 = vld [vmem:[#allocation2 + $0x4a] sm:$0xff]  ;;  %v14801_v2 = vld [vmem:[#allocation29_spill] sm:$0xff] }
 0x37b   : > { %v6213_v54 = vsel %vm6162_vm2, %v6082_v27, %v6212_v8  ;;  %v14800_v11 = vld [vmem:[#allocation27_spill] sm:$0xff]  ;;  %v6332_v30 = vand.u32 7, %v14801_v2  ;;  %v14802_v27 = vld [vmem:[#allocation5_spill] sm:$0xff]  ;;  %v14803_v32 = vld [vmem:[#allocation30_spill] sm:$0xff] }
 0x37c   : > { %v6214_v56 = vsel %vm6164_vm3, %v6083_v63, %v6213_v54  ;;  %v6318_v20 = vand.u32 7, %v14800_v11  ;;  %v6325_v25 = vand.u32 7, %v14802_v27  ;;  %v6346_v8 = vand.u32 7, %v14803_v32 }
 0x37d   : > { %6230 = vst.msk [vmem:[#allocation2 + $0x41] sm:$0xff] %vm6084_vm13, %v6214_v56  ;;  %vm6797_vm7 = vcmp.gt.s32.totalorder %v6332_v30, 0  ;;  %v14804_v56 = vld [vmem:[#allocation6_spill] sm:$0xff] }
 0x37e   : > { %vm6795_vm6 = vcmp.gt.s32.totalorder %v6318_v20, 0  ;;  %vm6796_vm8 = vcmp.gt.s32.totalorder %v6325_v25, 0  ;;  %vm6799_vm9 = vcmp.gt.s32.totalorder %v6346_v8, 0 }
 0x37f   : > { %v9790_v55 = vsel %vm6795_vm6, 1.0, %v14782_v12  ;;  %vm7226_vm6 = vcmp.lt.s32.totalorder %v6318_v20, 7 }
 0x384   : > { %v6411_v44 = vld [vmem:[#allocation2 + $0x41] sm:$0xff] }
 0x385   : > { %11170 = vmatmul.mubr.msk.f32.gmra.mrb[46].mxu1 %vm6084_vm13, %v6411_v44  ;;  %v6826_v31 = vld [vmem:[#allocation2 + $0x40] sm:$0xff]  ;;  %v7071_v51 = vld [vmem:[#allocation2 + $0x48] sm:$0xff] }
 0x386   : > { %11180 = vmatprep.mubr.msk.f32.mxu1 %vm6084_vm13, %v6403_v47  ;;  %v7256_v16 = vld [vmem:[#allocation2 + $0x3a] sm:$0xff]  ;;  %v7257_v17 = vld [vmem:[#allocation2 + $0x42] sm:$0xff]  ;;  %v6339_v47 = vand.u32 7, %v14804_v56 }
 0x388   : > { %vm6798_vm10 = vcmp.gt.s32.totalorder %v6339_v47, 0 }
 0x389   : > { %11181 = vmatmul.mubr.msk.f32.vlgmr.msra.gmra.mrb[40].mxu1 %vm6084_vm13, %v12090_v37 }
 0x38a   : > { %11183 = vmatprep.mubr.msk.f32.mxu1 %vm6084_vm13, %v12091_v36  ;;  %11557 = vmatpush3.bf16.msra.mxu1 %v14066_v52  ;;  %v10136_v52 = vld [vmem:[%s13540_s16 + $0x38] sm:$0xff]  }
 0x38b   : > { %11559 = vmatprep.subr.bf16.mxu1 %v10144_v0 }
 0x38d   : > { %11184 = vmatmul.mubr.msk.f32.gmra.mrb[42].mxu1 %vm6084_vm13, %v14010_v7  ;;  %v12093_v7 = vld [vmem:[#allocation2 + $0x21] sm:$0xff] }
 0x38e   : > { %11186 = vmatprep.mubr.msk.f32.mxu1 %vm6084_vm13, %v14012_v19  ;;  %11561 = vmatpush3.bf16.msra.mxu1 %v10144_v0  ;;  %v9883_v19 = vld [vmem:[%s13540_s16] sm:$0xff]  }
 0x38f   : > { %11563 = vmatprep.subr.bf16.mxu1 %v10135_v40 }
 0x391   : > { %11187 = vmatmul.mubr.msk.f32.gmra.mrb[44].mxu1 %vm6084_vm13, %v14019_v23 }
 0x392   : > { %11189 = vmatprep.mubr.msk.f32.mxu1 %vm6084_vm13, %v14142_v43 }
 0x395   : > { %11190 = vmatmul.mubr.msk.f32.gmra.mrb[46].mxu1 %vm6084_vm13, %v14237_v58 }
 0x396   : > { %11200 = vmatprep.mubr.msk.f32.mxu1 %vm6084_vm13, %v12091_v36  ;;  %v9792_v36 = vsel %vm6797_vm7, 1.0, %v14782_v12  ;;  %vm7228_vm7 = vcmp.lt.s32.totalorder %v6332_v30, 7  ;;  %v14476_v30 = vld [vmem:[%s584_s15] ss:$0 sm:$0xff]  ;;  %s9432_s15 = sshll.u32 %s14820_s22, 1 }
 0x399   : > { %11201 = vmatmul.mubr.msk.f32.vlgmr.msra.gmra.mrb[40].mxu1 %vm6084_vm13, %v12092_v3  ;;  %v14805_v3 = vld [vmem:[#allocation31_spill] sm:$0xff] }
 0x39a   : > { %11203 = vmatprep.mubr.msk.f32.mxu1 %vm6084_vm13, %v12093_v7  ;;  %11565 = vmatpush3.bf16.msra.mxu1 %v10135_v40  ;;  %v6360_v7 = vand.u32 7, %v14805_v3 }
 0x39b   : > { %11567 = vmatprep.subr.bf16.mxu1 %v10136_v52 }
 0x39c   : > { %vm6801_vm11 = vcmp.gt.s32.totalorder %v6360_v7, 0 }
 0x39d   : > { %11204 = vmatmul.mubr.msk.f32.gmra.mrb[42].mxu1 %vm6084_vm13, %v14019_v23  ;;  %v6821_v23 = vld [vmem:[#allocation2 + $0x18] sm:$0xff] }
 0x39e   : > { %11206 = vmatprep.mubr.msk.f32.mxu1 %vm6084_vm13, %v14142_v43  ;;  %11569 = vmatpush3.bf16.msra.mxu1 %v10136_v52  ;;  %v6822_v43 = vld [vmem:[#allocation2 + $0x20] sm:$0xff]  ;;  %v9791_v52 = vsel %vm6796_vm8, 1.0, %v14782_v12  ;;  %vm7227_vm8 = vcmp.lt.s32.totalorder %v6325_v25, 7 }
 0x39f   : > { %11571 = vmatprep.subr.bf16.mxu1 %v9883_v19  ;;  %v9823_v2 = vsel %vm7227_vm8, 1.0, %v14782_v12 }
 0x3a1   : > { %11207 = vmatmul.mubr.msk.f32.gmra.mrb[44].mxu1 %vm6084_vm13, %v14237_v58  ;;  %v10141_v58 = vld [vmem:[%s13540_s16 + $0x60] sm:$0xff]   ;;  %s9881_s16 = sshll.u32 %s14820_s22, 6 }
 0x3a2   : > { %11209 = vmatprep.mubr.msk.f32.mxu1 %vm6084_vm13, %v6411_v44  ;;  %s600_s19 = scalar_lea.vmem %s14704_s10, %s9881_s16 }
 0x3a5   : > { %11210 = vmatmul.mubr.msk.f32.gmra.mrb[46].mxu1 %vm6084_vm13, %v6656_v15 }
 0x3a6   : > { %11220 = vmatprep.mubr.msk.f32.mxu1 %vm6084_vm13, %v6819_v39 }
 0x3a9   : > { %11221 = vmatmul.mubr.msk.f32.vlgmr.msra.gmra.mrb[48].mxu1 %vm6084_vm13, %v6820_v35 }
 0x3aa   : > { %11223 = vmatprep.mubr.msk.f32.mxu1 %vm6084_vm13, %v6821_v23  ;;  %11573 = vmatpush3.bf16.msra.mxu1 %v9883_v19 }
 0x3ab   : > { %11575 = vmatprep.subr.bf16.mxu1 %v10130_v9 }
 0x3ad   : > { %11224 = vmatmul.mubr.msk.f32.gmra.mrb[50].mxu1 %vm6084_vm13, %v6822_v43 }
 0x3ae   : > { %11226 = vmatprep.mubr.msk.f32.mxu1 %vm6084_vm13, %v6823_v41  ;;  %11577 = vmatpush3.bf16.msra.mxu1 %v10130_v9 }
 0x3af   : > { %11579 = vmatprep.subr.bf16.mxu1 %v10141_v58 }
 0x3b1   : > { %11227 = vmatmul.mubr.msk.f32.gmra.mrb[52].mxu1 %vm6084_vm13, %v6824_v49 }
 0x3b2   : > { %11229 = vmatprep.mubr.msk.f32.mxu1 %vm6084_vm13, %v6825_v6 }
 0x3b5   : > { %11230 = vmatmul.mubr.msk.f32.gmra.mrb[54].mxu1 %vm6084_vm13, %v6826_v31 }
 0x3b6   : > { %11240 = vmatprep.mubr.msk.f32.mxu1 %vm6084_vm13, %v6818_v38 }
 0x3b9   : > { %11241 = vmatmul.mubr.msk.f32.vlgmr.msra.gmra.mrb[48].mxu1 %vm6084_vm13, %v6819_v39  ;;  %v14806_v39 = vld [vmem:[#allocation7_spill] sm:$0xff] }
 0x3ba   : > { %11243 = vmatprep.mubr.msk.f32.mxu1 %vm6084_vm13, %v6820_v35  ;;  %11581 = vmatpush3.bf16.msra.mxu1 %v10141_v58  ;;  %v9794_v58 = vsel %vm6799_vm9, 1.0, %v14782_v12  ;;  %vm7230_vm9 = vcmp.lt.s32.totalorder %v6346_v8, 7 }
 0x3bb   : > { %11583 = vmatprep.subr.bf16.mxu1 %v10142_v61 }
 0x3bd   : > { %11244 = vmatmul.mubr.msk.f32.gmra.mrb[50].mxu1 %vm6084_vm13, %v6821_v23 }
 0x3be   : > { %11246 = vmatprep.mubr.msk.f32.mxu1 %vm6084_vm13, %v6822_v43  ;;  %11585 = vmatpush3.bf16.msra.mxu1 %v10142_v61 }
 0x3bf   : > { %11587 = vmatprep.subr.bf16.mxu1 %v10139_v34 }
 0x3c1   : > { %11247 = vmatmul.mubr.msk.f32.gmra.mrb[52].mxu1 %vm6084_vm13, %v6823_v41 }
 0x3c2   : > { %11249 = vmatprep.mubr.msk.f32.mxu1 %vm6084_vm13, %v6824_v49 }
 0x3c5   : > { %11250 = vmatmul.mubr.msk.f32.gmra.mrb[54].mxu1 %vm6084_vm13, %v6825_v6 }
 0x3c6   : > { %11260 = vmatprep.mubr.msk.f32.mxu1 %vm6084_vm13, %v6820_v35  ;;  %v6353_v35 = vand.u32 7, %v14806_v39 }
 0x3c8   : > { %vm6800_vm4 = vcmp.gt.s32.totalorder %v6353_v35, 0  ;;  %vm14531_vm5 = vcmp.lt.s32.totalorder %v6353_v35, 7 }
 0x3c9   : > { %11261 = vmatmul.mubr.msk.f32.vlgmr.msra.gmra.mrb[48].mxu1 %vm6084_vm13, %v6821_v23 }
 0x3ca   : > { %11263 = vmatprep.mubr.msk.f32.mxu1 %vm6084_vm13, %v6822_v43  ;;  %11589 = vmatpush3.bf16.msra.mxu1 %v10139_v34 }
 0x3cb   : > { %11591 = vmatprep.subr.bf16.mxu1 %v10140_v1 }
 0x3cd   : > { %11264 = vmatmul.mubr.msk.f32.gmra.mrb[50].mxu1 %vm6084_vm13, %v6823_v41 }
 0x3ce   : > { %11266 = vmatprep.mubr.msk.f32.mxu1 %vm6084_vm13, %v6824_v49  ;;  %11593 = vmatpush3.bf16.msra.mxu1 %v10140_v1  ;;  %v9793_v49 = vsel %vm6798_vm10, 1.0, %v14782_v12  ;;  %v9796_v1 = vsel %vm6801_vm11, 1.0, %v14782_v12  ;;  %vm7229_vm10 = vcmp.lt.s32.totalorder %v6339_v47, 7  ;;  %vm7232_vm11 = vcmp.lt.s32.totalorder %v6360_v7, 7 }
 0x3cf   : > { %11595 = vmatprep.subr.bf16.mxu1 %v10133_v48 }
 0x3d1   : > { %11267 = vmatmul.mubr.msk.f32.gmra.mrb[52].mxu1 %vm6084_vm13, %v6825_v6 }
 0x3d2   : > { %11269 = vmatprep.mubr.msk.f32.mxu1 %vm6084_vm13, %v6826_v31 }
 0x3d5   : > { %11270 = vmatmul.mubr.msk.f32.gmra.mrb[54].mxu1 %vm6084_vm13, %v7071_v51  ;;  %v9795_v51 = vsel %vm6800_vm4, 1.0, %v14782_v12  ;;  %vm7868_vm4 = vcmask 517120  }
 0x3d6   : > { %11280 = vmatprep.mubr.msk.f32.mxu1 %vm6084_vm13, %v7250_v62 }
 0x3d9   : > { %11281 = vmatmul.mubr.msk.f32.vlgmr.msra.gmra.mrb[56].mxu1 %vm6084_vm13, %v7251_v24 }
 0x3da   : > { %11283 = vmatprep.mubr.msk.f32.mxu1 %vm6084_vm13, %v7252_v13  ;;  %11597 = vmatpush3.bf16.msra.mxu1 %v10133_v48 }
 0x3db   : > { %11599 = vmatprep.subr.bf16.mxu1 %v10134_v18 }
 0x3dd   : > { %11284 = vmatmul.mubr.msk.f32.gmra.mrb[58].mxu1 %vm6084_vm13, %v7253_v33 }
 0x3de   : > { %11286 = vmatprep.mubr.msk.f32.mxu1 %vm6084_vm13, %v7254_v45  ;;  %11601 = vmatpush3.bf16.msra.mxu1 %v10134_v18 }
 0x3df   : > { %11603 = vmatprep.subr.bf16.mxu1 %v10145_v5 }
 0x3e1   : > { %11287 = vmatmul.mubr.msk.f32.gmra.mrb[60].mxu1 %vm6084_vm13, %v7255_v26 }
 0x3e2   : > { %11289 = vmatprep.mubr.msk.f32.mxu1 %vm6084_vm13, %v7256_v16 }
 0x3e5   : > { %11290 = vmatmul.mubr.msk.f32.gmra.mrb[62].mxu1 %vm6084_vm13, %v7257_v17 }
 0x3e6   : > { %11300 = vmatprep.mubr.msk.f32.mxu1 %vm6084_vm13, %v7249_v10  ;;  %v10159_v10 = vld [vmem:[%s14427_s20 + $0x68] sm:$0xff]  }
 0x3e9   : > { %11301 = vmatmul.mubr.msk.f32.vlgmr.msra.gmra.mrb[56].mxu1 %vm6084_vm13, %v7250_v62 }
 0x3ea   : > { %11303 = vmatprep.mubr.msk.f32.mxu1 %vm6084_vm13, %v7251_v24  ;;  %11605 = vmatpush3.bf16.msra.mxu1 %v10145_v5 }
 0x3eb   : > { %11607 = vmatprep.subr.bf16.mxu1 %v10146_v14 }
 0x3ed   : > { %11304 = vmatmul.mubr.msk.f32.gmra.mrb[58].mxu1 %vm6084_vm13, %v7252_v13 }
 0x3ee   : > { %11306 = vmatprep.mubr.msk.f32.mxu1 %vm6084_vm13, %v7253_v33  ;;  %11609 = vmatpush3.bf16.msra.mxu1 %v10146_v14  ;;  %v10164_v14 = vld [vmem:[%s14427_s20 + $0x90] sm:$0xff]  }
 0x3f1   : > { %11307 = vmatmul.mubr.msk.f32.gmra.mrb[60].mxu1 %vm6084_vm13, %v7254_v45 }
 0x3f2   : > { %11309 = vmatprep.mubr.msk.f32.mxu1 %vm6084_vm13, %v7255_v26 }
 0x3f5   : > { %11310 = vmatmul.mubr.msk.f32.gmra.mrb[62].mxu1 %vm6084_vm13, %v7256_v16 }
 0x3f6   : > { %11320 = vmatprep.mubr.msk.f32.mxu1 %vm6084_vm13, %v7251_v24 }
 0x3f9   : > { %11321 = vmatmul.mubr.msk.f32.vlgmr.msra.gmra.mrb[56].mxu1 %vm6084_vm13, %v7252_v13 }
 0x3fa   : > { %11323 = vmatprep.mubr.msk.f32.mxu1 %vm6084_vm13, %v7253_v33 }
 0x3fd   : > { %11324 = vmatmul.mubr.msk.f32.gmra.mrb[58].mxu1 %vm6084_vm13, %v7254_v45 }
 0x3fe   : > { %11326 = vmatprep.mubr.msk.f32.mxu1 %vm6084_vm13, %v7255_v26  ;;  %v10158_v26 = vld [vmem:[%s14427_s20 + $0x60] sm:$0xff]  }
 0x3ff   : > { %11659 = vmatprep.subr.bf16.mxu0 %v10158_v26 }
 0x400   : > { %11661 = vmatpush3.bf16.msra.mxu0 %v10158_v26 }
 0x401   : > { %11327 = vmatmul.mubr.msk.f32.gmra.mrb[60].mxu1 %vm6084_vm13, %v7256_v16  ;;  %v10162_v16 = vld [vmem:[%s14427_s20 + $0x80] sm:$0xff]   ;;  %11663 = vmatprep.subr.bf16.mxu0 %v10159_v10 }
 0x402   : > { %11329 = vmatprep.mubr.msk.f32.mxu1 %vm6084_vm13, %v7257_v17  ;;  %v10163_v17 = vld [vmem:[%s14427_s20 + $0x88] sm:$0xff]   ;;  %11611 = vmatprep.subr.bf16.mxu1 %v10162_v16 }
 0x403   : > { %11613 = vmatpush3.bf16.msra.mxu1 %v10162_v16 }
 0x404   : > { %11615 = vmatprep.subr.bf16.mxu1 %v10163_v17  ;;  %11665 = vmatpush3.bf16.msra.mxu0 %v10159_v10 }
 0x405   : > { %11330 = vmatmul.mubr.msk.f32.gmra.mrb[62].mxu1 %vm6084_vm13, %v7502_v4  ;;  %vm6794_vm13 = vcmp.gt.s32.totalorder %v6311_v53, 0  ;;  %v10160_v4 = vld [vmem:[%s14427_s20 + $0x70] sm:$0xff]  }
 0x406   : > { %v9789_v63 = vsel %vm6794_vm13, 1.0, %v14782_v12  ;;  %11667 = vmatprep.subr.bf16.mxu0 %v10160_v4  ;;  %vm7225_vm13 = vcmp.lt.s32.totalorder %v6311_v53, 7  ;;  %v14469_v53 = vld [vmem:[%s581_s30] ss:$0 sm:$0xff] }
 0x407   : > { %11617 = vmatpush3.bf16.msra.mxu1 %v10163_v17 }
 0x408   : > { %11619 = vmatprep.subr.bf16.mxu1 %v10164_v14  ;;  %11669 = vmatpush3.bf16.msra.mxu0 %v10160_v4 }
 0x40b   : > { %11621 = vmatpush3.bf16.msra.mxu1 %v10164_v14 }
 0x46c   : > { %v11202_v29 = vpop.f32.mrb[40].mxu1 }
 0x46d   : > { %v6747_v59 = vpop.f32.mrb[41].mxu1 }
 0x470   : > { %v11205_v60 = vpop.f32.mrb[42].mxu1 }
 0x471   : > { %v6757_v22 = vpop.f32.mrb[43].mxu1 }
 0x474   : > { %v11208_v50 = vpop.f32.mrb[44].mxu1 }
 0x475   : > { %v6767_v46 = vpop.f32.mrb[45].mxu1 }
 0x478   : > { %v11211_v57 = vpop.f32.mrb[46].mxu1 }
 0x479   : > { %v6777_v28 = vpop.f32.mrb[47].mxu1 }
 0x49c   : > { %v11262_v54 = vpop.f32.mrb[48].mxu1 }
 0x49d   : > { %v7210_v44 = vmul.f32 %v11262_v54, %v9790_v55  ;;  %v7162_v0 = vpop.f32.mrb[49].mxu1 }
 0x49e   : > { %v7209_v37 = vmul.f32 %v9789_v63, %v7162_v0  ;;  %v9824_v63 = vsel %vm7228_vm7, 1.0, %v14782_v12 }
 0x49f   : > { %v14396_v40 = vadd.f32 %v11202_v29, %v7210_v44  ;;  %v10165_v29 = vld [vmem:[%s14427_s20 + $0x98] sm:$0xff]  }
 0x4a0   : > { %v14402_v19 = vadd.f32 %v7209_v37, %v6747_v59  ;;  %v11265_v15 = vpop.f32.mrb[50].mxu1  ;;  %v10161_v59 = vld [vmem:[%s14427_s20 + $0x78] sm:$0xff]   ;;  %11623 = vmatprep.subr.bf16.mxu1 %v10165_v29 }
 0x4a1   : > { %v7212_v9 = vmul.f32 %v11265_v15, %v9792_v36  ;;  %v7172_v23 = vpop.f32.mrb[51].mxu1  ;;  %11671 = vmatprep.subr.bf16.mxu0 %v10161_v59  ;;  %11625 = vmatpush3.bf16.msra.mxu1 %v10165_v29  ;;  %v9825_v15 = vsel %vm7229_vm10, 1.0, %v14782_v12 }
 0x4a2   : > { %v7211_v43 = vmul.f32 %v9791_v52, %v7172_v23  ;;  %11673 = vmatpush3.bf16.msra.mxu0 %v10161_v59  ;;  %v9826_v52 = vsel %vm7230_vm9, 1.0, %v14782_v12 }
 0x4a3   : > { %v14408_v41 = vadd.f32 %v11205_v60, %v7212_v9  ;;  %v14444_v60 = vld [vmem:[%s14427_s20 + $0x20] sm:$0xff]  }
 0x4a4   : > { %v14413_v6 = vadd.f32 %v7211_v43, %v6757_v22  ;;  %v11268_v38 = vpop.f32.mrb[52].mxu1  ;;  %v14447_v22 = vld [vmem:[%s14427_s20] sm:$0xff]   ;;  %11627 = vmatprep.subr.bf16.mxu1 %v14444_v60 }
 0x4a5   : > { %v7214_v31 = vmul.f32 %v11268_v38, %v9794_v58  ;;  %v7182_v61 = vpop.f32.mrb[53].mxu1  ;;  %11675 = vmatprep.subr.bf16.mxu0 %v14447_v22 }
 0x4a6   : > { %v7213_v34 = vmul.f32 %v9793_v49, %v7182_v61 }
 0x4a7   : > { %v14419_v48 = vadd.f32 %v11208_v50, %v7214_v31  ;;  %v9822_v50 = vsel %vm7226_vm6, 1.0, %v14782_v12  ;;  %v14494_v31 = vsel %vm7232_vm11, 1.0, %v14782_v12  ;;  %vm8143_vm6 = vcmask 523264  }
 0x4a8   : > { %v14422_v62 = vadd.f32 %v7213_v34, %v6767_v46  ;;  %v11271_v24 = vpop.f32.mrb[54].mxu1  ;;  %v9821_v46 = vsel %vm7225_vm13, 1.0, %v14782_v12 }
 0x4a9   : > { %v7216_v18 = vmul.f32 %v11271_v24, %v9796_v1  ;;  %v7192_v13 = vpop.f32.mrb[55].mxu1 }
 0x4aa   : > { %v7215_v33 = vmul.f32 %v9795_v51, %v7192_v13 }
 0x4ab   : > { %v14429_v5 = vadd.f32 %v11211_v57, %v7216_v18 }
 0x4ac   : > { %v14431_v45 = vadd.f32 %v7215_v33, %v6777_v28 }
 0x4cc   : > { %v11322_v57 = vpop.f32.mrb[56].mxu1 }
 0x4cd   : > { %v7641_v28 = vmul.f32 %v11322_v57, %v9822_v50  ;;  %v7593_v20 = vpop.f32.mrb[57].mxu1 }
 0x4ce   : > { %v7640_v55 = vmul.f32 %v9821_v46, %v7593_v20 }
 0x4cf   : > { %v7649_v54 = vadd.f32 %v7641_v28, %v14396_v40 }
 0x4d0   : > { %v7648_v27 = vadd.f32 %v7640_v55, %v14402_v19  ;;  %v11325_v25 = vpop.f32.mrb[58].mxu1 }
 0x4d1   : > { %v7663_v44 = vmul.f32 %v14469_v53, %v7649_v54  ;;  %v7643_v0 = vmul.f32 %v11325_v25, %v9824_v63  ;;  %v7603_v37 = vpop.f32.mrb[59].mxu1 }
 0x4d2   : > { %v7662_v36 = vmul.f32 %v14469_v53, %v7648_v27  ;;  %v7642_v40 = vmul.f32 %v9823_v2, %v7603_v37 }
 0x4d3   : > { %v7677_v32 = vadd.f32 %v14476_v30, %v7663_v44  ;;  %v7651_v8 = vadd.f32 %v7643_v0, %v14408_v41 }
 0x4d4   : > { %v7676_v56 = vadd.f32 %v14476_v30, %v7662_v36  ;;  %v7650_v47 = vadd.f32 %v7642_v40, %v14413_v6  ;;  %v11328_v19 = vpop.f32.mrb[60].mxu1 }
 0x4d5   : > { %v7685_v9 = vmax.f32 %v7677_v32, 0.0  ;;  %v7665_v23 = vmul.f32 %v14469_v53, %v7651_v8  ;;  %v7645_v43 = vmul.f32 %v11328_v19, %v9826_v52  ;;  %v7613_v58 = vpop.f32.mrb[61].mxu1 }
 0x4d6   : > { %v7684_v49 = vmax.f32 %v7676_v56, 0.0  ;;  %v7664_v38 = vmul.f32 %v14469_v53, %v7650_v47  ;;  %v7644_v41 = vmul.f32 %v9825_v15, %v7613_v58 }
 0x4d7   : > { %v7717_v3 = vcombine.high %v7685_v9, %v7685_v9  ;;  %v7724_v7 = vrot.slane %v7685_v9, %v13436_v42  ;;  %v7679_v61 = vadd.f32 %v14476_v30, %v7665_v23  ;;  %v14499_v6 = vadd.f32 %v7645_v43, %v14419_v48 }
 0x4d8   : > { %v7700_v34 = vcombine.high %v7684_v49, %v7684_v49  ;;  %v7707_v1 = vrot.slane %v7684_v49, %v13436_v42  ;;  %v14503_v51 = vadd.f32 %v14476_v30, %v7664_v38  ;;  %v14506_v24 = vadd.f32 %v7644_v41, %v14422_v62  ;;  %v14508_v18 = vpop.f32.mrb[62].mxu1 }
 0x4d9   : > { %v7731_v13 = vrot.slane %v7717_v3, %v13436_v42  ;;  %v7732_v33 = vcombine.high %v7724_v7, %v7724_v7  ;;  %v7897_v26 = vsel %vm7868_vm4, %v7724_v7, -inf  ;;  %v7687_v16 = vmax.f32 %v7679_v61, 0.0  ;;  %v14512_v17 = vpop.f32.mrb[63].mxu1 }
 0x4da   : > { %v7898_v48 = vrot.slane %v7897_v26, 4  ;;  %v7714_v10 = vrot.slane %v7700_v34, %v13436_v42  ;;  %v7715_v14 = vcombine.high %v7707_v1, %v7707_v1  ;;  %v7869_v4 = vsel %vm7868_vm4, %v7707_v1, -inf }
 0x4db   : > { %v7733_v29 = vcombine.high %v7731_v13, %v7731_v13  ;;  %v7904_v62 = vsel %vm7868_vm4, %v7732_v33, -inf  ;;  %v7911_v59 = vsel %vm7868_vm4, %v7731_v13, -inf  ;;  %v7870_v50 = vrot.slane %v7869_v4, 4 }
 0x4dc   : > { %v7899_v46 = vmax.f32 %v7897_v26, %v7898_v48  ;;  %v7905_v57 = vrot.slane %v7904_v62, 4  ;;  %v7912_v28 = vrot.slane %v7911_v59, 4  ;;  %v7716_v20 = vcombine.high %v7714_v10, %v7714_v10 }
 0x4dd   : > { %v7918_v55 = vsel %vm7868_vm4, %v7733_v29, -inf  ;;  %v7871_v63 = vmax.f32 %v7869_v4, %v7870_v50  ;;  %v7876_v54 = vsel %vm7868_vm4, %v7715_v14, -inf  ;;  %v7883_v2 = vsel %vm7868_vm4, %v7714_v10, -inf }
 0x4de   : > { %v7900_v27 = vrot.slane %v7899_v46, 2  ;;  %v7906_v25 = vmax.f32 %v7904_v62, %v7905_v57  ;;  %v7913_v44 = vmax.f32 %v7911_v59, %v7912_v28  ;;  %v7919_v0 = vrot.slane %v7918_v55, 4 }
 0x4df   : > { %v7872_v37 = vrot.slane %v7871_v63, 2  ;;  %v7877_v36 = vrot.slane %v7876_v54, 4  ;;  %v7884_v40 = vrot.slane %v7883_v2, 4  ;;  %v7890_v52 = vsel %vm7868_vm4, %v7716_v20, -inf }
 0x4e0   : > { %v7901_v32 = vmax.f32 %v7899_v46, %v7900_v27  ;;  %v7907_v8 = vrot.slane %v7906_v25, 2  ;;  %v7914_v15 = vrot.slane %v7913_v44, 2  ;;  %v7920_v56 = vmax.f32 %v7918_v55, %v7919_v0 }
 0x4e1   : > { %v7873_v47 = vmax.f32 %v7871_v63, %v7872_v37  ;;  %v7878_v19 = vmax.f32 %v7876_v54, %v7877_v36  ;;  %v7885_v9 = vmax.f32 %v7883_v2, %v7884_v40  ;;  %v7891_v23 = vrot.slane %v7890_v52, 4 }
 0x4e2   : > { %v7902_v43 = vrot.slane %v7901_v32, 1  ;;  %v7908_v58 = vmax.f32 %v7906_v25, %v7907_v8  ;;  %v7915_v49 = vmax.f32 %v7913_v44, %v7914_v15  ;;  %v7921_v38 = vrot.slane %v7920_v56, 2 }
 0x4e3   : > { %v7874_v41 = vrot.slane %v7873_v47, 1  ;;  %v7879_v3 = vrot.slane %v7878_v19, 2  ;;  %v7886_v7 = vrot.slane %v7885_v9, 2  ;;  %v7892_v61 = vmax.f32 %v7890_v52, %v7891_v23 }
 0x4e4   : > { %v7903_v34 = vmax.f32 %v7901_v32, %v7902_v43  ;;  %v7909_v1 = vrot.slane %v7908_v58, 1  ;;  %v7916_v13 = vrot.slane %v7915_v49, 1  ;;  %v7922_v33 = vmax.f32 %v7920_v56, %v7921_v38 }
 0x4e5   : > { %v7875_v26 = vmax.f32 %v7873_v47, %v7874_v41  ;;  %v7880_v48 = vmax.f32 %v7878_v19, %v7879_v3  ;;  %v7887_v10 = vmax.f32 %v7885_v9, %v7886_v7  ;;  %v7893_v14 = vrot.slane %v7892_v61, 2 }
 0x4e6   : > { %v7910_v4 = vmax.f32 %v7908_v58, %v7909_v1  ;;  %v7917_v29 = vmax.f32 %v7915_v49, %v7916_v13  ;;  %v7923_v62 = vrot.slane %v7922_v33, 1  ;;  %v7751_v59 = vcombine.high %v7687_v16, %v7687_v16 }
 0x4e7   : > { %v7881_v50 = vrot.slane %v7880_v48, 1  ;;  %v7888_v46 = vrot.slane %v7887_v10, 1  ;;  %v7894_v57 = vmax.f32 %v7892_v61, %v7893_v14  ;;  %v8093_v28 = vmax.f32 %v7875_v26, %v7903_v34 }
 0x4e8   : > { %v7924_v20 = vmax.f32 %v7922_v33, %v7923_v62  ;;  %v7758_v55 = vrot.slane %v7687_v16, %v13436_v42  ;;  %v7765_v63 = vrot.slane %v7751_v59, %v13436_v42  ;;  %v7686_v54 = vmax.f32 %v14503_v51, 0.0 }
 0x4e9   : > { %v7882_v2 = vmax.f32 %v7880_v48, %v7881_v50  ;;  %v7889_v27 = vmax.f32 %v7887_v10, %v7888_v46  ;;  %v7895_v25 = vrot.slane %v7894_v57, 1  ;;  %v7667_v44 = vmul.f32 %v14469_v53, %v14499_v6 }
 0x4ea   : > { %v7766_v0 = vcombine.high %v7758_v55, %v7758_v55  ;;  %v7767_v37 = vcombine.high %v7765_v63, %v7765_v63  ;;  %v7953_v36 = vsel %vm7868_vm4, %v7758_v55, -inf  ;;  %v7967_v40 = vsel %vm7868_vm4, %v7765_v63, -inf }
 0x4eb   : > { %v7896_v52 = vmax.f32 %v7894_v57, %v7895_v25  ;;  %v8094_v51 = vmax.f32 %v7882_v2, %v7910_v4  ;;  %v8095_v32 = vmax.f32 %v7889_v27, %v7917_v29  ;;  %v7954_v8 = vrot.slane %v7953_v36, 4 }
 0x4ec   : > { %v7960_v15 = vsel %vm7868_vm4, %v7766_v0, -inf  ;;  %v7968_v56 = vrot.slane %v7967_v40, 4  ;;  %v7974_v6 = vsel %vm7868_vm4, %v7767_v37, -inf  ;;  %v7734_v47 = vcombine.high %v7686_v54, %v7686_v54 }
 0x4ed   : > { %v8096_v19 = vmax.f32 %v7896_v52, %v7924_v20  ;;  %v8127_v9 = vsel %vm6152_vm12, %v8094_v51, %v8093_v28  ;;  %v7955_v23 = vmax.f32 %v7953_v36, %v7954_v8  ;;  %v7961_v43 = vrot.slane %v7960_v15, 4 }
 0x4ee   : > { %v8128_v39 = vsel %vm6154_vm14, %v8095_v32, %v8127_v9  ;;  %v7969_v35 = vmax.f32 %v7967_v40, %v7968_v56  ;;  %v7975_v58 = vrot.slane %v7974_v6, 4  ;;  %v7741_v49 = vrot.slane %v7686_v54, %v13436_v42 }
 0x4ef   : > { %v7956_v38 = vrot.slane %v7955_v23, 2  ;;  %v7962_v41 = vmax.f32 %v7960_v15, %v7961_v43  ;;  %v7748_v3 = vrot.slane %v7734_v47, %v13436_v42  ;;  %v14542_v7 = vsel %vm6156_vm15, %v8096_v19, %v8128_v39 }
 0x4f0   : > { %v7970_v61 = vrot.slane %v7969_v35, 2  ;;  %v7976_v34 = vmax.f32 %v7974_v6, %v7975_v58  ;;  %v7749_v1 = vcombine.high %v7741_v49, %v7741_v49  ;;  %v7925_v13 = vsel %vm7868_vm4, %v7741_v49, -inf }
 0x4f1   : > { %v7957_v33 = vmax.f32 %v7955_v23, %v7956_v38  ;;  %v7963_v26 = vrot.slane %v7962_v41, 2  ;;  %v7750_v48 = vcombine.high %v7748_v3, %v7748_v3  ;;  %v7926_v10 = vrot.slane %v7925_v13, 4 }
 0x4f2   : > { %v7971_v14 = vmax.f32 %v7969_v35, %v7970_v61  ;;  %v7977_v4 = vrot.slane %v7976_v34, 2  ;;  %v7932_v29 = vsel %vm7868_vm4, %v7749_v1, -inf  ;;  %v7939_v62 = vsel %vm7868_vm4, %v7748_v3, -inf }
 0x4f3   : > { %v7958_v59 = vrot.slane %v7957_v33, 1  ;;  %v7964_v50 = vmax.f32 %v7962_v41, %v7963_v26  ;;  %v7927_v46 = vmax.f32 %v7925_v13, %v7926_v10  ;;  %v7933_v57 = vrot.slane %v7932_v29, 4 }
 0x4f4   : > { %v7972_v28 = vrot.slane %v7971_v14, 1  ;;  %v7978_v20 = vmax.f32 %v7976_v34, %v7977_v4  ;;  %v7940_v55 = vrot.slane %v7939_v62, 4  ;;  %v7946_v63 = vsel %vm7868_vm4, %v7750_v48, -inf }
 0x4f5   : > { %v7965_v54 = vrot.slane %v7964_v50, 1  ;;  %v7928_v2 = vrot.slane %v7927_v46, 2  ;;  %v7934_v27 = vmax.f32 %v7932_v29, %v7933_v57  ;;  %v14551_v25 = vsel %vm14531_vm5, 1.0, %v14782_v12 }
 0x4f6   : > { %v7959_v0 = vmax.f32 %v7957_v33, %v7958_v59  ;;  %v7979_v37 = vrot.slane %v7978_v20, 1  ;;  %v7941_v36 = vmax.f32 %v7939_v62, %v7940_v55  ;;  %v7947_v40 = vrot.slane %v7946_v63, 4 }
 0x4f7   : > { %v7973_v52 = vmax.f32 %v7971_v14, %v7972_v28  ;;  %v7929_v51 = vmax.f32 %v7927_v46, %v7928_v2  ;;  %v7935_v32 = vrot.slane %v7934_v27, 2  ;;  %v7681_v8 = vadd.f32 %v14476_v30, %v7667_v44 }
 0x4f8   : > { %v7966_v15 = vmax.f32 %v7964_v50, %v7965_v54  ;;  %v7942_v56 = vrot.slane %v7941_v36, 2  ;;  %v7948_v6 = vmax.f32 %v7946_v63, %v7947_v40  ;;  %v7666_v47 = vmul.f32 %v14469_v53, %v14506_v24 }
 0x4f9   : > { %v7930_v19 = vrot.slane %v7929_v51, 1  ;;  %v7936_v9 = vmax.f32 %v7934_v27, %v7935_v32  ;;  %v7689_v16 = vmax.f32 %v7681_v8, 0.0  ;;  %v7647_v23 = vmul.f32 %v14508_v18, %v14494_v31 }
 0x4fa   : > { %v7980_v43 = vmax.f32 %v7978_v20, %v7979_v37  ;;  %v7943_v39 = vmax.f32 %v7941_v36, %v7942_v56  ;;  %v7949_v35 = vrot.slane %v7948_v6, 2  ;;  %v7680_v58 = vadd.f32 %v14476_v30, %v7666_v47 }
 0x4fb   : > { %v7931_v49 = vmax.f32 %v7929_v51, %v7930_v19  ;;  %v7937_v44 = vrot.slane %v7936_v9, 1  ;;  %v7785_v38 = vcombine.high %v7689_v16, %v7689_v16  ;;  %v7792_v41 = vrot.slane %v7689_v16, %v13436_v42 }
 0x4fc   : > { %v7944_v3 = vrot.slane %v7943_v39, 1  ;;  %v7950_v61 = vmax.f32 %v7948_v6, %v7949_v35  ;;  %v7688_v24 = vmax.f32 %v7680_v58, 0.0  ;;  %v7655_v34 = vadd.f32 %v7647_v23, %v14429_v5 }
 0x4fd   : > { %v7938_v1 = vmax.f32 %v7936_v9, %v7937_v44  ;;  %v8097_v13 = vmax.f32 %v7931_v49, %v7959_v0  ;;  %v7799_v31 = vrot.slane %v7785_v38, %v13436_v42  ;;  %v7800_v18 = vcombine.high %v7792_v41, %v7792_v41 }
 0x4fe   : > { %v7945_v33 = vmax.f32 %v7943_v39, %v7944_v3  ;;  %v7951_v26 = vrot.slane %v7950_v61, 1  ;;  %v8009_v48 = vsel %vm7868_vm4, %v7792_v41, -inf  ;;  %v7768_v10 = vcombine.high %v7688_v24, %v7688_v24 }
 0x4ff   : > { %v8098_v14 = vmax.f32 %v7938_v1, %v7966_v15  ;;  %v8130_v4 = vsel %vm6158_vm0, %v8097_v13, %v14542_v7  ;;  %v7801_v29 = vcombine.high %v7799_v31, %v7799_v31  ;;  %v8010_v62 = vrot.slane %v8009_v48, 4 }
 0x500   : > { %v7952_v59 = vmax.f32 %v7950_v61, %v7951_v26  ;;  %v8099_v50 = vmax.f32 %v7945_v33, %v7973_v52  ;;  %v8016_v5 = vsel %vm7868_vm4, %v7800_v18, -inf  ;;  %v8023_v46 = vsel %vm7868_vm4, %v7799_v31, -inf }
 0x501   : > { %v8131_v57 = vsel %vm6160_vm1, %v8098_v14, %v8130_v4  ;;  %v8011_v28 = vmax.f32 %v8009_v48, %v8010_v62  ;;  %v8017_v20 = vrot.slane %v8016_v5, 4  ;;  %v8024_v55 = vrot.slane %v8023_v46, 4 }
 0x502   : > { %v8100_v63 = vmax.f32 %v7952_v59, %v7980_v43  ;;  %v8132_v54 = vsel %vm6162_vm2, %v8099_v50, %v8131_v57  ;;  %v8030_v2 = vsel %vm7868_vm4, %v7801_v29, -inf  ;;  %v7775_v7 = vrot.slane %v7688_v24, %v13436_v42 }
 0x503   : > { %v8012_v27 = vrot.slane %v8011_v28, 2  ;;  %v8018_v0 = vmax.f32 %v8016_v5, %v8017_v20  ;;  %v8025_v37 = vmax.f32 %v8023_v46, %v8024_v55  ;;  %v8031_v36 = vrot.slane %v8030_v2, 4 }
 0x504   : > { %v8133_v40 = vsel %vm6164_vm3, %v8100_v63, %v8132_v54  ;;  %v7782_v52 = vrot.slane %v7768_v10, %v13436_v42  ;;  %v7783_v51 = vcombine.high %v7775_v7, %v7775_v7  ;;  %v7981_v32 = vsel %vm7868_vm4, %v7775_v7, -inf }
 0x505   : > { %8144 = vst.msk [vmem:[#allocation3 + $0x5] sm:$0xff] %vm8143_vm6, %v8133_v40  ;;  %v8013_v8 = vmax.f32 %v8011_v28, %v8012_v27  ;;  %v8019_v15 = vrot.slane %v8018_v0, 2  ;;  %v8026_v56 = vrot.slane %v8025_v37, 2  ;;  %v8032_v6 = vmax.f32 %v8030_v2, %v8031_v36 }
 0x506   : > { %v7784_v47 = vcombine.high %v7782_v52, %v7782_v52  ;;  %v7982_v19 = vrot.slane %v7981_v32, 4  ;;  %v7988_v9 = vsel %vm7868_vm4, %v7783_v51, -inf  ;;  %v7995_v16 = vsel %vm7868_vm4, %v7782_v52, -inf }
 0x507   : > { %v8020_v23 = vmax.f32 %v8018_v0, %v8019_v15  ;;  %v8027_v43 = vmax.f32 %v8025_v37, %v8026_v56  ;;  %v8033_v39 = vrot.slane %v8032_v6, 2  ;;  %v7989_v58 = vrot.slane %v7988_v9, 4 }
 0x508   : > { %v7983_v35 = vmax.f32 %v7981_v32, %v7982_v19  ;;  %v7996_v49 = vrot.slane %v7995_v16, 4  ;;  %v8002_v44 = vsel %vm7868_vm4, %v7784_v47, -inf  ;;  %v8014_v38 = vrot.slane %v8013_v8, 1 }
 0x509   : > { %v8034_v41 = vmax.f32 %v8032_v6, %v8033_v39  ;;  %v7646_v3 = vmul.f32 %v14551_v25, %v14512_v17  ;;  %v7990_v24 = vmax.f32 %v7988_v9, %v7989_v58  ;;  %v8003_v13 = vrot.slane %v8002_v44, 4 }
 0x50a   : > { %v7984_v61 = vrot.slane %v7983_v35, 2  ;;  %v7997_v1 = vmax.f32 %v7995_v16, %v7996_v49  ;;  %v8021_v31 = vrot.slane %v8020_v23, 1  ;;  %v8028_v18 = vrot.slane %v8027_v43, 1 }
 0x50b   : > { %v7669_v33 = vmul.f32 %v14469_v53, %v7655_v34  ;;  %v7991_v48 = vrot.slane %v7990_v24, 2  ;;  %v8004_v14 = vmax.f32 %v8002_v44, %v8003_v13  ;;  %v8015_v62 = vmax.f32 %v8013_v8, %v8014_v38 }
 0x50c   : > { %v7985_v26 = vmax.f32 %v7983_v35, %v7984_v61  ;;  %v7998_v10 = vrot.slane %v7997_v1, 2  ;;  %v8319_v4 = vld [vmem:[#allocation3 + $0x5] sm:$0xff]  ;;  %v8035_v59 = vrot.slane %v8034_v41, 1  ;;  %v7654_v17 = vadd.f32 %v7646_v3, %v14431_v45 }
 0x50d   : > { %v8576_v29 = vld [vmem:[#allocation3 + $0x4] sm:$0xff]  ;;  %v7683_v50 = vadd.f32 %v14476_v30, %v7669_v33  ;;  %11348 = vmatprep.mubr.msk.f32.mxu1 %vm8143_vm6, %v8319_v4  ;;  %v7992_v5 = vmax.f32 %v7990_v24, %v7991_v48  ;;  %v8005_v34 = vrot.slane %v8004_v14, 2  ;;  %v8022_v57 = vmax.f32 %v8020_v23, %v8021_v31 }
 0x50e   : > { %11405 = vmatprep.mubr.msk.f32.mxu0 %vm8143_vm6, %v8576_v29  ;;  %v7986_v25 = vrot.slane %v7985_v26, 1  ;;  %v7999_v46 = vmax.f32 %v7997_v1, %v7998_v10  ;;  %v8029_v28 = vmax.f32 %v8027_v43, %v8028_v18  ;;  %v7668_v55 = vmul.f32 %v14469_v53, %v7654_v17 }
 0x50f   : > { %v7691_v20 = vmax.f32 %v7683_v50, 0.0  ;;  %v7993_v54 = vrot.slane %v7992_v5, 1  ;;  %v8006_v7 = vmax.f32 %v8004_v14, %v8005_v34  ;;  %v8036_v27 = vmax.f32 %v8034_v41, %v8035_v59 }
 0x510   : > { %v7987_v63 = vmax.f32 %v7985_v26, %v7986_v25  ;;  %v8000_v2 = vrot.slane %v7999_v46, 1  ;;  %v7682_v37 = vadd.f32 %v14476_v30, %v7668_v55 }
 0x511   : > { %v7819_v0 = vcombine.high %v7691_v20, %v7691_v20  ;;  %v7826_v45 = vrot.slane %v7691_v20, %v13436_v42  ;;  %v7994_v36 = vmax.f32 %v7992_v5, %v7993_v54  ;;  %v8007_v52 = vrot.slane %v8006_v7, 1 }
 0x512   : > { %v8001_v40 = vmax.f32 %v7999_v46, %v8000_v2  ;;  %v8101_v51 = vmax.f32 %v7987_v63, %v8015_v62  ;;  %v7690_v53 = vmax.f32 %v7682_v37, 0.0 }
 0x513   : > { %v7833_v32 = vrot.slane %v7819_v0, %v13436_v42  ;;  %v7834_v8 = vcombine.high %v7826_v45, %v7826_v45  ;;  %v8065_v15 = vsel %vm7868_vm4, %v7826_v45, -inf  ;;  %v8008_v56 = vmax.f32 %v8006_v7, %v8007_v52 }
 0x514   : > { %v8102_v6 = vmax.f32 %v7994_v36, %v8022_v57  ;;  %v8103_v47 = vmax.f32 %v8001_v40, %v8029_v28  ;;  %v8066_v19 = vrot.slane %v8065_v15, 4  ;;  %v7802_v30 = vcombine.high %v7690_v53, %v7690_v53 }
 0x515   : > { %v7835_v9 = vcombine.high %v7833_v32, %v7833_v32  ;;  %v8072_v16 = vsel %vm7868_vm4, %v7834_v8, -inf  ;;  %v8079_v23 = vsel %vm7868_vm4, %v7833_v32, -inf  ;;  %v8104_v43 = vmax.f32 %v8008_v56, %v8036_v27 }
 0x516   : > { %v8134_v39 = vsel %vm6152_vm12, %v8102_v6, %v8101_v51  ;;  %v8067_v35 = vmax.f32 %v8065_v15, %v8066_v19  ;;  %v8073_v58 = vrot.slane %v8072_v16, 4  ;;  %v8080_v44 = vrot.slane %v8079_v23, 4 }
 0x517   : > { %v8135_v49 = vsel %vm6154_vm14, %v8103_v47, %v8134_v39  ;;  %v8086_v38 = vsel %vm7868_vm4, %v7835_v9, -inf  ;;  %v7809_v41 = vrot.slane %v7690_v53, %v13436_v42  ;;  %v7816_v1 = vrot.slane %v7802_v30, %v13436_v42 }
 0x518   : > { %v8068_v3 = vrot.slane %v8067_v35, 2  ;;  %v8074_v61 = vmax.f32 %v8072_v16, %v8073_v58  ;;  %v8087_v24 = vrot.slane %v8086_v38, 4  ;;  %v8081_v13 = vmax.f32 %v8079_v23, %v8080_v44 }
 0x519   : > { %v7817_v31 = vcombine.high %v7809_v41, %v7809_v41  ;;  %v8037_v18 = vsel %vm7868_vm4, %v7809_v41, -inf  ;;  %v8136_v33 = vsel %vm6156_vm15, %v8104_v43, %v8135_v49  ;;  %v7818_v14 = vcombine.high %v7816_v1, %v7816_v1 }
 0x51a   : > { %v8069_v26 = vmax.f32 %v8067_v35, %v8068_v3  ;;  %v8075_v48 = vrot.slane %v8074_v61, 2  ;;  %v8088_v10 = vmax.f32 %v8086_v38, %v8087_v24  ;;  %v8082_v4 = vrot.slane %v8081_v13, 2 }
 0x51b   : > { %v8038_v29 = vrot.slane %v8037_v18, 4  ;;  %v8044_v62 = vsel %vm7868_vm4, %v7817_v31, -inf  ;;  %v8051_v59 = vsel %vm7868_vm4, %v7816_v1, -inf  ;;  %v8058_v34 = vsel %vm7868_vm4, %v7818_v14, -inf  ;;  %v10151_v1 = vld [vmem:[%s14427_s20 + $0x28] sm:$0xff]   ;;  %v8317_v31 = vld [vmem:[#allocation3 + $0x1] sm:$0xff] }
 0x51c   : > { %v8076_v50 = vmax.f32 %v8074_v61, %v8075_v48  ;;  %v8089_v17 = vrot.slane %v8088_v10, 2  ;;  %v8045_v25 = vrot.slane %v8044_v62, 4  ;;  %v8083_v42 = vmax.f32 %v8081_v13, %v8082_v4  ;;  %v10147_v13 = vld [vmem:[%s14427_s20 + $0x8] sm:$0xff]   ;;  %v10153_v48 = vld [vmem:[%s14427_s20 + $0x38] sm:$0xff]  }
 0x51d   : > { %v8039_v5 = vmax.f32 %v8037_v18, %v8038_v29  ;;  %v8052_v46 = vrot.slane %v8051_v59, 4  ;;  %v8070_v57 = vrot.slane %v8069_v26, 1  ;;  %v8059_v54 = vrot.slane %v8058_v34, 4  ;;  %v8574_v18 = vld [vmem:[#allocation3] sm:$0xff]  ;;  %v10175_v29 = vld [vmem:[%s14427_s20 + $0xe8] sm:$0xff]  }
 0x51e   : > { %v8046_v28 = vmax.f32 %v8044_v62, %v8045_v25  ;;  %v8090_v20 = vmax.f32 %v8088_v10, %v8089_v17  ;;  %v8077_v2 = vrot.slane %v8076_v50, 1  ;;  %v8084_v27 = vrot.slane %v8083_v42, 1  ;;  %v10170_v10 = vld [vmem:[%s14427_s20 + $0xc0] sm:$0xff]   ;;  %v10171_v62 = vld [vmem:[%s14427_s20 + $0xc8] sm:$0xff]   ;;  %v10177_v17 = vld [vmem:[%s14427_s20 + $0xf8] sm:$0xff]  }
 0x51f   : > { %v8040_v55 = vrot.slane %v8039_v5, 2  ;;  %v8053_v63 = vmax.f32 %v8051_v59, %v8052_v46  ;;  %v8060_v37 = vmax.f32 %v8058_v34, %v8059_v54  ;;  %v8071_v36 = vmax.f32 %v8069_v26, %v8070_v57  ;;  %v10148_v26 = vld [vmem:[%s14427_s20 + $0x10] sm:$0xff]   ;;  %v10173_v25 = vld [vmem:[%s14427_s20 + $0xd8] sm:$0xff]   ;;  %v10167_v46 = vld [vmem:[%s14427_s20 + $0xa8] sm:$0xff]  }
 0x520   : > { %v8047_v7 = vrot.slane %v8046_v28, 2  ;;  %v8091_v52 = vrot.slane %v8090_v20, 1  ;;  %v8078_v15 = vmax.f32 %v8076_v50, %v8077_v2  ;;  %v8085_v56 = vmax.f32 %v8083_v42, %v8084_v27  ;;  %v10176_v59 = vld [vmem:[%s14427_s20 + $0xf0] sm:$0xff]   ;;  %v10166_v42 = vld [vmem:[%s14427_s20 + $0xa0] sm:$0xff]   ;;  %v10155_v54 = vld [vmem:[%s14427_s20 + $0x48] sm:$0xff]  }
 0x521   : > { %v8041_v0 = vmax.f32 %v8039_v5, %v8040_v55  ;;  %v8054_v45 = vrot.slane %v8053_v63, 2  ;;  %v8061_v8 = vrot.slane %v8060_v37, 2  ;;  %v10172_v50 = vld [vmem:[%s14427_s20 + $0xd0] sm:$0xff]   ;;  %v10154_v55 = vld [vmem:[%s14427_s20 + $0x40] sm:$0xff]   ;;  %v10157_v27 = vld [vmem:[%s14427_s20 + $0x58] sm:$0xff]  }
 0x522   : > { %v8048_v40 = vmax.f32 %v8046_v28, %v8047_v7  ;;  %v8092_v16 = vmax.f32 %v8090_v20, %v8091_v52  ;;  %v10168_v28 = vld [vmem:[%s14427_s20 + $0xb0] sm:$0xff]   ;;  %v10169_v20 = vld [vmem:[%s14427_s20 + $0xb8] sm:$0xff]  }
 0x523   : > { %v8042_v51 = vrot.slane %v8041_v0, 1  ;;  %v8055_v32 = vmax.f32 %v8053_v63, %v8054_v45  ;;  %v8062_v19 = vmax.f32 %v8060_v37, %v8061_v8  ;;  %v8835_v2 = vld [vmem:[#allocation3 + $0x2] sm:$0xff]  ;;  %v10156_v7 = vld [vmem:[%s14427_s20 + $0x50] sm:$0xff]   ;;  %v10179_v37 = vld [vmem:[%s14427_s20 + $0x108] sm:$0xff]  }
 0x524   : > { %v8049_v53 = vrot.slane %v8048_v40, 1  ;;  %v10183_v8 = vld [vmem:[%s600_s19 + $0x10] sm:$0xff]  }
 0x525   : > { %v8043_v6 = vmax.f32 %v8041_v0, %v8042_v51  ;;  %v8056_v47 = vrot.slane %v8055_v32, 1  ;;  %v8063_v30 = vrot.slane %v8062_v19, 1  ;;  %v10178_v0 = vld [vmem:[%s14427_s20 + $0x100] sm:$0xff]  }
 0x526   : > { %v8050_v9 = vmax.f32 %v8048_v40, %v8049_v53  ;;  %v10181_v40 = vld [vmem:[%s14427_s20 + $0x118] sm:$0xff]   ;;  %v10099_v51 = vld [vmem:[%s600_s19] sm:$0xff]  }
 0x527   : > { %v8057_v23 = vmax.f32 %v8055_v32, %v8056_v47  ;;  %v8105_v43 = vmax.f32 %v8043_v6, %v8071_v36  ;;  %v8064_v35 = vmax.f32 %v8062_v19, %v8063_v30  ;;  %v10180_v36 = vld [vmem:[%s14427_s20 + $0x110] sm:$0xff]   ;;  %v10182_v32 = vld [vmem:[%s600_s19 + $0x8] sm:$0xff]   ;;  %v10185_v53 = vld [vmem:[%s600_s19 + $0x20] sm:$0xff]   ;;  %v8304_v19 = vand.u32 3, %v14800_v11 }
 0x528   : > { %v8106_v39 = vmax.f32 %v8050_v9, %v8078_v15  ;;  %v10184_v15 = vld [vmem:[%s600_s19 + $0x18] sm:$0xff]   ;;  %v10187_v6 = vld [vmem:[%s600_s19 + $0x30] sm:$0xff]   ;;  %v8297_v9 = vand.u32 3, %v14778_v21 }
 0x529   : > { %v8107_v58 = vmax.f32 %v8057_v23, %v8085_v56  ;;  %v8137_v49 = vsel %vm6158_vm0, %v8105_v43, %v8136_v33  ;;  %v8108_v38 = vmax.f32 %v8064_v35, %v8092_v16  ;;  %v10152_v33 = vld [vmem:[%s14427_s20 + $0x30] sm:$0xff]   ;;  %v10186_v56 = vld [vmem:[%s600_s19 + $0x28] sm:$0xff]   ;;  %v10188_v47 = vld [vmem:[%s600_s19 + $0x38] sm:$0xff]   ;;  %vm8569_vm12 = vcmp.gt.s32.totalorder %v8304_v19, 0  ;;  %s609_s19 = sadd.s32 %s9432_s15, %s14822_s21 }
 0x52a   : > { %v8138_v44 = vsel %vm6160_vm1, %v8106_v39, %v8137_v49  ;;  %vm8568_vm14 = vcmp.gt.s32.totalorder %v8297_v9, 0  ;;  %v9862_v16 = vsel %vm8569_vm12, 1.0, %v14782_v12  ;;  %vm8830_vm15 = vcmp.lt.s32.totalorder %v8304_v19, 3 }
 0x52b   : > { %v8139_v41 = vsel %vm6162_vm2, %v8107_v58, %v8138_v44  ;;  %v9861_v30 = vsel %vm8568_vm14, 1.0, %v14782_v12  ;;  %vm8829_vm0 = vcmp.lt.s32.totalorder %v8297_v9, 3  ;;  %v9870_v11 = vsel %vm8830_vm15, 1.0, %v14782_v12 }
 0x52c   : > { %v8140_v3 = vsel %vm6164_vm3, %v8108_v38, %v8139_v41  ;;  %v9869_v41 = vsel %vm8829_vm0, 1.0, %v14782_v12 }
 0x52d   : > { %8145 = vst.msk [vmem:[#allocation3 + $0xd] sm:$0xff] %vm8143_vm6, %v8140_v3 }
 0x534   : > { %v8320_v61 = vld [vmem:[#allocation3 + $0xd] sm:$0xff] }
 0x535   : > { %v8577_v24 = vld [vmem:[#allocation3 + $0xc] sm:$0xff]  ;;  %11349 = vmatmul.mubr.msk.f32.vlgmr.msra.gmra.mrb[64].mxu1 %vm8143_vm6, %v8320_v61 }
 0x536   : > { %11406 = vmatmul.mubr.msk.f32.vlgmr.msra.gmra.mrb[64].mxu0 %vm8143_vm6, %v8577_v24  ;;  %11629 = vmatpush3.bf16.msra.mxu1 %v14444_v60  ;;  %v10149_v60 = vld [vmem:[%s14427_s20 + $0x18] sm:$0xff]   ;;  %v8318_v14 = vld [vmem:[#allocation3 + $0x9] sm:$0xff]  ;;  %v8484_v5 = vld [vmem:[#allocation3 + $0x11] sm:$0xff] }
 0x537   : > { %11677 = vmatpush3.bf16.msra.mxu0 %v14447_v22  ;;  %11367 = vmatprep.mubr.msk.f32.mxu1 %vm8143_vm6, %v8317_v31  ;;  %v10174_v22 = vld [vmem:[%s14427_s20 + $0xe0] sm:$0xff]   ;;  %v8741_v34 = vld [vmem:[#allocation3 + $0x10] sm:$0xff]  ;;  %s9433_s20 = sshll.u32 %s609_s19, 3 }
 0x538   : > { %11424 = vmatprep.mubr.msk.f32.mxu0 %vm8143_vm6, %v8574_v18  ;;  %11631 = vmatprep.subr.bf16.mxu1 %v10151_v1  ;;  %v8575_v4 = vld [vmem:[#allocation3 + $0x8] sm:$0xff]  ;;  %v9002_v52 = vld [vmem:[#allocation3 + $0x12] sm:$0xff]  ;;  %s611_s30 = scalar_lea.vmem %s14706_s12, %s9433_s20 }
 0x539   : > { %11679 = vmatprep.subr.bf16.mxu0 %v10147_v13  ;;  %v8837_v57 = vld [vmem:[#allocation3 + $0x6] sm:$0xff]  ;;  %v8838_v63 = vld [vmem:[#allocation3 + $0xe] sm:$0xff] }
 0x53a   : > { %11633 = vmatpush3.bf16.msra.mxu1 %v10151_v1  ;;  %v8836_v45 = vld [vmem:[#allocation3 + $0xa] sm:$0xff]  ;;  %v9877_v1 = vld [vmem:[%s592_s29] ss:$0 sm:$0xff] }
 0x53b   : > { %11681 = vmatpush3.bf16.msra.mxu0 %v10147_v13  ;;  %11635 = vmatprep.subr.bf16.mxu1 %v10152_v33 }
 0x53c   : > { %11683 = vmatprep.subr.bf16.mxu0 %v10148_v26 }
 0x53e   : > { %11637 = vmatpush3.bf16.msra.mxu1 %v10152_v33  ;;  %v9878_v33 = vld [vmem:[%s595_s14] ss:$0 sm:$0xff] }
 0x53f   : > { %11685 = vmatpush3.bf16.msra.mxu0 %v10148_v26  ;;  %11639 = vmatprep.subr.bf16.mxu1 %v10153_v48 }
 0x540   : > { %11687 = vmatprep.subr.bf16.mxu0 %v10149_v60 }
 0x542   : > { %11641 = vmatpush3.bf16.msra.mxu1 %v10153_v48 }
 0x543   : > { %11689 = vmatpush3.bf16.msra.mxu0 %v10149_v60  ;;  %11643 = vmatprep.subr.bf16.mxu1 %v10174_v22 }
 0x544   : > { %11691 = vmatprep.subr.bf16.mxu0 %v10170_v10 }
 0x545   : > { %11368 = vmatmul.mubr.msk.f32.vlgmr.msra.gmra.mrb[64].mxu1 %vm8143_vm6, %v8318_v14 }
 0x546   : > { %11425 = vmatmul.mubr.msk.f32.vlgmr.msra.gmra.mrb[64].mxu0 %vm8143_vm6, %v8575_v4  ;;  %11645 = vmatpush3.bf16.msra.mxu1 %v10174_v22 }
 0x547   : > { %11386 = vmatprep.mubr.msk.f32.mxu1 %vm8143_vm6, %v8318_v14  ;;  %11693 = vmatpush3.bf16.msra.mxu0 %v10170_v10 }
 0x548   : > { %11443 = vmatprep.mubr.msk.f32.mxu0 %vm8143_vm6, %v8575_v4  ;;  %11647 = vmatprep.subr.bf16.mxu1 %v10175_v29 }
 0x549   : > { %11695 = vmatprep.subr.bf16.mxu0 %v10171_v62 }
 0x54a   : > { %11649 = vmatpush3.bf16.msra.mxu1 %v10175_v29 }
 0x54b   : > { %11697 = vmatpush3.bf16.msra.mxu0 %v10171_v62  ;;  %11651 = vmatprep.subr.bf16.mxu1 %v10176_v59 }
 0x54c   : > { %11699 = vmatprep.subr.bf16.mxu0 %v10172_v50 }
 0x54e   : > { %11653 = vmatpush3.bf16.msra.mxu1 %v10176_v59 }
 0x54f   : > { %11701 = vmatpush3.bf16.msra.mxu0 %v10172_v50  ;;  %11655 = vmatprep.subr.bf16.mxu1 %v10177_v17 }
 0x550   : > { %11703 = vmatprep.subr.bf16.mxu0 %v10173_v25 }
 0x552   : > { %11657 = vmatpush3.bf16.msra.mxu1 %v10177_v17 }
 0x553   : > { %11705 = vmatpush3.bf16.msra.mxu0 %v10173_v25  ;;  %11707 = vmatprep.subr.bf16.mxu1 %v10166_v42 }
 0x554   : > { %11755 = vmatprep.subr.bf16.mxu0 %v10099_v51 }
 0x555   : > { %11387 = vmatmul.mubr.msk.f32.vlgmr.msra.gmra.mrb[64].mxu1 %vm8143_vm6, %v8484_v5  ;;  %v9223_v5 = vld [vmem:[%s603_s18] sm:$0x1] }
 0x556   : > { %11444 = vmatmul.mubr.msk.f32.vlgmr.msra.gmra.mrb[64].mxu0 %vm8143_vm6, %v8741_v34  ;;  %11709 = vmatpush3.bf16.msra.mxu1 %v10166_v42  ;;  %v9227_v34 = vsub.s32 0, %v14778_v21 }
 0x557   : > { %11462 = vmatprep.mubr.msk.f32.mxu1 %vm8143_vm6, %v8837_v57  ;;  %11711 = vmatprep.subr.bf16.mxu1 %v10167_v46 }
 0x558   : > { %11757 = vmatpush3.bf16.msra.mxu0 %v10099_v51 }
 0x559   : > { %11759 = vmatprep.subr.bf16.mxu0 %v10182_v32 }
 0x55a   : > { %11713 = vmatpush3.bf16.msra.mxu1 %v10167_v46 }
 0x55b   : > { %11715 = vmatprep.subr.bf16.mxu1 %v10168_v28 }
 0x55c   : > { %11761 = vmatpush3.bf16.msra.mxu0 %v10182_v32 }
 0x55d   : > { %11763 = vmatprep.subr.bf16.mxu0 %v10183_v8 }
 0x55e   : > { %11717 = vmatpush3.bf16.msra.mxu1 %v10168_v28 }
 0x55f   : > { %11719 = vmatprep.subr.bf16.mxu1 %v10169_v20 }
 0x560   : > { %11765 = vmatpush3.bf16.msra.mxu0 %v10183_v8 }
 0x561   : > { %11767 = vmatprep.subr.bf16.mxu0 %v10184_v15 }
 0x562   : > { %11721 = vmatpush3.bf16.msra.mxu1 %v10169_v20 }
 0x563   : > { %11723 = vmatprep.subr.bf16.mxu1 %v10154_v55 }
 0x564   : > { %11769 = vmatpush3.bf16.msra.mxu0 %v10184_v15 }
 0x565   : > { %11463 = vmatmul.mubr.msk.f32.vlgmr.msra.gmra.mrb[66].mxu1 %vm8143_vm6, %v8838_v63  ;;  %11771 = vmatprep.subr.bf16.mxu0 %v10185_v53 }
 0x566   : > { %11725 = vmatpush3.bf16.msra.mxu1 %v10154_v55  ;;  %11481 = vmatprep.mubr.msk.f32.mxu1 %vm8143_vm6, %v8835_v2 }
 0x567   : > { %11727 = vmatprep.subr.bf16.mxu1 %v10155_v54 }
 0x568   : > { %11773 = vmatpush3.bf16.msra.mxu0 %v10185_v53 }
 0x569   : > { %11775 = vmatprep.subr.bf16.mxu0 %v10186_v56 }
 0x56a   : > { %11729 = vmatpush3.bf16.msra.mxu1 %v10155_v54 }
 0x56b   : > { %11731 = vmatprep.subr.bf16.mxu1 %v10156_v7 }
 0x56c   : > { %11777 = vmatpush3.bf16.msra.mxu0 %v10186_v56 }
 0x56d   : > { %11779 = vmatprep.subr.bf16.mxu0 %v10187_v6 }
 0x56e   : > { %11733 = vmatpush3.bf16.msra.mxu1 %v10156_v7 }
 0x56f   : > { %11735 = vmatprep.subr.bf16.mxu1 %v10157_v27 }
 0x570   : > { %11781 = vmatpush3.bf16.msra.mxu0 %v10187_v6 }
 0x571   : > { %11783 = vmatprep.subr.bf16.mxu0 %v10188_v47 }
 0x572   : > { %11737 = vmatpush3.bf16.msra.mxu1 %v10157_v27 }
 0x573   : > { %11739 = vmatprep.subr.bf16.mxu1 %v10178_v0 }
 0x574   : > { %11785 = vmatpush3.bf16.msra.mxu0 %v10188_v47 }
 0x575   : > { %11482 = vmatmul.mubr.msk.f32.vlgmr.msra.gmra.mrb[66].mxu1 %vm8143_vm6, %v8836_v45 }
 0x576   : > { %11741 = vmatpush3.bf16.msra.mxu1 %v10178_v0  ;;  %11500 = vmatprep.mubr.msk.f32.mxu1 %vm8143_vm6, %v8836_v45 }
 0x577   : > { %11743 = vmatprep.subr.bf16.mxu1 %v10179_v37 }
 0x57a   : > { %11745 = vmatpush3.bf16.msra.mxu1 %v10179_v37 }
 0x57b   : > { %11747 = vmatprep.subr.bf16.mxu1 %v10180_v36 }
 0x57e   : > { %11749 = vmatpush3.bf16.msra.mxu1 %v10180_v36 }
 0x57f   : > { %11751 = vmatprep.subr.bf16.mxu1 %v10181_v40 }
 0x582   : > { %11753 = vmatpush3.bf16.msra.mxu1 %v10181_v40 }
 0x585   : > { %11501 = vmatmul.mubr.msk.f32.vlgmr.msra.gmra.mrb[66].mxu1 %vm8143_vm6, %v9002_v52 }
 0x628   : > { %v11388_v23 = vpop.f32.mrb[64].mxu1 }
 0x629   : > { %v11445_v43 = vpop.f32.mrb[64].mxu0  ;;  %v8557_v39 = vpop.f32.mrb[65].mxu1 }
 0x62a   : > { %v8826_v35 = vmul.f32 %v11445_v43, %v9862_v16  ;;  %v8814_v58 = vpop.f32.mrb[65].mxu0 }
 0x62b   : > { %v8825_v49 = vmul.f32 %v9861_v30, %v8814_v58 }
 0x62c   : > { %v8828_v44 = vadd.f32 %v11388_v23, %v8826_v35 }
 0x62d   : > { %v8827_v38 = vadd.f32 %v8825_v49, %v8557_v39 }
 0x658   : > { %v11502_v3 = vpop.f32.mrb[66].mxu1 }
 0x659   : > { %v9087_v61 = vmul.f32 %v11502_v3, %v9870_v11  ;;  %v9075_v24 = vpop.f32.mrb[67].mxu1 }
 0x65a   : > { %v9086_v13 = vmul.f32 %v9869_v41, %v9075_v24 }
 0x65b   : > { %v9089_v31 = vadd.f32 %v9087_v61, %v8828_v44 }
 0x65c   : > { %v9088_v18 = vadd.f32 %v9086_v13, %v8827_v38 }
 0x65d   : > { %v9097_v26 = vmul.f32 %v9877_v1, %v9089_v31 }
 0x65e   : > { %v9096_v48 = vmul.f32 %v9877_v1, %v9088_v18 }
 0x65f   : > { %v9105_v60 = vadd.f32 %v9878_v33, %v9097_v26 }
 0x660   : > { %v9104_v22 = vadd.f32 %v9878_v33, %v9096_v48 }
 0x661   : > { %v9107_v10 = vmax.f32 %v9105_v60, 0.0 }
 0x662   : > { %v9106_v12 = vmax.f32 %v9104_v22, 0.0 }
 0x664   : > { %11535 = vmatprep.mubr.f32.mxu0 %v9106_v12 }
 0x665   : > { %11536 = vmatmul.mubr.f32.vlgmr.msra.gmra.mrb[66].mxu0 %v9107_v10 }
 0x738   : > { %v11537_v14 = vpop.f32.mrb[66].mxu0 }
 0x739   : > { %v9206_v4 = vpop.f32.mrb[67].mxu0 }
 0x73a   : > { %v9215_v29 = vadd.f32 %v11537_v14, %v9206_v4 }
 0x73c   : > { %v9216_v62 = vrot.slane %v9215_v29, 4 }
 0x73e   : > { %v9217_v59 = vadd.f32 %v9216_v62, %v9215_v29 }
 0x740   : > { %v9218_v50 = vrot.slane %v9217_v59, 2 }
 0x742   : > { %v9219_v17 = vadd.f32 %v9218_v50, %v9217_v59 }
 0x744   : > { %v9220_v25 = vrot.slane %v9219_v17, 1 }
 0x746   : > { %v9221_v42 = vadd.f32 %v9220_v25, %v9219_v17 }
 0x748   : > { %v9222_v46 = vmul.f32 0.0625, %v9221_v42 }
 0x74a   : > { %v9224_v57 = vadd.f32 %v9223_v5, %v9222_v46 }
 0x74c   : > { %v9228_v28 = vrot.slane %v9224_v57, %v9227_v34 }
 0x74e   : > { %9229 = vst [vmem:[%s611_s30] sm:$0xff] %v9228_v28 }
 0x74f PF: > { %s22_s25 = sadd.s32 1, %s12132_s25   ;;  %s14809_s21 = smov %s12124_s23 }
 0x750   : > { %p19_p7 = scmp.ge.s32.totalorder %s22_s25, 6   ;;  %s14810_s22 = smov %s12128_s24 }
 0x751   : > { %s14811_s23 = smov %s14814_s26  ;;  %s14812_s24 = smov %s14818_s27 }
 0x752   :  { %21 = sbr.rel (!%p19_p7) target bundleno = 3 (0x3), region = 131 }

</bundles_post_ra>
